<compile_context>
chip_gen: v7x
topology: tpu7x:2x2x1
jax: 0.10.0
libtpu: 0.0.40
codegen_flags: <defaults>
</compile_context>

<pallas_src>
import jax
import jax.numpy as jnp
from jax import lax
from jax.experimental import pallas as pl
from jax.experimental.pallas import tpu as pltpu

EPS = 1e-5
LANE = 128


def _round_up(x, m):
    return (x + m - 1) // m * m


# ---------------------------------------------------------------------------
# Fused kernel: 1x1x1 conv -> 3x3x3 conv (pad=1) -> folded BN -> +res -> ReLU
# One grid step handles one (batch, depth-chunk) tile of TD slabs.
# ---------------------------------------------------------------------------
def _make_fused_kernel(TD, H, W, has_proj):
    HW = H * W

    def kernel(xc_ref, xp_ref, xn_ref, w1_ref, b1_ref, w2_ref,
               scale_ref, bias_ref, *rest):
        if has_proj:
            wr_ref, br_ref, out_ref, vol_ref = rest
        else:
            out_ref, vol_ref = rest

        Co = w1_ref.shape[1]
        cdt = w2_ref.dtype                       # MXU operand dtype
        c_idx = pl.program_id(1)
        n_chunks = pl.num_programs(1)

        w1 = w1_ref[...]                         # (Ci, Co), mxu dtype
        b1 = b1_ref[...]                         # (1, Co), fp32

        def y1_padded_slab(rows):
            """(HW, Ci) fp32 rows -> zero-framed (H+2, W+2, Co) slab (cdt)."""
            y = jnp.dot(rows.astype(cdt), w1,
                        preferred_element_type=jnp.float32) + b1
            t = y.astype(cdt).reshape(H, W, Co)
            zc = jnp.zeros((H, 1, Co), cdt)
            t = jnp.concatenate([zc, t, zc], axis=1)       # pad W
            zr = jnp.zeros((1, W + 2, Co), cdt)
            return jnp.concatenate([zr, t, zr], axis=0)    # pad H

        # ---- Phase 1: stage padded y1 (1x1x1 conv) into the VMEM scratch ----
        @pl.loop(0, TD)
        def _(d):
            r0 = pl.multiple_of(d * HW, HW)
            vol_ref[d + 1] = y1_padded_slab(xc_ref[pl.ds(r0, HW), :])

        zero_slab = jnp.zeros((H + 2, W + 2, Co), cdt)

        # Depth halos: skip the matmul entirely at volume edges (pl.when).
        @pl.when(c_idx > 0)
        def _():
            vol_ref[0] = y1_padded_slab(xp_ref[...])

        @pl.when(c_idx == 0)
        def _():
            vol_ref[0] = zero_slab

        @pl.when(c_idx < n_chunks - 1)
        def _():
            vol_ref[TD + 1] = y1_padded_slab(xn_ref[...])

        @pl.when(c_idx == n_chunks - 1)
        def _():
            vol_ref[TD + 1] = zero_slab

        # ---- Phase 2: 3x3x3 conv (27 K=C taps) + BN + residual + ReLU -------
        scale = scale_ref[...]                   # (1, Co) fp32
        bias = bias_ref[...]                     # (1, Co) fp32
        if has_proj:
            wr = wr_ref[...]
            br = br_ref[...]

        @pl.loop(0, TD)
        def _(d):
            acc = jnp.zeros((HW, Co), jnp.float32)
            for kd in range(3):
                for kh in range(3):
                    for kw in range(3):
                        win = vol_ref[d + kd, kh:kh + H, kw:kw + W, :]
                        win = win.reshape(HW, Co)
                        t = kd * 9 + kh * 3 + kw
                        acc = acc + jnp.dot(
                            win, w2_ref[t], preferred_element_type=jnp.float32)
            acc = acc * scale + bias             # folded BN (+ conv2 bias)

            r0 = pl.multiple_of(d * HW, HW)
            xrows = xc_ref[pl.ds(r0, HW), :]     # fp32 residual source
            if has_proj:
                res = jnp.dot(xrows.astype(cdt), wr,
                              preferred_element_type=jnp.float32) + br
            else:
                res = xrows                      # identity residual, fp32
            out_ref[pl.ds(r0, HW), :] = jnp.maximum(acc + res, 0.0).astype(
                out_ref.dtype)

    return kernel


# ---------------------------------------------------------------------------
# Generation-aware tiling: derive depth_tile & VMEM budget from the footprint.
# ---------------------------------------------------------------------------
def _select_tiling(N, D, H, W, Ci, Co, io_bytes, mxu_bytes, depth_tile):
    try:
        vmem_cap = int(pltpu.get_tpu_info().vmem_capacity_bytes)
    except Exception:
        vmem_cap = 64 * 1024 * 1024              # conservative fallback
    budget = min((vmem_cap * 3) // 4, 100 * 1024 * 1024)

    HW = H * W

    def footprint(td):
        x_in = 2 * td * HW * Ci * io_bytes + 4 * HW * Ci * io_bytes
        out = 2 * td * HW * Co * 4
        wts = 2 * ((2 * Ci * Co + 27 * Co * Co) * mxu_bytes + 3 * Co * 4)
        vol = (td + 2) * (H + 2) * (W + 2) * Co * mxu_bytes
        tmp = 6 * (H + 2) * (W + 2) * Co * 4     # staging / acc temporaries
        return x_in + out + wts + vol + tmp

    if depth_tile is not None:
        assert D % depth_tile == 0, "depth_tile must divide D"
        return depth_tile, int(budget)

    divisors = [t for t in range(1, min(D, 32) + 1) if D % t == 0]
    # Prefer tiles that leave >= 2 grid steps so both v7x TCs get work.
    prefer = [t for t in divisors if N * (D // t) >= 2] or divisors
    best = 1
    for t in sorted(prefer):
        if footprint(t) <= budget:
            best = t
    return best, int(budget)


# ---------------------------------------------------------------------------
# Forward wrapper (layout glue + weight/BN folding + pallas_call)
# ---------------------------------------------------------------------------
def res_conv3d_s_bn_forward(x_ncdhw, params, *, mxu_dtype=jnp.float32,
                            depth_tile=None, out_dtype=jnp.float32):
    """ResConv3D_S_BN forward. x is NCDHW; returns NCDHW."""
    N, Cin, D, H, W = x_ncdhw.shape
    Cout = params["w1"].shape[0]
    HW = H * W
    assert W % 8 == 0, "W must be a multiple of 8 (sublane tiling)"

    Ci = _round_up(max(Cin, LANE), LANE)         # lane-dense padded channels
    Co = _round_up(max(Cout, LANE), LANE)

    io_bytes = jnp.dtype(jnp.float32).itemsize
    mxu_bytes = jnp.dtype(mxu_dtype).itemsize
    TD, vmem_budget = _select_tiling(N, D, H, W, Ci, Co, io_bytes, mxu_bytes,
                                     depth_tile)
    NC = D // TD

    # Channels-last flattened rows, channel-padded to a lane multiple.
    x_cl = jnp.transpose(x_ncdhw, (0, 2, 3, 4, 1)).astype(jnp.float32)
    xr = x_cl.reshape(N * D * HW, Cin)
    xr = jnp.pad(xr, ((0, 0), (0, Ci - Cin)))

    def pad2(a, r, c):
        return jnp.pad(a, ((0, r - a.shape[0]), (0, c - a.shape[1])))

    w1 = pad2(params["w1"].reshape(Cout, Cin).T, Ci, Co).astype(mxu_dtype)
    b1 = jnp.pad(params["b1"], (0, Co - Cout)).reshape(1, Co).astype(jnp.float32)

    # (co, ci, kd, kh, kw) -> (kd*9 + kh*3 + kw, ci, co), channel-padded.
    w2 = jnp.transpose(params["w2"], (2, 3, 4, 1, 0)).reshape(27, Cout, Cout)
    w2 = jnp.pad(w2, ((0, 0), (0, Co - Cout), (0, Co - Cout))).astype(mxu_dtype)

    # Fold BatchNorm3d (running stats) and the conv2 bias into scale / bias.
    scale = params["gamma"] / jnp.sqrt(params["var"] + EPS)
    bias = params["beta"] + scale * (params["b2"] - params["mean"])
    scale = jnp.pad(scale, (0, Co - Cout)).reshape(1, Co).astype(jnp.float32)
    bias = jnp.pad(bias, (0, Co - Cout)).reshape(1, Co).astype(jnp.float32)

    has_proj = (Cin != Cout)
    kernel = _make_fused_kernel(TD, H, W, has_proj)

    in_specs = [
        # centre depth chunk (TD slabs), read once per output chunk
        pl.BlockSpec((TD * HW, Ci), lambda n, c: (n * NC + c, 0)),
        # one-slab depth halos (index-clamped; pl.when-masked inside kernel)
        pl.BlockSpec((HW, Ci),
                     lambda n, c: (jnp.maximum(n * D + c * TD - 1, 0), 0)),
        pl.BlockSpec((HW, Ci),
                     lambda n, c: (jnp.minimum(n * D + (c + 1) * TD,
                                               N * D - 1), 0)),
        pl.BlockSpec((Ci, Co), lambda n, c: (0, 0)),
        pl.BlockSpec((1, Co), lambda n, c: (0, 0)),
        pl.BlockSpec((27, Co, Co), lambda n, c: (0, 0, 0)),
        pl.BlockSpec((1, Co), lambda n, c: (0, 0)),
        pl.BlockSpec((1, Co), lambda n, c: (0, 0)),
    ]
    args = [xr, xr, xr, w1, b1, w2, scale, bias]
    if has_proj:
        wr = pad2(params["wr"].reshape(Cout, Cin).T, Ci, Co).astype(mxu_dtype)
        br = jnp.pad(params["br"], (0, Co - Cout)).reshape(1, Co).astype(
            jnp.float32)
        in_specs += [pl.BlockSpec((Ci, Co), lambda n, c: (0, 0)),
                     pl.BlockSpec((1, Co), lambda n, c: (0, 0))]
        args += [wr, br]

    out_rows = pl.pallas_call(
        kernel,
        out_shape=jax.ShapeDtypeStruct((N * D * HW, Co), out_dtype),
        grid_spec=pltpu.PrefetchScalarGridSpec(
            num_scalar_prefetch=0,
            grid=(N, NC),
            in_specs=in_specs,
            out_specs=pl.BlockSpec((TD * HW, Co),
                                   lambda n, c: (n * NC + c, 0)),
            scratch_shapes=[
                pltpu.VMEM((TD + 2, H + 2, W + 2, Co), mxu_dtype)]),
        compiler_params=pltpu.CompilerParams(
            dimension_semantics=("parallel", "parallel"),
            vmem_limit_bytes=int(vmem_budget)),
    )(*args)

    out = out_rows.reshape(N, D, H, W, Co)[..., :Cout].astype(jnp.float32)
    return jnp.transpose(out, (0, 4, 1, 2, 3))               # back to NCDHW


# ---------------------------------------------------------------------------
# Pure-JAX reference (same semantics) for verification
# ---------------------------------------------------------------------------
def reference_forward(x, params):
    dn = ("NCDHW", "OIDHW", "NCDHW")
    b = lambda v: v[None, :, None, None, None]
    y1 = lax.conv_general_dilated(x, params["w1"], (1, 1, 1), "VALID",
                                  dimension_numbers=dn) + b(params["b1"])
    y2 = lax.conv_general_dilated(y1, params["w2"], (1, 1, 1), [(1, 1)] * 3,
                                  dimension_numbers=dn) + b(params["b2"])
    y3 = (y2 - b(params["mean"])) / jnp.sqrt(b(params["var"]) + EPS) \
         * b(params["gamma"]) + b(params["beta"])
    if x.shape[1] != params["w1"].shape[0]:
        res = lax.conv_general_dilated(x, params["wr"], (1, 1, 1), "VALID",
                                       dimension_numbers=dn) + b(params["br"])
    else:
        res = x
    return jnp.maximum(y3 + res, 0.0)


if __name__ == "__main__":
    key = jax.random.PRNGKey(0)

    def make_params(k, cin, cout):
        ks = jax.random.split(k, 11)
        p = {
            "w1": 0.2 * jax.random.normal(ks[1], (cout, cin, 1, 1, 1), jnp.float32),
            "b1": 0.1 * jax.random.normal(ks[2], (cout,), jnp.float32),
            "w2": 0.1 * jax.random.normal(ks[3], (cout, cout, 3, 3, 3), jnp.float32),
            "b2": 0.1 * jax.random.normal(ks[4], (cout,), jnp.float32),
            "gamma": 1.0 + 0.1 * jax.random.normal(ks[7], (cout,), jnp.float32),
            "beta": 0.1 * jax.random.normal(ks[8], (cout,), jnp.float32),
            "mean": 0.1 * jax.random.normal(ks[9], (cout,), jnp.float32),
            "var": 0.5 + jnp.abs(jax.random.normal(ks[10], (cout,), jnp.float32)),
        }
        if cin != cout:
            p["wr"] = 0.2 * jax.random.normal(ks[5], (cout, cin, 1, 1, 1), jnp.float32)
            p["br"] = 0.1 * jax.random.normal(ks[6], (cout,), jnp.float32)
        return p

    N, D, H, W = 2, 8, 8, 8
    k1, k2, k3 = jax.random.split(key, 3)

    # --- config 1: projection residual (Cin != Cout), fp32 MXU, halo path ---
    x1 = jax.random.normal(k1, (N, 4, D, H, W), jnp.float32)
    p1 = make_params(k2, 4, 8)
    out1 = jax.block_until_ready(res_conv3d_s_bn_forward(x1, p1, depth_tile=4))
    ref1 = jax.block_until_ready(reference_forward(x1, p1))
    assert out1.shape == (N, 8, D, H, W), out1.shape
    err1 = float(jnp.max(jnp.abs(out1 - ref1)))
    assert jnp.allclose(out1, ref1, atol=1e-4, rtol=1e-4), f"proj err={err1}"

    # --- config 2: identity residual (Cin == Cout), fp32 MXU, auto tiling ---
    x2 = jax.random.normal(k3, (N, 8, D, H, W), jnp.float32)
    p2 = make_params(k2, 8, 8)
    out2 = jax.block_until_ready(res_conv3d_s_bn_forward(x2, p2))
    ref2 = jax.block_until_ready(reference_forward(x2, p2))
    err2 = float(jnp.max(jnp.abs(out2 - ref2)))
    assert jnp.allclose(out2, ref2, atol=1e-4, rtol=1e-4), f"id err={err2}"

    # --- config 3: bf16 MXU operands (v6e/v7x fast path), loose tolerance ---
    out3 = jax.block_until_ready(
        res_conv3d_s_bn_forward(x1, p1, mxu_dtype=jnp.bfloat16, depth_tile=4))
    assert bool(jnp.all(jnp.isfinite(out3)))
    err3 = float(jnp.max(jnp.abs(out3 - ref1)))
    assert err3 < 0.1, f"bf16 err={err3}"

    print("KERNEL_OK")
</pallas_src>

<mosaic_0001>
module attributes {stable_mosaic.version = 11 : i64} {
  func.func @kernel(%arg0: i32, %arg1: i32, %arg2: memref<256x128xf32, #tpu.memory_space<vmem>>, %arg3: memref<64x128xf32, #tpu.memory_space<vmem>>, %arg4: memref<64x128xf32, #tpu.memory_space<vmem>>, %arg5: memref<128x128xf32, #tpu.memory_space<vmem>>, %arg6: memref<1x128xf32, #tpu.memory_space<vmem>>, %arg7: memref<27x128x128xf32, #tpu.memory_space<vmem>>, %arg8: memref<1x128xf32, #tpu.memory_space<vmem>>, %arg9: memref<1x128xf32, #tpu.memory_space<vmem>>, %arg10: memref<128x128xf32, #tpu.memory_space<vmem>>, %arg11: memref<1x128xf32, #tpu.memory_space<vmem>>, %arg12: memref<256x128xf32, #tpu.memory_space<vmem>>, %arg13: memref<6x10x10x128xf32, #tpu.memory_space<vmem>>) attributes {dimension_semantics = [#tpu.dimension_semantics<parallel>, #tpu.dimension_semantics<parallel>], iteration_bounds = array<i64: 2, 2>, scalar_prefetch = 0 : i64, scratch_operands = 1 : i64, tpu.core_type = #tpu.core_type<tc>, window_params = [{transform_indices = @transform_0, window_bounds = array<i64: 256, 128>}, {transform_indices = @transform_1, window_bounds = array<i64: 64, 128>}, {transform_indices = @transform_2, window_bounds = array<i64: 64, 128>}, {pipeline_mode = #tpu.pipeline_mode<synchronous>, transform_indices = @transform_3, window_bounds = array<i64: 128, 128>}, {pipeline_mode = #tpu.pipeline_mode<synchronous>, transform_indices = @transform_4, window_bounds = array<i64: 1, 128>}, {pipeline_mode = #tpu.pipeline_mode<synchronous>, transform_indices = @transform_5, window_bounds = array<i64: 27, 128, 128>}, {pipeline_mode = #tpu.pipeline_mode<synchronous>, transform_indices = @transform_6, window_bounds = array<i64: 1, 128>}, {pipeline_mode = #tpu.pipeline_mode<synchronous>, transform_indices = @transform_7, window_bounds = array<i64: 1, 128>}, {pipeline_mode = #tpu.pipeline_mode<synchronous>, transform_indices = @transform_8, window_bounds = array<i64: 128, 128>}, {pipeline_mode = #tpu.pipeline_mode<synchronous>, transform_indices = @transform_9, window_bounds = array<i64: 1, 128>}, {transform_indices = @transform_10, window_bounds = array<i64: 256, 128>}]} {
    %c0 = arith.constant 0 : index
    %c0_0 = arith.constant 0 : index
    %0 = vector.load %arg5[%c0, %c0_0] : memref<128x128xf32, #tpu.memory_space<vmem>>, vector<128x128xf32>
    %c0_1 = arith.constant 0 : index
    %c0_2 = arith.constant 0 : index
    %1 = vector.load %arg6[%c0_1, %c0_2] : memref<1x128xf32, #tpu.memory_space<vmem>>, vector<1x128xf32>
    %c0_i32 = arith.constant 0 : i32
    %c4_i32 = arith.constant 4 : i32
    %2 = arith.addi %c0_i32, %c4_i32 : i32
    %c1_i32 = arith.constant 1 : i32
    scf.for %arg14 = %c0_i32 to %2 step %c1_i32  : i32 {
      %c1_i32_24 = arith.constant 1 : i32
      %21 = arith.muli %arg14, %c1_i32_24 : i32
      %c0_i32_25 = arith.constant 0 : i32
      %22 = arith.addi %c0_i32_25, %21 : i32
      %c64_i32 = arith.constant 64 : i32
      %23 = arith.muli %22, %c64_i32 : i32
      %24 = tpu.assume_multiple %23, 64 : i32
      %25 = arith.index_cast %24 : i32 to index
      %c0_26 = arith.constant 0 : index
      %26 = vector.load %arg2[%25, %c0_26] : memref<256x128xf32, #tpu.memory_space<vmem>>, vector<64x128xf32>
      %cst_27 = arith.constant dense<0.000000e+00> : vector<64x128xf32>
      %27 = tpu.matmul %26, %0, %cst_27 {dimension_numbers = #tpu.dot_dimension_numbers<[1], [0], [0], [1], [0, 0, 1, 1], [], []>} : vector<64x128xf32>, vector<128x128xf32>, vector<64x128xf32> -> vector<64x128xf32>
      %28 = vector.broadcast %1 : vector<1x128xf32> to vector<64x128xf32>
      %29 = arith.addf %27, %28 : vector<64x128xf32>
      %30 = vector.shape_cast %29 : vector<64x128xf32> to vector<8x8x128xf32>
      %cst_28 = arith.constant 0.000000e+00 : f32
      %31 = vector.broadcast %cst_28 : f32 to vector<8x1x128xf32>
      %32 = tpu.concatenate %31, %30, %31 in 1 : vector<8x1x128xf32>, vector<8x8x128xf32>, vector<8x1x128xf32> -> vector<8x10x128xf32>
      %cst_29 = arith.constant 0.000000e+00 : f32
      %33 = vector.broadcast %cst_29 : f32 to vector<1x10x128xf32>
      %34 = tpu.concatenate %33, %32, %33 in 0 : vector<1x10x128xf32>, vector<8x10x128xf32>, vector<1x10x128xf32> -> vector<10x10x128xf32>
      %c1_i32_30 = arith.constant 1 : i32
      %35 = arith.addi %22, %c1_i32_30 : i32
      %36 = arith.index_cast %35 : i32 to index
      %c0_31 = arith.constant 0 : index
      %c0_32 = arith.constant 0 : index
      %c0_33 = arith.constant 0 : index
      %37 = vector.load %arg13[%36, %c0_31, %c0_32, %c0_33] : memref<6x10x10x128xf32, #tpu.memory_space<vmem>>, vector<1x10x10x128xf32>
      %38 = vector.shape_cast %37 : vector<1x10x10x128xf32> to vector<10x10x128xf32>
      %39 = vector.shape_cast %34 : vector<10x10x128xf32> to vector<1x10x10x128xf32>
      tpu.vector_store %arg13[%36, %c0_31, %c0_32, %c0_33], %39 {strides = array<i32>} : memref<6x10x10x128xf32, #tpu.memory_space<vmem>>, vector<1x10x10x128xf32>,
    }
    %c4_i32_3 = arith.constant 4 : i32
    %cst = arith.constant 0.000000e+00 : f32
    %3 = vector.broadcast %cst : f32 to vector<10x10x128xf32>
    %c0_i32_4 = arith.constant 0 : i32
    %4 = arith.cmpi sgt, %arg1, %c0_i32_4 : i32
    %5 = arith.extui %4 : i1 to i32
    %c0_i32_5 = arith.constant 0 : i32
    %6 = arith.cmpi ne, %5, %c0_i32_5 : i32
    scf.if %6 {
      %c0_24 = arith.constant 0 : index
      %c0_25 = arith.constant 0 : index
      %21 = vector.load %arg3[%c0_24, %c0_25] : memref<64x128xf32, #tpu.memory_space<vmem>>, vector<64x128xf32>
      %cst_26 = arith.constant dense<0.000000e+00> : vector<64x128xf32>
      %22 = tpu.matmul %21, %0, %cst_26 {dimension_numbers = #tpu.dot_dimension_numbers<[1], [0], [0], [1], [0, 0, 1, 1], [], []>} : vector<64x128xf32>, vector<128x128xf32>, vector<64x128xf32> -> vector<64x128xf32>
      %23 = vector.broadcast %1 : vector<1x128xf32> to vector<64x128xf32>
      %24 = arith.addf %22, %23 : vector<64x128xf32>
      %25 = vector.shape_cast %24 : vector<64x128xf32> to vector<8x8x128xf32>
      %cst_27 = arith.constant 0.000000e+00 : f32
      %26 = vector.broadcast %cst_27 : f32 to vector<8x1x128xf32>
      %27 = tpu.concatenate %26, %25, %26 in 1 : vector<8x1x128xf32>, vector<8x8x128xf32>, vector<8x1x128xf32> -> vector<8x10x128xf32>
      %cst_28 = arith.constant 0.000000e+00 : f32
      %28 = vector.broadcast %cst_28 : f32 to vector<1x10x128xf32>
      %29 = tpu.concatenate %28, %27, %28 in 0 : vector<1x10x128xf32>, vector<8x10x128xf32>, vector<1x10x128xf32> -> vector<10x10x128xf32>
      %c0_29 = arith.constant 0 : index
      %c0_30 = arith.constant 0 : index
      %c0_31 = arith.constant 0 : index
      %c0_32 = arith.constant 0 : index
      %30 = vector.load %arg13[%c0_29, %c0_30, %c0_31, %c0_32] : memref<6x10x10x128xf32, #tpu.memory_space<vmem>>, vector<1x10x10x128xf32>
      %31 = vector.shape_cast %30 : vector<1x10x10x128xf32> to vector<10x10x128xf32>
      %32 = vector.shape_cast %29 : vector<10x10x128xf32> to vector<1x10x10x128xf32>
      tpu.vector_store %arg13[%c0_29, %c0_30, %c0_31, %c0_32], %32 {strides = array<i32>} : memref<6x10x10x128xf32, #tpu.memory_space<vmem>>, vector<1x10x10x128xf32>,
    } else {
    }
    %c0_i32_6 = arith.constant 0 : i32
    %7 = arith.cmpi eq, %arg1, %c0_i32_6 : i32
    %8 = arith.extui %7 : i1 to i32
    %c0_i32_7 = arith.constant 0 : i32
    %9 = arith.cmpi ne, %8, %c0_i32_7 : i32
    scf.if %9 {
      %c0_24 = arith.constant 0 : index
      %c0_25 = arith.constant 0 : index
      %c0_26 = arith.constant 0 : index
      %c0_27 = arith.constant 0 : index
      %21 = vector.load %arg13[%c0_24, %c0_25, %c0_26, %c0_27] : memref<6x10x10x128xf32, #tpu.memory_space<vmem>>, vector<1x10x10x128xf32>
      %22 = vector.shape_cast %21 : vector<1x10x10x128xf32> to vector<10x10x128xf32>
      %23 = vector.shape_cast %3 : vector<10x10x128xf32> to vector<1x10x10x128xf32>
      tpu.vector_store %arg13[%c0_24, %c0_25, %c0_26, %c0_27], %23 {strides = array<i32>} : memref<6x10x10x128xf32, #tpu.memory_space<vmem>>, vector<1x10x10x128xf32>,
    } else {
    }
    %c1_i32_8 = arith.constant 1 : i32
    %10 = arith.cmpi slt, %arg1, %c1_i32_8 : i32
    %11 = arith.extui %10 : i1 to i32
    %c0_i32_9 = arith.constant 0 : i32
    %12 = arith.cmpi ne, %11, %c0_i32_9 : i32
    scf.if %12 {
      %c0_24 = arith.constant 0 : index
      %c0_25 = arith.constant 0 : index
      %21 = vector.load %arg4[%c0_24, %c0_25] : memref<64x128xf32, #tpu.memory_space<vmem>>, vector<64x128xf32>
      %cst_26 = arith.constant dense<0.000000e+00> : vector<64x128xf32>
      %22 = tpu.matmul %21, %0, %cst_26 {dimension_numbers = #tpu.dot_dimension_numbers<[1], [0], [0], [1], [0, 0, 1, 1], [], []>} : vector<64x128xf32>, vector<128x128xf32>, vector<64x128xf32> -> vector<64x128xf32>
      %23 = vector.broadcast %1 : vector<1x128xf32> to vector<64x128xf32>
      %24 = arith.addf %22, %23 : vector<64x128xf32>
      %25 = vector.shape_cast %24 : vector<64x128xf32> to vector<8x8x128xf32>
      %cst_27 = arith.constant 0.000000e+00 : f32
      %26 = vector.broadcast %cst_27 : f32 to vector<8x1x128xf32>
      %27 = tpu.concatenate %26, %25, %26 in 1 : vector<8x1x128xf32>, vector<8x8x128xf32>, vector<8x1x128xf32> -> vector<8x10x128xf32>
      %cst_28 = arith.constant 0.000000e+00 : f32
      %28 = vector.broadcast %cst_28 : f32 to vector<1x10x128xf32>
      %29 = tpu.concatenate %28, %27, %28 in 0 : vector<1x10x128xf32>, vector<8x10x128xf32>, vector<1x10x128xf32> -> vector<10x10x128xf32>
      %c5 = arith.constant 5 : index
      %c0_29 = arith.constant 0 : index
      %c0_30 = arith.constant 0 : index
      %c0_31 = arith.constant 0 : index
      %30 = vector.load %arg13[%c5, %c0_29, %c0_30, %c0_31] : memref<6x10x10x128xf32, #tpu.memory_space<vmem>>, vector<1x10x10x128xf32>
      %31 = vector.shape_cast %30 : vector<1x10x10x128xf32> to vector<10x10x128xf32>
      %32 = vector.shape_cast %29 : vector<10x10x128xf32> to vector<1x10x10x128xf32>
      tpu.vector_store %arg13[%c5, %c0_29, %c0_30, %c0_31], %32 {strides = array<i32>} : memref<6x10x10x128xf32, #tpu.memory_space<vmem>>, vector<1x10x10x128xf32>,
    } else {
    }
    %c1_i32_10 = arith.constant 1 : i32
    %13 = arith.cmpi eq, %arg1, %c1_i32_10 : i32
    %14 = arith.extui %13 : i1 to i32
    %c0_i32_11 = arith.constant 0 : i32
    %15 = arith.cmpi ne, %14, %c0_i32_11 : i32
    scf.if %15 {
      %c5 = arith.constant 5 : index
      %c0_24 = arith.constant 0 : index
      %c0_25 = arith.constant 0 : index
      %c0_26 = arith.constant 0 : index
      %21 = vector.load %arg13[%c5, %c0_24, %c0_25, %c0_26] : memref<6x10x10x128xf32, #tpu.memory_space<vmem>>, vector<1x10x10x128xf32>
      %22 = vector.shape_cast %21 : vector<1x10x10x128xf32> to vector<10x10x128xf32>
      %23 = vector.shape_cast %3 : vector<10x10x128xf32> to vector<1x10x10x128xf32>
      tpu.vector_store %arg13[%c5, %c0_24, %c0_25, %c0_26], %23 {strides = array<i32>} : memref<6x10x10x128xf32, #tpu.memory_space<vmem>>, vector<1x10x10x128xf32>,
    } else {
    }
    %c0_12 = arith.constant 0 : index
    %c0_13 = arith.constant 0 : index
    %16 = vector.load %arg8[%c0_12, %c0_13] : memref<1x128xf32, #tpu.memory_space<vmem>>, vector<1x128xf32>
    %c0_14 = arith.constant 0 : index
    %c0_15 = arith.constant 0 : index
    %17 = vector.load %arg9[%c0_14, %c0_15] : memref<1x128xf32, #tpu.memory_space<vmem>>, vector<1x128xf32>
    %c0_16 = arith.constant 0 : index
    %c0_17 = arith.constant 0 : index
    %18 = vector.load %arg10[%c0_16, %c0_17] : memref<128x128xf32, #tpu.memory_space<vmem>>, vector<128x128xf32>
    %c0_18 = arith.constant 0 : index
    %c0_19 = arith.constant 0 : index
    %19 = vector.load %arg11[%c0_18, %c0_19] : memref<1x128xf32, #tpu.memory_space<vmem>>, vector<1x128xf32>
    %c0_i32_20 = arith.constant 0 : i32
    %c4_i32_21 = arith.constant 4 : i32
    %20 = arith.addi %c0_i32_20, %c4_i32_21 : i32
    %c1_i32_22 = arith.constant 1 : i32
    scf.for %arg14 = %c0_i32_20 to %20 step %c1_i32_22  : i32 {
      %c1_i32_24 = arith.constant 1 : i32
      %21 = arith.muli %arg14, %c1_i32_24 : i32
      %c0_i32_25 = arith.constant 0 : i32
      %22 = arith.addi %c0_i32_25, %21 : i32
      %cst_26 = arith.constant 0.000000e+00 : f32
      %23 = vector.broadcast %cst_26 : f32 to vector<64x128xf32>
      %c0_i32_27 = arith.constant 0 : i32
      %24 = arith.addi %22, %c0_i32_27 : i32
      %25 = arith.index_cast %24 : i32 to index
      %c0_28 = arith.constant 0 : index
      %c0_29 = arith.constant 0 : index
      %c0_30 = arith.constant 0 : index
      %26 = vector.load %arg13[%25, %c0_28, %c0_29, %c0_30] : memref<6x10x10x128xf32, #tpu.memory_space<vmem>>, vector<1x8x8x128xf32>
      %27 = vector.shape_cast %26 : vector<1x8x8x128xf32> to vector<8x8x128xf32>
      %28 = vector.shape_cast %27 : vector<8x8x128xf32> to vector<64x128xf32>
      %c0_31 = arith.constant 0 : index
      %c0_32 = arith.constant 0 : index
      %c0_33 = arith.constant 0 : index
      %29 = vector.load %arg7[%c0_31, %c0_32, %c0_33] : memref<27x128x128xf32, #tpu.memory_space<vmem>>, vector<1x128x128xf32>
      %30 = vector.shape_cast %29 : vector<1x128x128xf32> to vector<128x128xf32>
      %cst_34 = arith.constant dense<0.000000e+00> : vector<64x128xf32>
      %31 = tpu.matmul %28, %30, %cst_34 {dimension_numbers = #tpu.dot_dimension_numbers<[1], [0], [0], [1], [0, 0, 1, 1], [], []>} : vector<64x128xf32>, vector<128x128xf32>, vector<64x128xf32> -> vector<64x128xf32>
      %32 = arith.addf %23, %31 : vector<64x128xf32>
      %c0_i32_35 = arith.constant 0 : i32
      %33 = arith.addi %22, %c0_i32_35 : i32
      %34 = arith.index_cast %33 : i32 to index
      %c0_36 = arith.constant 0 : index
      %c1 = arith.constant 1 : index
      %c0_37 = arith.constant 0 : index
      %35 = vector.load %arg13[%34, %c0_36, %c1, %c0_37] : memref<6x10x10x128xf32, #tpu.memory_space<vmem>>, vector<1x8x8x128xf32>
      %36 = vector.shape_cast %35 : vector<1x8x8x128xf32> to vector<8x8x128xf32>
      %37 = vector.shape_cast %36 : vector<8x8x128xf32> to vector<64x128xf32>
      %c1_38 = arith.constant 1 : index
      %c0_39 = arith.constant 0 : index
      %c0_40 = arith.constant 0 : index
      %38 = vector.load %arg7[%c1_38, %c0_39, %c0_40] : memref<27x128x128xf32, #tpu.memory_space<vmem>>, vector<1x128x128xf32>
      %39 = vector.shape_cast %38 : vector<1x128x128xf32> to vector<128x128xf32>
      %cst_41 = arith.constant dense<0.000000e+00> : vector<64x128xf32>
      %40 = tpu.matmul %37, %39, %cst_41 {dimension_numbers = #tpu.dot_dimension_numbers<[1], [0], [0], [1], [0, 0, 1, 1], [], []>} : vector<64x128xf32>, vector<128x128xf32>, vector<64x128xf32> -> vector<64x128xf32>
      %41 = arith.addf %32, %40 : vector<64x128xf32>
      %c0_i32_42 = arith.constant 0 : i32
      %42 = arith.addi %22, %c0_i32_42 : i32
      %43 = arith.index_cast %42 : i32 to index
      %c0_43 = arith.constant 0 : index
      %c2 = arith.constant 2 : index
      %c0_44 = arith.constant 0 : index
      %44 = vector.load %arg13[%43, %c0_43, %c2, %c0_44] : memref<6x10x10x128xf32, #tpu.memory_space<vmem>>, vector<1x8x8x128xf32>
      %45 = vector.shape_cast %44 : vector<1x8x8x128xf32> to vector<8x8x128xf32>
      %46 = vector.shape_cast %45 : vector<8x8x128xf32> to vector<64x128xf32>
      %c2_45 = arith.constant 2 : index
      %c0_46 = arith.constant 0 : index
      %c0_47 = arith.constant 0 : index
      %47 = vector.load %arg7[%c2_45, %c0_46, %c0_47] : memref<27x128x128xf32, #tpu.memory_space<vmem>>, vector<1x128x128xf32>
      %48 = vector.shape_cast %47 : vector<1x128x128xf32> to vector<128x128xf32>
      %cst_48 = arith.constant dense<0.000000e+00> : vector<64x128xf32>
      %49 = tpu.matmul %46, %48, %cst_48 {dimension_numbers = #tpu.dot_dimension_numbers<[1], [0], [0], [1], [0, 0, 1, 1], [], []>} : vector<64x128xf32>, vector<128x128xf32>, vector<64x128xf32> -> vector<64x128xf32>
      %50 = arith.addf %41, %49 : vector<64x128xf32>
      %c0_i32_49 = arith.constant 0 : i32
      %51 = arith.addi %22, %c0_i32_49 : i32
      %52 = arith.index_cast %51 : i32 to index
      %c1_50 = arith.constant 1 : index
      %c0_51 = arith.constant 0 : index
      %c0_52 = arith.constant 0 : index
      %53 = vector.load %arg13[%52, %c1_50, %c0_51, %c0_52] : memref<6x10x10x128xf32, #tpu.memory_space<vmem>>, vector<1x8x8x128xf32>
      %54 = vector.shape_cast %53 : vector<1x8x8x128xf32> to vector<8x8x128xf32>
      %55 = vector.shape_cast %54 : vector<8x8x128xf32> to vector<64x128xf32>
      %c3 = arith.constant 3 : index
      %c0_53 = arith.constant 0 : index
      %c0_54 = arith.constant 0 : index
      %56 = vector.load %arg7[%c3, %c0_53, %c0_54] : memref<27x128x128xf32, #tpu.memory_space<vmem>>, vector<1x128x128xf32>
      %57 = vector.shape_cast %56 : vector<1x128x128xf32> to vector<128x128xf32>
      %cst_55 = arith.constant dense<0.000000e+00> : vector<64x128xf32>
      %58 = tpu.matmul %55, %57, %cst_55 {dimension_numbers = #tpu.dot_dimension_numbers<[1], [0], [0], [1], [0, 0, 1, 1], [], []>} : vector<64x128xf32>, vector<128x128xf32>, vector<64x128xf32> -> vector<64x128xf32>
      %59 = arith.addf %50, %58 : vector<64x128xf32>
      %c0_i32_56 = arith.constant 0 : i32
      %60 = arith.addi %22, %c0_i32_56 : i32
      %61 = arith.index_cast %60 : i32 to index
      %c1_57 = arith.constant 1 : index
      %c1_58 = arith.constant 1 : index
      %c0_59 = arith.constant 0 : index
      %62 = vector.load %arg13[%61, %c1_57, %c1_58, %c0_59] : memref<6x10x10x128xf32, #tpu.memory_space<vmem>>, vector<1x8x8x128xf32>
      %63 = vector.shape_cast %62 : vector<1x8x8x128xf32> to vector<8x8x128xf32>
      %64 = vector.shape_cast %63 : vector<8x8x128xf32> to vector<64x128xf32>
      %c4 = arith.constant 4 : index
      %c0_60 = arith.constant 0 : index
      %c0_61 = arith.constant 0 : index
      %65 = vector.load %arg7[%c4, %c0_60, %c0_61] : memref<27x128x128xf32, #tpu.memory_space<vmem>>, vector<1x128x128xf32>
      %66 = vector.shape_cast %65 : vector<1x128x128xf32> to vector<128x128xf32>
      %cst_62 = arith.constant dense<0.000000e+00> : vector<64x128xf32>
      %67 = tpu.matmul %64, %66, %cst_62 {dimension_numbers = #tpu.dot_dimension_numbers<[1], [0], [0], [1], [0, 0, 1, 1], [], []>} : vector<64x128xf32>, vector<128x128xf32>, vector<64x128xf32> -> vector<64x128xf32>
      %68 = arith.addf %59, %67 : vector<64x128xf32>
      %c0_i32_63 = arith.constant 0 : i32
      %69 = arith.addi %22, %c0_i32_63 : i32
      %70 = arith.index_cast %69 : i32 to index
      %c1_64 = arith.constant 1 : index
      %c2_65 = arith.constant 2 : index
      %c0_66 = arith.constant 0 : index
      %71 = vector.load %arg13[%70, %c1_64, %c2_65, %c0_66] : memref<6x10x10x128xf32, #tpu.memory_space<vmem>>, vector<1x8x8x128xf32>
      %72 = vector.shape_cast %71 : vector<1x8x8x128xf32> to vector<8x8x128xf32>
      %73 = vector.shape_cast %72 : vector<8x8x128xf32> to vector<64x128xf32>
      %c5 = arith.constant 5 : index
      %c0_67 = arith.constant 0 : index
      %c0_68 = arith.constant 0 : index
      %74 = vector.load %arg7[%c5, %c0_67, %c0_68] : memref<27x128x128xf32, #tpu.memory_space<vmem>>, vector<1x128x128xf32>
      %75 = vector.shape_cast %74 : vector<1x128x128xf32> to vector<128x128xf32>
      %cst_69 = arith.constant dense<0.000000e+00> : vector<64x128xf32>
      %76 = tpu.matmul %73, %75, %cst_69 {dimension_numbers = #tpu.dot_dimension_numbers<[1], [0], [0], [1], [0, 0, 1, 1], [], []>} : vector<64x128xf32>, vector<128x128xf32>, vector<64x128xf32> -> vector<64x128xf32>
      %77 = arith.addf %68, %76 : vector<64x128xf32>
      %c0_i32_70 = arith.constant 0 : i32
      %78 = arith.addi %22, %c0_i32_70 : i32
      %79 = arith.index_cast %78 : i32 to index
      %c2_71 = arith.constant 2 : index
      %c0_72 = arith.constant 0 : index
      %c0_73 = arith.constant 0 : index
      %80 = vector.load %arg13[%79, %c2_71, %c0_72, %c0_73] : memref<6x10x10x128xf32, #tpu.memory_space<vmem>>, vector<1x8x8x128xf32>
      %81 = vector.shape_cast %80 : vector<1x8x8x128xf32> to vector<8x8x128xf32>
      %82 = vector.shape_cast %81 : vector<8x8x128xf32> to vector<64x128xf32>
      %c6 = arith.constant 6 : index
      %c0_74 = arith.constant 0 : index
      %c0_75 = arith.constant 0 : index
      %83 = vector.load %arg7[%c6, %c0_74, %c0_75] : memref<27x128x128xf32, #tpu.memory_space<vmem>>, vector<1x128x128xf32>
      %84 = vector.shape_cast %83 : vector<1x128x128xf32> to vector<128x128xf32>
      %cst_76 = arith.constant dense<0.000000e+00> : vector<64x128xf32>
      %85 = tpu.matmul %82, %84, %cst_76 {dimension_numbers = #tpu.dot_dimension_numbers<[1], [0], [0], [1], [0, 0, 1, 1], [], []>} : vector<64x128xf32>, vector<128x128xf32>, vector<64x128xf32> -> vector<64x128xf32>
      %86 = arith.addf %77, %85 : vector<64x128xf32>
      %c0_i32_77 = arith.constant 0 : i32
      %87 = arith.addi %22, %c0_i32_77 : i32
      %88 = arith.index_cast %87 : i32 to index
      %c2_78 = arith.constant 2 : index
      %c1_79 = arith.constant 1 : index
      %c0_80 = arith.constant 0 : index
      %89 = vector.load %arg13[%88, %c2_78, %c1_79, %c0_80] : memref<6x10x10x128xf32, #tpu.memory_space<vmem>>, vector<1x8x8x128xf32>
      %90 = vector.shape_cast %89 : vector<1x8x8x128xf32> to vector<8x8x128xf32>
      %91 = vector.shape_cast %90 : vector<8x8x128xf32> to vector<64x128xf32>
      %c7 = arith.constant 7 : index
      %c0_81 = arith.constant 0 : index
      %c0_82 = arith.constant 0 : index
      %92 = vector.load %arg7[%c7, %c0_81, %c0_82] : memref<27x128x128xf32, #tpu.memory_space<vmem>>, vector<1x128x128xf32>
      %93 = vector.shape_cast %92 : vector<1x128x128xf32> to vector<128x128xf32>
      %cst_83 = arith.constant dense<0.000000e+00> : vector<64x128xf32>
      %94 = tpu.matmul %91, %93, %cst_83 {dimension_numbers = #tpu.dot_dimension_numbers<[1], [0], [0], [1], [0, 0, 1, 1], [], []>} : vector<64x128xf32>, vector<128x128xf32>, vector<64x128xf32> -> vector<64x128xf32>
      %95 = arith.addf %86, %94 : vector<64x128xf32>
      %c0_i32_84 = arith.constant 0 : i32
      %96 = arith.addi %22, %c0_i32_84 : i32
      %97 = arith.index_cast %96 : i32 to index
      %c2_85 = arith.constant 2 : index
      %c2_86 = arith.constant 2 : index
      %c0_87 = arith.constant 0 : index
      %98 = vector.load %arg13[%97, %c2_85, %c2_86, %c0_87] : memref<6x10x10x128xf32, #tpu.memory_space<vmem>>, vector<1x8x8x128xf32>
      %99 = vector.shape_cast %98 : vector<1x8x8x128xf32> to vector<8x8x128xf32>
      %100 = vector.shape_cast %99 : vector<8x8x128xf32> to vector<64x128xf32>
      %c8 = arith.constant 8 : index
      %c0_88 = arith.constant 0 : index
      %c0_89 = arith.constant 0 : index
      %101 = vector.load %arg7[%c8, %c0_88, %c0_89] : memref<27x128x128xf32, #tpu.memory_space<vmem>>, vector<1x128x128xf32>
      %102 = vector.shape_cast %101 : vector<1x128x128xf32> to vector<128x128xf32>
      %cst_90 = arith.constant dense<0.000000e+00> : vector<64x128xf32>
      %103 = tpu.matmul %100, %102, %cst_90 {dimension_numbers = #tpu.dot_dimension_numbers<[1], [0], [0], [1], [0, 0, 1, 1], [], []>} : vector<64x128xf32>, vector<128x128xf32>, vector<64x128xf32> -> vector<64x128xf32>
      %104 = arith.addf %95, %103 : vector<64x128xf32>
      %c1_i32_91 = arith.constant 1 : i32
      %105 = arith.addi %22, %c1_i32_91 : i32
      %106 = arith.index_cast %105 : i32 to index
      %c0_92 = arith.constant 0 : index
      %c0_93 = arith.constant 0 : index
      %c0_94 = arith.constant 0 : index
      %107 = vector.load %arg13[%106, %c0_92, %c0_93, %c0_94] : memref<6x10x10x128xf32, #tpu.memory_space<vmem>>, vector<1x8x8x128xf32>
      %108 = vector.shape_cast %107 : vector<1x8x8x128xf32> to vector<8x8x128xf32>
      %109 = vector.shape_cast %108 : vector<8x8x128xf32> to vector<64x128xf32>
      %c9 = arith.constant 9 : index
      %c0_95 = arith.constant 0 : index
      %c0_96 = arith.constant 0 : index
      %110 = vector.load %arg7[%c9, %c0_95, %c0_96] : memref<27x128x128xf32, #tpu.memory_space<vmem>>, vector<1x128x128xf32>
      %111 = vector.shape_cast %110 : vector<1x128x128xf32> to vector<128x128xf32>
      %cst_97 = arith.constant dense<0.000000e+00> : vector<64x128xf32>
      %112 = tpu.matmul %109, %111, %cst_97 {dimension_numbers = #tpu.dot_dimension_numbers<[1], [0], [0], [1], [0, 0, 1, 1], [], []>} : vector<64x128xf32>, vector<128x128xf32>, vector<64x128xf32> -> vector<64x128xf32>
      %113 = arith.addf %104, %112 : vector<64x128xf32>
      %c1_i32_98 = arith.constant 1 : i32
      %114 = arith.addi %22, %c1_i32_98 : i32
      %115 = arith.index_cast %114 : i32 to index
      %c0_99 = arith.constant 0 : index
      %c1_100 = arith.constant 1 : index
      %c0_101 = arith.constant 0 : index
      %116 = vector.load %arg13[%115, %c0_99, %c1_100, %c0_101] : memref<6x10x10x128xf32, #tpu.memory_space<vmem>>, vector<1x8x8x128xf32>
      %117 = vector.shape_cast %116 : vector<1x8x8x128xf32> to vector<8x8x128xf32>
      %118 = vector.shape_cast %117 : vector<8x8x128xf32> to vector<64x128xf32>
      %c10 = arith.constant 10 : index
      %c0_102 = arith.constant 0 : index
      %c0_103 = arith.constant 0 : index
      %119 = vector.load %arg7[%c10, %c0_102, %c0_103] : memref<27x128x128xf32, #tpu.memory_space<vmem>>, vector<1x128x128xf32>
      %120 = vector.shape_cast %119 : vector<1x128x128xf32> to vector<128x128xf32>
      %cst_104 = arith.constant dense<0.000000e+00> : vector<64x128xf32>
      %121 = tpu.matmul %118, %120, %cst_104 {dimension_numbers = #tpu.dot_dimension_numbers<[1], [0], [0], [1], [0, 0, 1, 1], [], []>} : vector<64x128xf32>, vector<128x128xf32>, vector<64x128xf32> -> vector<64x128xf32>
      %122 = arith.addf %113, %121 : vector<64x128xf32>
      %c1_i32_105 = arith.constant 1 : i32
      %123 = arith.addi %22, %c1_i32_105 : i32
      %124 = arith.index_cast %123 : i32 to index
      %c0_106 = arith.constant 0 : index
      %c2_107 = arith.constant 2 : index
      %c0_108 = arith.constant 0 : index
      %125 = vector.load %arg13[%124, %c0_106, %c2_107, %c0_108] : memref<6x10x10x128xf32, #tpu.memory_space<vmem>>, vector<1x8x8x128xf32>
      %126 = vector.shape_cast %125 : vector<1x8x8x128xf32> to vector<8x8x128xf32>
      %127 = vector.shape_cast %126 : vector<8x8x128xf32> to vector<64x128xf32>
      %c11 = arith.constant 11 : index
      %c0_109 = arith.constant 0 : index
      %c0_110 = arith.constant 0 : index
      %128 = vector.load %arg7[%c11, %c0_109, %c0_110] : memref<27x128x128xf32, #tpu.memory_space<vmem>>, vector<1x128x128xf32>
      %129 = vector.shape_cast %128 : vector<1x128x128xf32> to vector<128x128xf32>
      %cst_111 = arith.constant dense<0.000000e+00> : vector<64x128xf32>
      %130 = tpu.matmul %127, %129, %cst_111 {dimension_numbers = #tpu.dot_dimension_numbers<[1], [0], [0], [1], [0, 0, 1, 1], [], []>} : vector<64x128xf32>, vector<128x128xf32>, vector<64x128xf32> -> vector<64x128xf32>
      %131 = arith.addf %122, %130 : vector<64x128xf32>
      %c1_i32_112 = arith.constant 1 : i32
      %132 = arith.addi %22, %c1_i32_112 : i32
      %133 = arith.index_cast %132 : i32 to index
      %c1_113 = arith.constant 1 : index
      %c0_114 = arith.constant 0 : index
      %c0_115 = arith.constant 0 : index
      %134 = vector.load %arg13[%133, %c1_113, %c0_114, %c0_115] : memref<6x10x10x128xf32, #tpu.memory_space<vmem>>, vector<1x8x8x128xf32>
      %135 = vector.shape_cast %134 : vector<1x8x8x128xf32> to vector<8x8x128xf32>
      %136 = vector.shape_cast %135 : vector<8x8x128xf32> to vector<64x128xf32>
      %c12 = arith.constant 12 : index
      %c0_116 = arith.constant 0 : index
      %c0_117 = arith.constant 0 : index
      %137 = vector.load %arg7[%c12, %c0_116, %c0_117] : memref<27x128x128xf32, #tpu.memory_space<vmem>>, vector<1x128x128xf32>
      %138 = vector.shape_cast %137 : vector<1x128x128xf32> to vector<128x128xf32>
      %cst_118 = arith.constant dense<0.000000e+00> : vector<64x128xf32>
      %139 = tpu.matmul %136, %138, %cst_118 {dimension_numbers = #tpu.dot_dimension_numbers<[1], [0], [0], [1], [0, 0, 1, 1], [], []>} : vector<64x128xf32>, vector<128x128xf32>, vector<64x128xf32> -> vector<64x128xf32>
      %140 = arith.addf %131, %139 : vector<64x128xf32>
      %c1_i32_119 = arith.constant 1 : i32
      %141 = arith.addi %22, %c1_i32_119 : i32
      %142 = arith.index_cast %141 : i32 to index
      %c1_120 = arith.constant 1 : index
      %c1_121 = arith.constant 1 : index
      %c0_122 = arith.constant 0 : index
      %143 = vector.load %arg13[%142, %c1_120, %c1_121, %c0_122] : memref<6x10x10x128xf32, #tpu.memory_space<vmem>>, vector<1x8x8x128xf32>
      %144 = vector.shape_cast %143 : vector<1x8x8x128xf32> to vector<8x8x128xf32>
      %145 = vector.shape_cast %144 : vector<8x8x128xf32> to vector<64x128xf32>
      %c13 = arith.constant 13 : index
      %c0_123 = arith.constant 0 : index
      %c0_124 = arith.constant 0 : index
      %146 = vector.load %arg7[%c13, %c0_123, %c0_124] : memref<27x128x128xf32, #tpu.memory_space<vmem>>, vector<1x128x128xf32>
      %147 = vector.shape_cast %146 : vector<1x128x128xf32> to vector<128x128xf32>
      %cst_125 = arith.constant dense<0.000000e+00> : vector<64x128xf32>
      %148 = tpu.matmul %145, %147, %cst_125 {dimension_numbers = #tpu.dot_dimension_numbers<[1], [0], [0], [1], [0, 0, 1, 1], [], []>} : vector<64x128xf32>, vector<128x128xf32>, vector<64x128xf32> -> vector<64x128xf32>
      %149 = arith.addf %140, %148 : vector<64x128xf32>
      %c1_i32_126 = arith.constant 1 : i32
      %150 = arith.addi %22, %c1_i32_126 : i32
      %151 = arith.index_cast %150 : i32 to index
      %c1_127 = arith.constant 1 : index
      %c2_128 = arith.constant 2 : index
      %c0_129 = arith.constant 0 : index
      %152 = vector.load %arg13[%151, %c1_127, %c2_128, %c0_129] : memref<6x10x10x128xf32, #tpu.memory_space<vmem>>, vector<1x8x8x128xf32>
      %153 = vector.shape_cast %152 : vector<1x8x8x128xf32> to vector<8x8x128xf32>
      %154 = vector.shape_cast %153 : vector<8x8x128xf32> to vector<64x128xf32>
      %c14 = arith.constant 14 : index
      %c0_130 = arith.constant 0 : index
      %c0_131 = arith.constant 0 : index
      %155 = vector.load %arg7[%c14, %c0_130, %c0_131] : memref<27x128x128xf32, #tpu.memory_space<vmem>>, vector<1x128x128xf32>
      %156 = vector.shape_cast %155 : vector<1x128x128xf32> to vector<128x128xf32>
      %cst_132 = arith.constant dense<0.000000e+00> : vector<64x128xf32>
      %157 = tpu.matmul %154, %156, %cst_132 {dimension_numbers = #tpu.dot_dimension_numbers<[1], [0], [0], [1], [0, 0, 1, 1], [], []>} : vector<64x128xf32>, vector<128x128xf32>, vector<64x128xf32> -> vector<64x128xf32>
      %158 = arith.addf %149, %157 : vector<64x128xf32>
      %c1_i32_133 = arith.constant 1 : i32
      %159 = arith.addi %22, %c1_i32_133 : i32
      %160 = arith.index_cast %159 : i32 to index
      %c2_134 = arith.constant 2 : index
      %c0_135 = arith.constant 0 : index
      %c0_136 = arith.constant 0 : index
      %161 = vector.load %arg13[%160, %c2_134, %c0_135, %c0_136] : memref<6x10x10x128xf32, #tpu.memory_space<vmem>>, vector<1x8x8x128xf32>
      %162 = vector.shape_cast %161 : vector<1x8x8x128xf32> to vector<8x8x128xf32>
      %163 = vector.shape_cast %162 : vector<8x8x128xf32> to vector<64x128xf32>
      %c15 = arith.constant 15 : index
      %c0_137 = arith.constant 0 : index
      %c0_138 = arith.constant 0 : index
      %164 = vector.load %arg7[%c15, %c0_137, %c0_138] : memref<27x128x128xf32, #tpu.memory_space<vmem>>, vector<1x128x128xf32>
      %165 = vector.shape_cast %164 : vector<1x128x128xf32> to vector<128x128xf32>
      %cst_139 = arith.constant dense<0.000000e+00> : vector<64x128xf32>
      %166 = tpu.matmul %163, %165, %cst_139 {dimension_numbers = #tpu.dot_dimension_numbers<[1], [0], [0], [1], [0, 0, 1, 1], [], []>} : vector<64x128xf32>, vector<128x128xf32>, vector<64x128xf32> -> vector<64x128xf32>
      %167 = arith.addf %158, %166 : vector<64x128xf32>
      %c1_i32_140 = arith.constant 1 : i32
      %168 = arith.addi %22, %c1_i32_140 : i32
      %169 = arith.index_cast %168 : i32 to index
      %c2_141 = arith.constant 2 : index
      %c1_142 = arith.constant 1 : index
      %c0_143 = arith.constant 0 : index
      %170 = vector.load %arg13[%169, %c2_141, %c1_142, %c0_143] : memref<6x10x10x128xf32, #tpu.memory_space<vmem>>, vector<1x8x8x128xf32>
      %171 = vector.shape_cast %170 : vector<1x8x8x128xf32> to vector<8x8x128xf32>
      %172 = vector.shape_cast %171 : vector<8x8x128xf32> to vector<64x128xf32>
      %c16 = arith.constant 16 : index
      %c0_144 = arith.constant 0 : index
      %c0_145 = arith.constant 0 : index
      %173 = vector.load %arg7[%c16, %c0_144, %c0_145] : memref<27x128x128xf32, #tpu.memory_space<vmem>>, vector<1x128x128xf32>
      %174 = vector.shape_cast %173 : vector<1x128x128xf32> to vector<128x128xf32>
      %cst_146 = arith.constant dense<0.000000e+00> : vector<64x128xf32>
      %175 = tpu.matmul %172, %174, %cst_146 {dimension_numbers = #tpu.dot_dimension_numbers<[1], [0], [0], [1], [0, 0, 1, 1], [], []>} : vector<64x128xf32>, vector<128x128xf32>, vector<64x128xf32> -> vector<64x128xf32>
      %176 = arith.addf %167, %175 : vector<64x128xf32>
      %c1_i32_147 = arith.constant 1 : i32
      %177 = arith.addi %22, %c1_i32_147 : i32
      %178 = arith.index_cast %177 : i32 to index
      %c2_148 = arith.constant 2 : index
      %c2_149 = arith.constant 2 : index
      %c0_150 = arith.constant 0 : index
      %179 = vector.load %arg13[%178, %c2_148, %c2_149, %c0_150] : memref<6x10x10x128xf32, #tpu.memory_space<vmem>>, vector<1x8x8x128xf32>
      %180 = vector.shape_cast %179 : vector<1x8x8x128xf32> to vector<8x8x128xf32>
      %181 = vector.shape_cast %180 : vector<8x8x128xf32> to vector<64x128xf32>
      %c17 = arith.constant 17 : index
      %c0_151 = arith.constant 0 : index
      %c0_152 = arith.constant 0 : index
      %182 = vector.load %arg7[%c17, %c0_151, %c0_152] : memref<27x128x128xf32, #tpu.memory_space<vmem>>, vector<1x128x128xf32>
      %183 = vector.shape_cast %182 : vector<1x128x128xf32> to vector<128x128xf32>
      %cst_153 = arith.constant dense<0.000000e+00> : vector<64x128xf32>
      %184 = tpu.matmul %181, %183, %cst_153 {dimension_numbers = #tpu.dot_dimension_numbers<[1], [0], [0], [1], [0, 0, 1, 1], [], []>} : vector<64x128xf32>, vector<128x128xf32>, vector<64x128xf32> -> vector<64x128xf32>
      %185 = arith.addf %176, %184 : vector<64x128xf32>
      %c2_i32 = arith.constant 2 : i32
      %186 = arith.addi %22, %c2_i32 : i32
      %187 = arith.index_cast %186 : i32 to index
      %c0_154 = arith.constant 0 : index
      %c0_155 = arith.constant 0 : index
      %c0_156 = arith.constant 0 : index
      %188 = vector.load %arg13[%187, %c0_154, %c0_155, %c0_156] : memref<6x10x10x128xf32, #tpu.memory_space<vmem>>, vector<1x8x8x128xf32>
      %189 = vector.shape_cast %188 : vector<1x8x8x128xf32> to vector<8x8x128xf32>
      %190 = vector.shape_cast %189 : vector<8x8x128xf32> to vector<64x128xf32>
      %c18 = arith.constant 18 : index
      %c0_157 = arith.constant 0 : index
      %c0_158 = arith.constant 0 : index
      %191 = vector.load %arg7[%c18, %c0_157, %c0_158] : memref<27x128x128xf32, #tpu.memory_space<vmem>>, vector<1x128x128xf32>
      %192 = vector.shape_cast %191 : vector<1x128x128xf32> to vector<128x128xf32>
      %cst_159 = arith.constant dense<0.000000e+00> : vector<64x128xf32>
      %193 = tpu.matmul %190, %192, %cst_159 {dimension_numbers = #tpu.dot_dimension_numbers<[1], [0], [0], [1], [0, 0, 1, 1], [], []>} : vector<64x128xf32>, vector<128x128xf32>, vector<64x128xf32> -> vector<64x128xf32>
      %194 = arith.addf %185, %193 : vector<64x128xf32>
      %c2_i32_160 = arith.constant 2 : i32
      %195 = arith.addi %22, %c2_i32_160 : i32
      %196 = arith.index_cast %195 : i32 to index
      %c0_161 = arith.constant 0 : index
      %c1_162 = arith.constant 1 : index
      %c0_163 = arith.constant 0 : index
      %197 = vector.load %arg13[%196, %c0_161, %c1_162, %c0_163] : memref<6x10x10x128xf32, #tpu.memory_space<vmem>>, vector<1x8x8x128xf32>
      %198 = vector.shape_cast %197 : vector<1x8x8x128xf32> to vector<8x8x128xf32>
      %199 = vector.shape_cast %198 : vector<8x8x128xf32> to vector<64x128xf32>
      %c19 = arith.constant 19 : index
      %c0_164 = arith.constant 0 : index
      %c0_165 = arith.constant 0 : index
      %200 = vector.load %arg7[%c19, %c0_164, %c0_165] : memref<27x128x128xf32, #tpu.memory_space<vmem>>, vector<1x128x128xf32>
      %201 = vector.shape_cast %200 : vector<1x128x128xf32> to vector<128x128xf32>
      %cst_166 = arith.constant dense<0.000000e+00> : vector<64x128xf32>
      %202 = tpu.matmul %199, %201, %cst_166 {dimension_numbers = #tpu.dot_dimension_numbers<[1], [0], [0], [1], [0, 0, 1, 1], [], []>} : vector<64x128xf32>, vector<128x128xf32>, vector<64x128xf32> -> vector<64x128xf32>
      %203 = arith.addf %194, %202 : vector<64x128xf32>
      %c2_i32_167 = arith.constant 2 : i32
      %204 = arith.addi %22, %c2_i32_167 : i32
      %205 = arith.index_cast %204 : i32 to index
      %c0_168 = arith.constant 0 : index
      %c2_169 = arith.constant 2 : index
      %c0_170 = arith.constant 0 : index
      %206 = vector.load %arg13[%205, %c0_168, %c2_169, %c0_170] : memref<6x10x10x128xf32, #tpu.memory_space<vmem>>, vector<1x8x8x128xf32>
      %207 = vector.shape_cast %206 : vector<1x8x8x128xf32> to vector<8x8x128xf32>
      %208 = vector.shape_cast %207 : vector<8x8x128xf32> to vector<64x128xf32>
      %c20 = arith.constant 20 : index
      %c0_171 = arith.constant 0 : index
      %c0_172 = arith.constant 0 : index
      %209 = vector.load %arg7[%c20, %c0_171, %c0_172] : memref<27x128x128xf32, #tpu.memory_space<vmem>>, vector<1x128x128xf32>
      %210 = vector.shape_cast %209 : vector<1x128x128xf32> to vector<128x128xf32>
      %cst_173 = arith.constant dense<0.000000e+00> : vector<64x128xf32>
      %211 = tpu.matmul %208, %210, %cst_173 {dimension_numbers = #tpu.dot_dimension_numbers<[1], [0], [0], [1], [0, 0, 1, 1], [], []>} : vector<64x128xf32>, vector<128x128xf32>, vector<64x128xf32> -> vector<64x128xf32>
      %212 = arith.addf %203, %211 : vector<64x128xf32>
      %c2_i32_174 = arith.constant 2 : i32
      %213 = arith.addi %22, %c2_i32_174 : i32
      %214 = arith.index_cast %213 : i32 to index
      %c1_175 = arith.constant 1 : index
      %c0_176 = arith.constant 0 : index
      %c0_177 = arith.constant 0 : index
      %215 = vector.load %arg13[%214, %c1_175, %c0_176, %c0_177] : memref<6x10x10x128xf32, #tpu.memory_space<vmem>>, vector<1x8x8x128xf32>
      %216 = vector.shape_cast %215 : vector<1x8x8x128xf32> to vector<8x8x128xf32>
      %217 = vector.shape_cast %216 : vector<8x8x128xf32> to vector<64x128xf32>
      %c21 = arith.constant 21 : index
      %c0_178 = arith.constant 0 : index
      %c0_179 = arith.constant 0 : index
      %218 = vector.load %arg7[%c21, %c0_178, %c0_179] : memref<27x128x128xf32, #tpu.memory_space<vmem>>, vector<1x128x128xf32>
      %219 = vector.shape_cast %218 : vector<1x128x128xf32> to vector<128x128xf32>
      %cst_180 = arith.constant dense<0.000000e+00> : vector<64x128xf32>
      %220 = tpu.matmul %217, %219, %cst_180 {dimension_numbers = #tpu.dot_dimension_numbers<[1], [0], [0], [1], [0, 0, 1, 1], [], []>} : vector<64x128xf32>, vector<128x128xf32>, vector<64x128xf32> -> vector<64x128xf32>
      %221 = arith.addf %212, %220 : vector<64x128xf32>
      %c2_i32_181 = arith.constant 2 : i32
      %222 = arith.addi %22, %c2_i32_181 : i32
      %223 = arith.index_cast %222 : i32 to index
      %c1_182 = arith.constant 1 : index
      %c1_183 = arith.constant 1 : index
      %c0_184 = arith.constant 0 : index
      %224 = vector.load %arg13[%223, %c1_182, %c1_183, %c0_184] : memref<6x10x10x128xf32, #tpu.memory_space<vmem>>, vector<1x8x8x128xf32>
      %225 = vector.shape_cast %224 : vector<1x8x8x128xf32> to vector<8x8x128xf32>
      %226 = vector.shape_cast %225 : vector<8x8x128xf32> to vector<64x128xf32>
      %c22 = arith.constant 22 : index
      %c0_185 = arith.constant 0 : index
      %c0_186 = arith.constant 0 : index
      %227 = vector.load %arg7[%c22, %c0_185, %c0_186] : memref<27x128x128xf32, #tpu.memory_space<vmem>>, vector<1x128x128xf32>
      %228 = vector.shape_cast %227 : vector<1x128x128xf32> to vector<128x128xf32>
      %cst_187 = arith.constant dense<0.000000e+00> : vector<64x128xf32>
      %229 = tpu.matmul %226, %228, %cst_187 {dimension_numbers = #tpu.dot_dimension_numbers<[1], [0], [0], [1], [0, 0, 1, 1], [], []>} : vector<64x128xf32>, vector<128x128xf32>, vector<64x128xf32> -> vector<64x128xf32>
      %230 = arith.addf %221, %229 : vector<64x128xf32>
      %c2_i32_188 = arith.constant 2 : i32
      %231 = arith.addi %22, %c2_i32_188 : i32
      %232 = arith.index_cast %231 : i32 to index
      %c1_189 = arith.constant 1 : index
      %c2_190 = arith.constant 2 : index
      %c0_191 = arith.constant 0 : index
      %233 = vector.load %arg13[%232, %c1_189, %c2_190, %c0_191] : memref<6x10x10x128xf32, #tpu.memory_space<vmem>>, vector<1x8x8x128xf32>
      %234 = vector.shape_cast %233 : vector<1x8x8x128xf32> to vector<8x8x128xf32>
      %235 = vector.shape_cast %234 : vector<8x8x128xf32> to vector<64x128xf32>
      %c23 = arith.constant 23 : index
      %c0_192 = arith.constant 0 : index
      %c0_193 = arith.constant 0 : index
      %236 = vector.load %arg7[%c23, %c0_192, %c0_193] : memref<27x128x128xf32, #tpu.memory_space<vmem>>, vector<1x128x128xf32>
      %237 = vector.shape_cast %236 : vector<1x128x128xf32> to vector<128x128xf32>
      %cst_194 = arith.constant dense<0.000000e+00> : vector<64x128xf32>
      %238 = tpu.matmul %235, %237, %cst_194 {dimension_numbers = #tpu.dot_dimension_numbers<[1], [0], [0], [1], [0, 0, 1, 1], [], []>} : vector<64x128xf32>, vector<128x128xf32>, vector<64x128xf32> -> vector<64x128xf32>
      %239 = arith.addf %230, %238 : vector<64x128xf32>
      %c2_i32_195 = arith.constant 2 : i32
      %240 = arith.addi %22, %c2_i32_195 : i32
      %241 = arith.index_cast %240 : i32 to index
      %c2_196 = arith.constant 2 : index
      %c0_197 = arith.constant 0 : index
      %c0_198 = arith.constant 0 : index
      %242 = vector.load %arg13[%241, %c2_196, %c0_197, %c0_198] : memref<6x10x10x128xf32, #tpu.memory_space<vmem>>, vector<1x8x8x128xf32>
      %243 = vector.shape_cast %242 : vector<1x8x8x128xf32> to vector<8x8x128xf32>
      %244 = vector.shape_cast %243 : vector<8x8x128xf32> to vector<64x128xf32>
      %c24 = arith.constant 24 : index
      %c0_199 = arith.constant 0 : index
      %c0_200 = arith.constant 0 : index
      %245 = vector.load %arg7[%c24, %c0_199, %c0_200] : memref<27x128x128xf32, #tpu.memory_space<vmem>>, vector<1x128x128xf32>
      %246 = vector.shape_cast %245 : vector<1x128x128xf32> to vector<128x128xf32>
      %cst_201 = arith.constant dense<0.000000e+00> : vector<64x128xf32>
      %247 = tpu.matmul %244, %246, %cst_201 {dimension_numbers = #tpu.dot_dimension_numbers<[1], [0], [0], [1], [0, 0, 1, 1], [], []>} : vector<64x128xf32>, vector<128x128xf32>, vector<64x128xf32> -> vector<64x128xf32>
      %248 = arith.addf %239, %247 : vector<64x128xf32>
      %c2_i32_202 = arith.constant 2 : i32
      %249 = arith.addi %22, %c2_i32_202 : i32
      %250 = arith.index_cast %249 : i32 to index
      %c2_203 = arith.constant 2 : index
      %c1_204 = arith.constant 1 : index
      %c0_205 = arith.constant 0 : index
      %251 = vector.load %arg13[%250, %c2_203, %c1_204, %c0_205] : memref<6x10x10x128xf32, #tpu.memory_space<vmem>>, vector<1x8x8x128xf32>
      %252 = vector.shape_cast %251 : vector<1x8x8x128xf32> to vector<8x8x128xf32>
      %253 = vector.shape_cast %252 : vector<8x8x128xf32> to vector<64x128xf32>
      %c25 = arith.constant 25 : index
      %c0_206 = arith.constant 0 : index
      %c0_207 = arith.constant 0 : index
      %254 = vector.load %arg7[%c25, %c0_206, %c0_207] : memref<27x128x128xf32, #tpu.memory_space<vmem>>, vector<1x128x128xf32>
      %255 = vector.shape_cast %254 : vector<1x128x128xf32> to vector<128x128xf32>
      %cst_208 = arith.constant dense<0.000000e+00> : vector<64x128xf32>
      %256 = tpu.matmul %253, %255, %cst_208 {dimension_numbers = #tpu.dot_dimension_numbers<[1], [0], [0], [1], [0, 0, 1, 1], [], []>} : vector<64x128xf32>, vector<128x128xf32>, vector<64x128xf32> -> vector<64x128xf32>
      %257 = arith.addf %248, %256 : vector<64x128xf32>
      %c2_i32_209 = arith.constant 2 : i32
      %258 = arith.addi %22, %c2_i32_209 : i32
      %259 = arith.index_cast %258 : i32 to index
      %c2_210 = arith.constant 2 : index
      %c2_211 = arith.constant 2 : index
      %c0_212 = arith.constant 0 : index
      %260 = vector.load %arg13[%259, %c2_210, %c2_211, %c0_212] : memref<6x10x10x128xf32, #tpu.memory_space<vmem>>, vector<1x8x8x128xf32>
      %261 = vector.shape_cast %260 : vector<1x8x8x128xf32> to vector<8x8x128xf32>
      %262 = vector.shape_cast %261 : vector<8x8x128xf32> to vector<64x128xf32>
      %c26 = arith.constant 26 : index
      %c0_213 = arith.constant 0 : index
      %c0_214 = arith.constant 0 : index
      %263 = vector.load %arg7[%c26, %c0_213, %c0_214] : memref<27x128x128xf32, #tpu.memory_space<vmem>>, vector<1x128x128xf32>
      %264 = vector.shape_cast %263 : vector<1x128x128xf32> to vector<128x128xf32>
      %cst_215 = arith.constant dense<0.000000e+00> : vector<64x128xf32>
      %265 = tpu.matmul %262, %264, %cst_215 {dimension_numbers = #tpu.dot_dimension_numbers<[1], [0], [0], [1], [0, 0, 1, 1], [], []>} : vector<64x128xf32>, vector<128x128xf32>, vector<64x128xf32> -> vector<64x128xf32>
      %266 = arith.addf %257, %265 : vector<64x128xf32>
      %267 = vector.broadcast %16 : vector<1x128xf32> to vector<64x128xf32>
      %268 = arith.mulf %266, %267 : vector<64x128xf32>
      %269 = vector.broadcast %17 : vector<1x128xf32> to vector<64x128xf32>
      %270 = arith.addf %268, %269 : vector<64x128xf32>
      %c64_i32 = arith.constant 64 : i32
      %271 = arith.muli %22, %c64_i32 : i32
      %272 = tpu.assume_multiple %271, 64 : i32
      %273 = arith.index_cast %272 : i32 to index
      %c0_216 = arith.constant 0 : index
      %274 = vector.load %arg2[%273, %c0_216] : memref<256x128xf32, #tpu.memory_space<vmem>>, vector<64x128xf32>
      %cst_217 = arith.constant dense<0.000000e+00> : vector<64x128xf32>
      %275 = tpu.matmul %274, %18, %cst_217 {dimension_numbers = #tpu.dot_dimension_numbers<[1], [0], [0], [1], [0, 0, 1, 1], [], []>} : vector<64x128xf32>, vector<128x128xf32>, vector<64x128xf32> -> vector<64x128xf32>
      %276 = vector.broadcast %19 : vector<1x128xf32> to vector<64x128xf32>
      %277 = arith.addf %275, %276 : vector<64x128xf32>
      %278 = arith.addf %270, %277 : vector<64x128xf32>
      %cst_218 = arith.constant 0.000000e+00 : f32
      %279 = vector.broadcast %cst_218 : f32 to vector<64x128xf32>
      %280 = arith.maximumf %278, %279 : vector<64x128xf32>
      %281 = arith.index_cast %272 : i32 to index
      %c0_219 = arith.constant 0 : index
      %282 = vector.load %arg12[%281, %c0_219] : memref<256x128xf32, #tpu.memory_space<vmem>>, vector<64x128xf32>
      tpu.vector_store %arg12[%281, %c0_219], %280 {strides = array<i32>} : memref<256x128xf32, #tpu.memory_space<vmem>>, vector<64x128xf32>,
    }
    %c4_i32_23 = arith.constant 4 : i32
    return
  }
  func.func @transform_0(%arg0: i32, %arg1: i32) -> (i32, i32) {
    %c2_i32 = arith.constant 2 : i32
    %0 = arith.muli %arg0, %c2_i32 : i32
    %1 = arith.addi %0, %arg1 : i32
    %c0_i32 = arith.constant 0 : i32
    %c0_i32_0 = arith.constant 0 : i32
    return %1, %c0_i32 : i32, i32
  }
  func.func @transform_1(%arg0: i32, %arg1: i32) -> (i32, i32) {
    %c8_i32 = arith.constant 8 : i32
    %0 = arith.muli %arg0, %c8_i32 : i32
    %c4_i32 = arith.constant 4 : i32
    %1 = arith.muli %arg1, %c4_i32 : i32
    %2 = arith.addi %0, %1 : i32
    %c1_i32 = arith.constant 1 : i32
    %3 = arith.subi %2, %c1_i32 : i32
    %c0_i32 = arith.constant 0 : i32
    %4 = arith.maxsi %3, %c0_i32 : i32
    %c0_i32_0 = arith.constant 0 : i32
    %c0_i32_1 = arith.constant 0 : i32
    return %4, %c0_i32_0 : i32, i32
  }
  func.func @transform_2(%arg0: i32, %arg1: i32) -> (i32, i32) {
    %c8_i32 = arith.constant 8 : i32
    %0 = arith.muli %arg0, %c8_i32 : i32
    %c1_i32 = arith.constant 1 : i32
    %1 = arith.addi %arg1, %c1_i32 : i32
    %c4_i32 = arith.constant 4 : i32
    %2 = arith.muli %1, %c4_i32 : i32
    %3 = arith.addi %0, %2 : i32
    %c15_i32 = arith.constant 15 : i32
    %4 = arith.minsi %3, %c15_i32 : i32
    %c0_i32 = arith.constant 0 : i32
    %c0_i32_0 = arith.constant 0 : i32
    return %4, %c0_i32 : i32, i32
  }
  func.func @transform_3(%arg0: i32, %arg1: i32) -> (i32, i32) {
    %c0_i32 = arith.constant 0 : i32
    %c0_i32_0 = arith.constant 0 : i32
    %c0_i32_1 = arith.constant 0 : i32
    return %c0_i32, %c0_i32_0 : i32, i32
  }
  func.func @transform_4(%arg0: i32, %arg1: i32) -> (i32, i32) {
    %c0_i32 = arith.constant 0 : i32
    %c0_i32_0 = arith.constant 0 : i32
    %c0_i32_1 = arith.constant 0 : i32
    return %c0_i32, %c0_i32_0 : i32, i32
  }
  func.func @transform_5(%arg0: i32, %arg1: i32) -> (i32, i32, i32) {
    %c0_i32 = arith.constant 0 : i32
    %c0_i32_0 = arith.constant 0 : i32
    %c0_i32_1 = arith.constant 0 : i32
    %c0_i32_2 = arith.constant 0 : i32
    return %c0_i32, %c0_i32_0, %c0_i32_1 : i32, i32, i32
  }
  func.func @transform_6(%arg0: i32, %arg1: i32) -> (i32, i32) {
    %c0_i32 = arith.constant 0 : i32
    %c0_i32_0 = arith.constant 0 : i32
    %c0_i32_1 = arith.constant 0 : i32
    return %c0_i32, %c0_i32_0 : i32, i32
  }
  func.func @transform_7(%arg0: i32, %arg1: i32) -> (i32, i32) {
    %c0_i32 = arith.constant 0 : i32
    %c0_i32_0 = arith.constant 0 : i32
    %c0_i32_1 = arith.constant 0 : i32
    return %c0_i32, %c0_i32_0 : i32, i32
  }
  func.func @transform_8(%arg0: i32, %arg1: i32) -> (i32, i32) {
    %c0_i32 = arith.constant 0 : i32
    %c0_i32_0 = arith.constant 0 : i32
    %c0_i32_1 = arith.constant 0 : i32
    return %c0_i32, %c0_i32_0 : i32, i32
  }
  func.func @transform_9(%arg0: i32, %arg1: i32) -> (i32, i32) {
    %c0_i32 = arith.constant 0 : i32
    %c0_i32_0 = arith.constant 0 : i32
    %c0_i32_1 = arith.constant 0 : i32
    return %c0_i32, %c0_i32_0 : i32, i32
  }
  func.func @transform_10(%arg0: i32, %arg1: i32) -> (i32, i32) {
    %c2_i32 = arith.constant 2 : i32
    %0 = arith.muli %arg0, %c2_i32 : i32
    %1 = arith.addi %0, %arg1 : i32
    %c0_i32 = arith.constant 0 : i32
    %c0_i32_0 = arith.constant 0 : i32
    return %1, %c0_i32 : i32, i32
  }
}

</mosaic_0001>

<bundles_post_ra>
// kernel: tpu_custom_call.1
= control target key start
LH: loop header
LB: loop body
LE: loop exit
PB: predicated region body
PF: predicated region fallthrough
CT: control target
= control target key end

     0   :  { %s11316_s0 = inlined_call_operand.hbm [shape: f32[1024,128], index: 0, kind: input, shape index: {}]   ;;  %s11317_s1 = inlined_call_operand.hbm [shape: f32[1024,128], index: 1, kind: input, shape index: {}]   ;;  %s11318_s2 = inlined_call_operand.hbm [shape: f32[1024,128], index: 2, kind: input, shape index: {}]   ;;  %s11319_s3 = inlined_call_operand.hbm [shape: f32[128,128], index: 3, kind: input, shape index: {}]   ;;  %s11320_s4 = inlined_call_operand.hbm [shape: f32[1,128], index: 4, kind: input, shape index: {}]   ;;  %s11321_s5 = inlined_call_operand.hbm [shape: f32[27,128,128], index: 5, kind: input, shape index: {}]   ;;  %s11322_s6 = inlined_call_operand.hbm [shape: f32[1,128], index: 6, kind: input, shape index: {}]   ;;  %s11323_s7 = inlined_call_operand.hbm [shape: f32[1,128], index: 7, kind: input, shape index: {}]   ;;  %s11324_s8 = inlined_call_operand.hbm [shape: f32[128,128], index: 8, kind: input, shape index: {}]   ;;  %s11325_s9 = inlined_call_operand.hbm [shape: f32[1,128], index: 9, kind: input, shape index: {}]   ;;  %s11326_s10 = inlined_call_operand.hbm [shape: f32[1024,128], index: 10, kind: output, shape index: {}]  }
   0x1   :  { %11354 = sst [smem:[#allocation48_spill]] %s11316_s0 }
   0x2   :  { %11355 = sst [smem:[#allocation49_spill]] %s11317_s1 }
   0x3   :  { %11356 = sst [smem:[#allocation50_spill]] %s11318_s2 }
   0x4   :  { %11357 = sst [smem:[#allocation51_spill]] %s11319_s3 }
   0x5   :  { %11358 = sst [smem:[#allocation52_spill]] %s11320_s4 }
   0x6   :  { %11359 = sst [smem:[#allocation53_spill]] %s11321_s5 }
   0x7   :  { %11360 = sst [smem:[#allocation54_spill]] %s11322_s6 }
   0x8   :  { %11361 = sst [smem:[#allocation55_spill]] %s11323_s7 }
   0x9   :  { %11362 = sst [smem:[#allocation56_spill]] %s11324_s8 }
   0xa   :  { %11363 = sst [smem:[#allocation57_spill]] %s11325_s9 }
   0xb   :  { %11364 = sst [smem:[#allocation58_spill]] %s11326_s10 }
   0xc   :  { %15 = vsyncpa [#allocation4], 0 }
   0xd   :  { %17 = vsyncpa [#allocation4 + $0x1], 0 }
   0xe   :  { %18 = vsyncpa [#allocation7], 0 }
   0xf   :  { %20 = vsyncpa [#allocation7 + $0x1], 0 }
  0x10   :  { %21 = vsyncpa [#allocation10], 0 }
  0x11   :  { %22 = vsyncpa [#allocation13], 0 }
  0x12   :  { %23 = vsyncpa [#allocation16], 0 }
  0x13   :  { %24 = vsyncpa [#allocation19], 0 }
  0x14   :  { %25 = vsyncpa [#allocation5], 0 }
  0x15   :  { %27 = vsyncpa [#allocation5 + $0x1], 0  ;;  %s9868_s13 = smov 0   ;;  %s9870_s14 = smov 0  }
  0x16   :  { %s9872_s15 = smov 0   ;;  %s9874_s16 = smov 0  }
  0x17   :  { %s9876_s17 = smov 0   ;;  %s9878_s18 = smov 0  }
  0x18   :  { %s9880_s19 = smov 0   ;;  %s9882_s20 = smov 0  }
  0x19   :  { %s9884_s21 = smov 0   ;;  %s9886_s22 = smov 0  }
  0x1a   :  { %s9888_s23 = smov 0   ;;  %s9890_s24 = smov 0  }
  0x1b   :  { %s9892_s25 = smov 0   ;;  %s9894_s26 = smov 0  }
  0x1c LB: > { %11365 = sst [smem:[#allocation29_spill]] %s9731_s13  ;;  %s9939_s27 = sadd.s32 4294967295, %s9783_s26   ;;  %s9783_s26 = sphi %s9894_s26, %s33_s26   ;;  %s9779_s25 = sphi %s9892_s25, %s11475_s25   ;;  %s9775_s24 = sphi %s9890_s24, %s11474_s24   ;;  %s9771_s23 = sphi %s9888_s23, %s11473_s23   ;;  %s9767_s22 = sphi %s9886_s22, %s11472_s22   ;;  %s9763_s21 = sphi %s9884_s21, %s11471_s21   ;;  %s9759_s20 = sphi %s9882_s20, %s11470_s20   ;;  %s9755_s19 = sphi %s9880_s19, %s11462_s19   ;;  %s9751_s18 = sphi %s9878_s18, %s11469_s18   ;;  %s9747_s17 = sphi %s9876_s17, %s11468_s17   ;;  %s9743_s16 = sphi %s9874_s16, %s11461_s16   ;;  %s9739_s15 = sphi %s9872_s15, %s11467_s15   ;;  %s9735_s14 = sphi %s9870_s14, %s11460_s14   ;;  %s9731_s13 = sphi %s9868_s13, %s11459_s13  }
  0x1d   : > { %11366 = sst [smem:[#allocation30_spill]] %s9735_s14  ;;  %p5456_p0 = scmp.ge.s32.totalorder %s9783_s26, 1 }
  0x1e   : > { %11367 = sst [smem:[#allocation31_spill]] %s9739_s15  ;;  %p11335_p1 = scmp.eq.s32.totalorder %s9939_s27, 0 }
  0x1f   : > { %11368 = sst [smem:[#allocation32_spill]] %s9747_s17  ;;  %p333_p2 = scmp.lt.s32.totalorder %s9783_s26, 5 }
  0x20   : > { %11369 = sst [smem:[#allocation33_spill]] %s9755_s19  ;;  %s9793_s29 = smov [#allocation9]  }
  0x21   : > { %11370 = sst [smem:[#allocation34_spill]] %s9759_s20  ;;  %p9944_p3 = pnand %p5456_p0, %p333_p2 }
  0x22   : > { %11371 = sst [smem:[#allocation35_spill]] %s9763_s21  ;;  %s345_s30 = sshll.u32 %s9793_s29, 4  ;;  %s9948_s30 = int_to_ptr.vmem [resolvable:$true] %s345_s30 }
  0x23   : > { %11372 = sst [smem:[#allocation36_spill]] %s9767_s22  ;;  %p9122_p4 = pneg %p9944_p3 }
  0x24   : > { %11373 = sst [smem:[#allocation37_spill]] %s9771_s23  ;;  %s9794_s12 = smov [#allocation12]  }
  0x25   : > { %s11374_s28 = scalar_select %p9944_p3, 1, 0 }
  0x26   : > { %p9954_p5 = pnand %p9122_p4, %p11335_p1  ;;  %s369_s10 = sshll.u32 %s9794_s12, 4  ;;  %s9958_s10 = int_to_ptr.vmem [resolvable:$true] %s369_s10 }
  0x27   : > { %11375 = sst [smem:[#allocation38_spill]] %s11374_s28  ;;  %s9795_s23 = smov [#allocation15]  }
  0x28   : > { %s11376_s11 = scalar_select %p9954_p5, 1, 0 }
  0x29   : > { %s9960_s22 = sshll.u32 %s9795_s23, 4  ;;  %s11377_s3 = sld [smem:[#allocation51_spill]]  ;;  %s395_s22 = int_to_ptr.vmem [resolvable:$true] %s9960_s22 }
  0x2a   : > { %p9970_p7 = pneg %p9954_p5 }
  0x2f   : > { %s9319_s29 = scalar_lea.hbm %s11377_s3, 2048 }
  0x30   : > { %p9320_p6 = scmp.ne.s32.totalorder %s11377_s3, %s9319_s29  ;;  %p9326_p10 = scmp.lt.u32.totalorder %s9319_s29, %s11377_s3 }
  0x32   : > { %p9322_p8 = pnand %p9970_p7, %p9320_p6 }
  0x34   : > { %p9323_p9 = pneg %p9322_p8 }
  0x36   : > { %p9328_p11 = pnand %p9326_p10, %p9323_p9 }
  0x38   : > { %9331 = shalt.err (!%p9328_p11)
}
  0x39   : > { %s9332_s2 = scalar_lea.vmem %s9948_s30, 2048  ;;  %p9340_p2 = scmp.lt.s32.totalorder %s9948_s30, %s9948_s30 }
  0x3a   : > { %p9333_p12 = scmp.ne.s32.totalorder %s9948_s30, %s9332_s2  ;;  %p9341_p4 = scmp.lt.s32.totalorder %s9332_s2, %s9332_s2 }
  0x3c   : > { %p9335_p13 = pnand %p9333_p12, %p9970_p7  ;;  %p9342_p6 = por %p9341_p4, %p9340_p2 }
  0x3e   : > { %p9336_p0 = pneg %p9335_p13 }
  0x40   : > { %p9343_p8 = pnand %p9342_p6, %p9336_p0 }
  0x42   : > { %9346 = shalt.err (!%p9343_p8)
}
  0x43   : > { %s11337_s13 = smov 128   ;;  %s11339_s14 = smov 8  }
  0x44   : > { %9125 = dma.hbm_to_vmem [thread:$0]  (!%p9954_p5), %s11377_s3, 2048, %s9948_s30, [#allocation10], %s11337_s13, %s11337_s13, %s11339_s14  }
  0x45   : > { %s11379_s5 = sld [smem:[#allocation53_spill]] }
  0x4b   : > { %s9347_s2 = scalar_lea.hbm %s11379_s5, 55296 }
  0x4c   : > { %p9348_p9 = scmp.ne.s32.totalorder %s11379_s5, %s9347_s2  ;;  %p9354_p12 = scmp.lt.u32.totalorder %s9347_s2, %s11379_s5 }
  0x4e   : > { %p9350_p10 = pnand %p9348_p9, %p9970_p7 }
  0x50   : > { %p9351_p11 = pneg %p9350_p10 }
  0x52   : > { %p9356_p13 = pnand %p9354_p12, %p9351_p11 }
  0x54   : > { %9359 = shalt.err (!%p9356_p13)
}
  0x55   : > { %s9360_s30 = scalar_lea.vmem %s9958_s10, 55296  ;;  %p9368_p6 = scmp.lt.s32.totalorder %s9958_s10, %s9958_s10 }
  0x56   : > { %p9361_p0 = scmp.ne.s32.totalorder %s9958_s10, %s9360_s30  ;;  %p9369_p8 = scmp.lt.s32.totalorder %s9360_s30, %s9360_s30 }
  0x58   : > { %p9363_p2 = pnand %p9361_p0, %p9970_p7  ;;  %p9370_p9 = por %p9369_p8, %p9368_p6 }
  0x5a   : > { %p9364_p4 = pneg %p9363_p2 }
  0x5c   : > { %p9371_p10 = pnand %p9370_p9, %p9364_p4 }
  0x5e   : > { %9374 = shalt.err (!%p9371_p10)
}
  0x5f   : > { %9131 = dma.hbm_to_vmem [thread:$0]  (!%p9954_p5), %s11379_s5, 55296, %s9958_s10, [#allocation13], %s11337_s13, %s11337_s13, %s11339_s14  }
  0x60   : > { %s11380_s7 = sld [smem:[#allocation55_spill]] }
  0x66   : > { %s9375_s28 = scalar_lea.hbm %s11380_s7, 16 }
  0x67   : > { %p9376_p11 = scmp.ne.s32.totalorder %s11380_s7, %s9375_s28  ;;  %p9382_p0 = scmp.lt.u32.totalorder %s9375_s28, %s11380_s7 }
  0x69   : > { %p9378_p12 = pnand %p9376_p11, %p9970_p7 }
  0x6b   : > { %p9379_p13 = pneg %p9378_p12 }
  0x6d   : > { %p9384_p2 = pnand %p9382_p0, %p9379_p13 }
  0x6f   : > { %9387 = shalt.err (!%p9384_p2)
}
  0x70   : > { %s9388_s30 = scalar_lea.vmem %s395_s22, 16  ;;  %s9395_s10 = scalar_lea.vmem %s395_s22, 32 }
  0x71   : > { %p9389_p4 = scmp.ne.s32.totalorder %s395_s22, %s9388_s30  ;;  %p9396_p9 = scmp.lt.s32.totalorder %s395_s22, %s395_s22 }
  0x72   : > { %p9397_p10 = scmp.lt.s32.totalorder %s9395_s10, %s9388_s30 }
  0x73   : > { %p9391_p6 = pnand %p9389_p4, %p9970_p7 }
  0x74   : > { %p9398_p1 = por %p9397_p10, %p9396_p9 }
  0x75   : > { %p9392_p8 = pneg %p9391_p6 }
  0x77   : > { %p9399_p3 = pnand %p9398_p1, %p9392_p8 }
  0x79   : > { %9402 = shalt.err (!%p9399_p3)
}
  0x7a   : > { %9137 = dma.hbm_to_vmem [thread:$0]  (!%p9954_p5), %s11380_s7, 16, %s395_s22, [#allocation16]  }
  0x7b   : > { %s42_s20 = sadd.s32 1, %s9775_s24  ;;  %s45_s21 = sadd.s32 1, %s9779_s25 }
  0x7c   : > { %p43_p11 = scmp.ge.s32.totalorder %s42_s20, 2  ;;  %p11345_p1 = scmp.eq.s32.totalorder %s9783_s26, 0 }
  0x7d   : > { %s5444_s28 = sshll.u32 %s9779_s25, 3  ;;  %s5445_s29 = sshll.u32 %s9775_s24, 2 }
  0x7e   : > { %s11477_s20 = smov (%p43_p11, %s42_s20), 0  ;;  %s11479_s21 = smov (!%p43_p11, %s45_s21), %s9779_s25 }
  0x7f   : > { %s5448_s12 = sshll.u32 %s11477_s20, 2  ;;  %p47_p3 = scmp.ge.s32.totalorder %s11479_s21, 2 }
  0x80   : > { %s81_s23 = sadd.s32 %s5445_s29, %s5444_s28  ;;  %s94_s2 = sadd.s32 1, %s9751_s18 }
  0x81   : > { %s5446_s22 = sadd.s32 4294967295, %s81_s23  ;;  %s11481_s21 = smov (%p47_p3, %s11479_s21), 0 }
  0x82   : > { %p83_p12 = scmp.gt.s32.totalorder %s5446_s22, 0  ;;  %p101_p13 = scmp.ne.s32.totalorder %s9751_s18, %s9747_s17 }
  0x83   : > { %s5447_s30 = sshll.u32 %s11481_s21, 3  ;;  %p107_p0 = scmp.ne.s32.totalorder %s9747_s17, %s9743_s16 }
  0x84   : > { %s11483_s22 = smov (!%p83_p12, %s5446_s22), 0  ;;  %s87_s10 = sadd.s32 %s5448_s12, %s5447_s30 }
  0x85   : > { %p10058_p2 = por %p101_p13, %p11345_p1  ;;  %s5449_s19 = sadd.s32 4294967295, %s87_s10 }
  0x86   : > { %p11382_p4 = scmp.eq.s32.totalorder %s9939_s27, 0  ;;  %p89_p8 = scmp.gt.s32.totalorder %s5449_s19, 0 }
  0x87   : > { %s5720_s13 = sadd.s32 4, %s5445_s29  ;;  %s5722_s14 = sadd.s32 4, %s5448_s12 }
  0x88   : > { %p10064_p6 = por %p107_p0, %p11382_p4  ;;  %s10068_s16 = sadd.s32 %s5720_s13, %s5444_s28 }
  0x89   : > { %s11485_s19 = smov (!%p89_p8, %s5449_s19), 0  ;;  %s10071_s3 = sadd.s32 %s5722_s14, %s5447_s30 }
  0x8a   : > { %s11383_s23 = scalar_select %p10064_p6, 1, 0 }
  0x8b   : > { %s91_s5 = ssub.s32 %s11483_s22, %s11485_s19  ;;  %p11344_p3 = scmp.lt.s32.totalorder %s9783_s26, 4 }
  0x8c   : > { %11384 = sst [smem:[#allocation39_spill]] %s11383_s23  ;;  %p92_p11 = scmp.eq.s32.totalorder %s91_s5, 0 }
  0x8d   : > { %s452_s10 = sand.u32 1, %s9783_s26   ;;  %s454_s7 = sand.u32 1, %s9751_s18  }
  0x8e   : > { %s10078_s23 = scalar_select %p92_p11, %s9751_s18, %s94_s2  }
  0x8f   : > { %s5469_s29 = sshll.u32 %s454_s7, 6  ;;  %s5724_s13 = sshll.u32 %s11483_s22, 10 }
  0x90   : > { %s11385_s1 = sld [smem:[#allocation49_spill]]  ;;  %s456_s14 = scalar_lea.vmem [#allocation6], %s5469_s29 }
  0x91   : > { %s469_s30 = sshll.u32 %s456_s14, 4  ;;  %p10091_p12 = pnand %p11344_p3, %p10058_p2  ;;  %s10085_s30 = int_to_ptr.vmem [resolvable:$true] %s469_s30 }
  0x92   : > { %s9798_s7 = smov [#allocation11]   ;;  %s10097_s22 = scalar_lea.sflag [#allocation7], %s452_s10 }
  0x93   : > { %s10095_s17 = sshll.u32 %s9798_s7, 4  ;;  %p9405_p0 = pneg %p10091_p12  ;;  %s360_s17 = int_to_ptr.vmem [resolvable:$true] %s10095_s17 }
  0x96   : > { %s10083_s12 = scalar_lea.hbm %s11385_s1, %s5724_s13  ;;  %s9408_s29 = scalar_lea.hbm %s11385_s1, 16384 }
  0x97   : > { %s9403_s2 = scalar_lea.hbm %s10083_s12, 1024  ;;  %p9409_p2 = scmp.lt.u32.totalorder %s10083_s12, %s11385_s1 }
  0x98   : > { %p9404_p13 = scmp.ne.s32.totalorder %s10083_s12, %s9403_s2  ;;  %p9410_p11 = scmp.lt.u32.totalorder %s9408_s29, %s9403_s2 }
  0x99   : > { %p9412_p9 = scmp.lt.u32.totalorder %s9403_s2, %s10083_s12 }
  0x9a   : > { %p9406_p4 = pnand %p9405_p0, %p9404_p13  ;;  %p9411_p10 = por %p9410_p11, %p9409_p2 }
  0x9c   : > { %p9407_p8 = pneg %p9406_p4  ;;  %p9413_p3 = por %p9412_p9, %p9411_p10 }
  0x9e   : > { %p9414_p1 = pnand %p9413_p3, %p9407_p8 }
  0xa0   : > { %9417 = shalt.err (!%p9414_p1)
}
  0xa1   : > { %s9418_s10 = scalar_lea.vmem %s10085_s30, 1024  ;;  %s9799_s14 = smov [#allocation6]  }
  0xa2   : > { %p9419_p13 = scmp.ne.s32.totalorder %s10085_s30, %s9418_s10  ;;  %s9423_s7 = sshll.u32 %s9799_s14, 4  ;;  %s9424_s7 = int_to_ptr.vmem [resolvable:$false] %s9423_s7 }
  0xa3   : > { %s9425_s0 = scalar_lea.vmem %s9424_s7, 2048  ;;  %p9426_p5 = scmp.lt.s32.totalorder %s10085_s30, %s9424_s7 }
  0xa4   : > { %p9421_p4 = pnand %p9419_p13, %p9405_p0  ;;  %p9427_p2 = scmp.lt.s32.totalorder %s9425_s0, %s9418_s10 }
  0xa6   : > { %p9422_p6 = pneg %p9421_p4  ;;  %p9428_p11 = por %p9427_p2, %p9426_p5 }
  0xa8   : > { %p9429_p9 = pnand %p9428_p11, %p9422_p6 }
  0xaa   : > { %9432 = shalt.err (!%p9429_p9)
}
  0xab   : > { %s11387_s2 = smov 8   ;;  %s11388_s19 = smov 128  }
  0xac   : > { %9150 = dma.hbm_to_vmem [thread:$0]  (!%p10091_p12), %s10083_s12, 1024, %s10085_s30, %s10097_s22, %s11388_s19, %s11388_s19, %s11387_s2  }
  0xad   : > { %s9800_s29 = smov [#allocation14]   ;;  %s11389_s4 = sld [smem:[#allocation52_spill]] }
  0xae   : > { %s383_s13 = sshll.u32 %s9800_s29, 4  ;;  %s384_s13 = int_to_ptr.vmem [resolvable:$true] %s383_s13 }
  0xb3   : > { %s9433_s10 = scalar_lea.hbm %s11389_s4, 16 }
  0xb4   : > { %p9434_p5 = scmp.ne.s32.totalorder %s11389_s4, %s9433_s10  ;;  %p9440_p10 = scmp.lt.u32.totalorder %s9433_s10, %s11389_s4 }
  0xb6   : > { %p9436_p1 = pnand %p9434_p5, %p9970_p7 }
  0xb8   : > { %p9437_p6 = pneg %p9436_p1 }
  0xba   : > { %p9442_p3 = pnand %p9440_p10, %p9437_p6 }
  0xbc   : > { %9445 = shalt.err (!%p9442_p3)
}
  0xbd   : > { %s9446_s12 = scalar_lea.vmem %s360_s17, 16  ;;  %s9453_s30 = scalar_lea.vmem %s360_s17, 32 }
  0xbe   : > { %p9447_p12 = scmp.ne.s32.totalorder %s360_s17, %s9446_s12  ;;  %p9454_p13 = scmp.lt.s32.totalorder %s360_s17, %s360_s17 }
  0xbf   : > { %p9455_p4 = scmp.lt.s32.totalorder %s9453_s30, %s9446_s12 }
  0xc0   : > { %p9449_p0 = pnand %p9447_p12, %p9970_p7 }
  0xc1   : > { %p9456_p2 = por %p9455_p4, %p9454_p13 }
  0xc2   : > { %p9450_p8 = pneg %p9449_p0 }
  0xc4   : > { %p9457_p11 = pnand %p9456_p2, %p9450_p8 }
  0xc6   : > { %9460 = shalt.err (!%p9457_p11)
}
  0xc7   : > { %p11390_p9 = scmp.ne.s32.totalorder %s11376_s11, 0  ;;  %s11391_s6 = sld [smem:[#allocation54_spill]] }
  0xc9   : > { %9128 = dma.hbm_to_vmem [thread:$0]  (!%p11390_p9), %s11389_s4, 16, %s360_s17, [#allocation10]  }
  0xcd   : > { %s9461_s10 = scalar_lea.hbm %s11391_s6, 16 }
  0xce   : > { %p9462_p5 = scmp.ne.s32.totalorder %s11391_s6, %s9461_s10  ;;  %p9468_p10 = scmp.lt.u32.totalorder %s9461_s10, %s11391_s6 }
  0xd0   : > { %p9464_p1 = pnand %p9462_p5, %p9970_p7 }
  0xd2   : > { %p9465_p6 = pneg %p9464_p1 }
  0xd4   : > { %p9470_p3 = pnand %p9468_p10, %p9465_p6 }
  0xd6   : > { %9473 = shalt.err (!%p9470_p3)
}
  0xd7   : > { %s9474_s30 = scalar_lea.vmem %s384_s13, 16  ;;  %s9481_s17 = scalar_lea.vmem %s384_s13, 32 }
  0xd8   : > { %p9475_p12 = scmp.ne.s32.totalorder %s384_s13, %s9474_s30  ;;  %p9482_p13 = scmp.lt.s32.totalorder %s384_s13, %s384_s13 }
  0xd9   : > { %p9483_p4 = scmp.lt.s32.totalorder %s9481_s17, %s9474_s30 }
  0xda   : > { %p9477_p0 = pnand %p9475_p12, %p9970_p7 }
  0xdb   : > { %p9484_p2 = por %p9483_p4, %p9482_p13 }
  0xdc   : > { %p9478_p8 = pneg %p9477_p0 }
  0xde   : > { %p9485_p11 = pnand %p9484_p2, %p9478_p8 }
  0xe0   : > { %9488 = shalt.err (!%p9485_p11)
}
  0xe1   : > { %9134 = dma.hbm_to_vmem [thread:$0]  (!%p11390_p9), %s11391_s6, 16, %s384_s13, [#allocation13]  }
  0xe2   : > { %s9801_s1 = smov [#allocation17]   ;;  %s9802_s10 = smov [#allocation18]  }
  0xe3   : > { %s404_s14 = sshll.u32 %s9801_s1, 4  ;;  %s418_s7 = sshll.u32 %s9802_s10, 4  ;;  %s405_s14 = int_to_ptr.vmem [resolvable:$true] %s404_s14  ;;  %s419_s7 = int_to_ptr.vmem [resolvable:$true] %s418_s7 }
  0xe4   : > { %s11392_s8 = sld [smem:[#allocation56_spill]] }
  0xea   : > { %s9489_s12 = scalar_lea.hbm %s11392_s8, 2048 }
  0xeb   : > { %p9490_p5 = scmp.ne.s32.totalorder %s11392_s8, %s9489_s12  ;;  %p9496_p10 = scmp.lt.u32.totalorder %s9489_s12, %s11392_s8 }
  0xed   : > { %p9492_p1 = pnand %p9490_p5, %p9970_p7 }
  0xef   : > { %p9493_p6 = pneg %p9492_p1 }
  0xf1   : > { %p9498_p3 = pnand %p9496_p10, %p9493_p6 }
  0xf3   : > { %9501 = shalt.err (!%p9498_p3)
}
  0xf4   : > { %s9502_s13 = scalar_lea.vmem %s405_s14, 2048  ;;  %p9510_p13 = scmp.lt.s32.totalorder %s405_s14, %s405_s14 }
  0xf5   : > { %p9503_p12 = scmp.ne.s32.totalorder %s405_s14, %s9502_s13  ;;  %p9511_p4 = scmp.lt.s32.totalorder %s9502_s13, %s9502_s13 }
  0xf7   : > { %p9505_p0 = pnand %p9503_p12, %p9970_p7  ;;  %p9512_p2 = por %p9511_p4, %p9510_p13 }
  0xf9   : > { %p9506_p8 = pneg %p9505_p0 }
  0xfb   : > { %p9513_p11 = pnand %p9512_p2, %p9506_p8 }
  0xfd   : > { %9516 = shalt.err (!%p9513_p11)
}
  0xfe   : > { %9140 = dma.hbm_to_vmem [thread:$0]  (!%p11390_p9), %s11392_s8, 2048, %s405_s14, [#allocation16], %s11388_s19, %s11388_s19, %s11387_s2  }
  0xff   : > { %s11393_s9 = sld [smem:[#allocation57_spill]] }
 0x105   : > { %s9517_s0 = scalar_lea.hbm %s11393_s9, 16 }
 0x106   : > { %p9518_p5 = scmp.ne.s32.totalorder %s11393_s9, %s9517_s0  ;;  %p9524_p10 = scmp.lt.u32.totalorder %s9517_s0, %s11393_s9 }
 0x108   : > { %p9520_p1 = pnand %p9518_p5, %p9970_p7 }
 0x10a   : > { %p9521_p6 = pneg %p9520_p1 }
 0x10c   : > { %p9526_p3 = pnand %p9524_p10, %p9521_p6 }
 0x10e   : > { %9529 = shalt.err (!%p9526_p3)
}
 0x10f   : > { %s9530_s29 = scalar_lea.vmem %s419_s7, 16  ;;  %s9537_s14 = scalar_lea.vmem %s419_s7, 32 }
 0x110   : > { %p9531_p12 = scmp.ne.s32.totalorder %s419_s7, %s9530_s29  ;;  %p9538_p13 = scmp.lt.s32.totalorder %s419_s7, %s419_s7 }
 0x111   : > { %p9539_p4 = scmp.lt.s32.totalorder %s9537_s14, %s9530_s29 }
 0x112   : > { %p9533_p0 = pnand %p9531_p12, %p9970_p7 }
 0x113   : > { %p9540_p2 = por %p9539_p4, %p9538_p13 }
 0x114   : > { %p9534_p8 = pneg %p9533_p0 }
 0x116   : > { %p9541_p11 = pnand %p9540_p2, %p9534_p8 }
 0x118   : > { %9544 = shalt.err (!%p9541_p11)
}
 0x119   : > { %s11394_s28 = sld [smem:[#allocation35_spill]]  ;;  %s11395_s15 = sld [smem:[#allocation34_spill]] }
 0x11a   : > { %s11396_s1 = sld [smem:[#allocation33_spill]]  ;;  %s5441_s10 = sadd.s32 4294967294, %s9783_s26  }
 0x11b   : > { %9143 = dma.hbm_to_vmem [thread:$0]  (!%p11390_p9), %s11393_s9, 16, %s419_s7, [#allocation19]  }
 0x11c   : > { %s5442_s11 = sshll.u32 %s9779_s25, 1  ;;  %s5443_s0 = sshll.u32 %s11481_s21, 1 }
 0x11d   : > { %s50_s5 = sadd.s32 %s9775_s24, %s5442_s11  ;;  %s52_s12 = sadd.s32 %s5443_s0, %s11477_s20 }
 0x11e   : > { %s53_s30 = ssub.s32 %s50_s5, %s52_s12  ;;  %p320_p6 = scmp.eq.s32.totalorder %s9939_s27, 3 }
 0x11f   : > { %s56_s17 = sadd.s32 1, %s11394_s28  ;;  %p54_p7 = scmp.eq.s32.totalorder %s53_s30, 0 }
 0x120   : > { %p63_p5 = scmp.ne.s32.totalorder %s11394_s28, %s11395_s15  ;;  %p69_p1 = scmp.ne.s32.totalorder %s11395_s15, %s11396_s1 }
 0x121   : > { %s10216_s29 = scalar_select %p54_p7, %s11394_s28, %s56_s17  }
 0x122   : > { %p11397_p10 = scmp.eq.s32.totalorder %s9783_s26, 0  ;;  %p11398_p12 = scmp.eq.s32.totalorder %s9939_s27, 0 }
 0x123   : > { %p10226_p9 = por %p320_p6, %p63_p5  ;;  %p326_p8 = scmp.eq.s32.totalorder %s5441_s10, 3 }
 0x124   : > { %p65_p3 = por %p11397_p10, %p63_p5  ;;  %p10222_p0 = por %p11398_p12, %p69_p1 }
 0x125   : > { %s11400_s14 = scalar_select %p10226_p9, 1, 0 }
 0x126   : > { %s429_s13 = sand.u32 1, %s11394_s28   ;;  %s5723_s4 = sshll.u32 %s50_s5, 12 }
 0x127   : > { %p10231_p13 = por %p326_p8, %p69_p1  ;;  %s5465_s15 = sshll.u32 %s429_s13, 8 }
 0x128   : > { %s11402_s12 = sld [smem:[#allocation48_spill]]  ;;  %p11403_p4 = scmp.lt.s32.totalorder %s9783_s26, 4 }
 0x129   : > { %s11401_s11 = scalar_select %p10231_p13, 1, 0 }
 0x12a   : > { %p10242_p2 = pnand %p11403_p4, %p65_p3  ;;  %s433_s28 = scalar_lea.vmem [#allocation3], %s5465_s15 }
 0x12b   : > { %s442_s10 = sshll.u32 %s433_s28, 4  ;;  %s10248_s5 = scalar_lea.sflag [#allocation4], %s429_s13  ;;  %s10246_s10 = int_to_ptr.vmem [resolvable:$true] %s442_s10 }
 0x12c   : > { %p9547_p7 = pneg %p10242_p2 }
 0x12e   : > { %s10238_s30 = scalar_lea.hbm %s11402_s12, %s5723_s4  ;;  %s9550_s6 = scalar_lea.hbm %s11402_s12, 16384 }
 0x12f   : > { %s9545_s1 = scalar_lea.hbm %s10238_s30, 4096  ;;  %p9551_p6 = scmp.lt.u32.totalorder %s10238_s30, %s11402_s12 }
 0x130   : > { %p9546_p11 = scmp.ne.s32.totalorder %s10238_s30, %s9545_s1  ;;  %p9552_p10 = scmp.lt.u32.totalorder %s9550_s6, %s9545_s1 }
 0x131   : > { %p9554_p12 = scmp.lt.u32.totalorder %s9545_s1, %s10238_s30 }
 0x132   : > { %p9548_p5 = pnand %p9547_p7, %p9546_p11  ;;  %p9553_p3 = por %p9552_p10, %p9551_p6 }
 0x134   : > { %p9549_p1 = pneg %p9548_p5  ;;  %p9555_p8 = por %p9554_p12, %p9553_p3 }
 0x136   : > { %p9556_p4 = pnand %p9555_p8, %p9549_p1 }
 0x138   : > { %9559 = shalt.err (!%p9556_p4)
}
 0x139   : > { %s9560_s13 = scalar_lea.vmem %s10246_s10, 4096  ;;  %s9803_s15 = smov [#allocation3]  }
 0x13a   : > { %p9561_p11 = scmp.ne.s32.totalorder %s10246_s10, %s9560_s13  ;;  %s9565_s28 = sshll.u32 %s9803_s15, 4  ;;  %s9566_s28 = int_to_ptr.vmem [resolvable:$false] %s9565_s28 }
 0x13b   : > { %s9567_s8 = scalar_lea.vmem %s9566_s28, 8192  ;;  %p9568_p9 = scmp.lt.s32.totalorder %s10246_s10, %s9566_s28 }
 0x13c   : > { %p9563_p5 = pnand %p9561_p11, %p9547_p7  ;;  %p9569_p6 = scmp.lt.s32.totalorder %s9567_s8, %s9560_s13 }
 0x13e   : > { %p9564_p13 = pneg %p9563_p5  ;;  %p9570_p10 = por %p9569_p6, %p9568_p9 }
 0x140   : > { %p9571_p3 = pnand %p9570_p10, %p9564_p13 }
 0x142   : > { %9574 = shalt.err (!%p9571_p3)
}
 0x143   : > { %s11405_s6 = sld [smem:[#allocation31_spill]]  ;;  %s11406_s9 = sld [smem:[#allocation30_spill]] }
 0x144   : > { %s11407_s1 = sld [smem:[#allocation29_spill]]  ;;  %p11408_p9 = scmp.lt.s32.totalorder %s10068_s16, 15 }
 0x145   : > { %9147 = dma.hbm_to_vmem [thread:$0]  (!%p10242_p2), %s10238_s30, 4096, %s10246_s10, %s10248_s5, %s11388_s19, %s11388_s19, %s11387_s2  }
 0x146   : > { %s11487_s16 = smov (!%p11408_p9, %s10068_s16), 15  ;;  %p11409_p13 = scmp.lt.s32.totalorder %s10071_s3, 15 }
 0x147   : > { %p11410_p8 = scmp.eq.s32.totalorder %s9783_s26, 0  ;;  %p11411_p11 = scmp.eq.s32.totalorder %s9939_s27, 0 }
 0x148   : > { %s11489_s3 = smov (!%p11409_p13, %s10071_s3), 15  ;;  %s5727_s30 = sshll.u32 %s11487_s16, 10 }
 0x149   : > { %s132_s17 = sadd.s32 1, %s11405_s6  ;;  %p139_p7 = scmp.ne.s32.totalorder %s11405_s6, %s11406_s9 }
 0x14a   : > { %p145_p1 = scmp.ne.s32.totalorder %s11406_s9, %s11407_s1  ;;  %s129_s4 = ssub.s32 %s11487_s16, %s11489_s3 }
 0x14b   : > { %s481_s0 = sand.u32 1, %s11405_s6   ;;  %p130_p12 = scmp.eq.s32.totalorder %s129_s4, 0 }
 0x14c   : > { %p141_p4 = por %p139_p7, %p11410_p8  ;;  %p10295_p5 = por %p145_p1, %p11411_p11 }
 0x14d   : > { %s5475_s15 = sshll.u32 %s481_s0, 6  ;;  %s11491_s6 = smov (!%p130_p12, %s11405_s6), %s132_s17 }
 0x14e   : > { %s11412_s13 = scalar_select %p10295_p5, 1, 0 }
 0x14f   : > { %s11413_s28 = sld [smem:[#allocation50_spill]]  ;;  %s483_s3 = scalar_lea.vmem [#allocation8], %s5475_s15 }
 0x150   : > { %s496_s9 = sshll.u32 %s483_s3, 4  ;;  %p11414_p2 = scmp.lt.s32.totalorder %s9783_s26, 4  ;;  %s10307_s9 = int_to_ptr.vmem [resolvable:$true] %s496_s9 }
 0x152   : > { %p10311_p6 = pnand %p11414_p2, %p141_p4 }
 0x154   : > { %p9577_p3 = pneg %p10311_p6 }
 0x155   : > { %s10305_s8 = scalar_lea.hbm %s11413_s28, %s5727_s30  ;;  %s9580_s0 = scalar_lea.hbm %s11413_s28, 16384 }
 0x156   : > { %s9575_s16 = scalar_lea.hbm %s10305_s8, 1024  ;;  %p9581_p7 = scmp.lt.u32.totalorder %s10305_s8, %s11413_s28 }
 0x157   : > { %p9576_p10 = scmp.ne.s32.totalorder %s10305_s8, %s9575_s16  ;;  %p9582_p1 = scmp.lt.u32.totalorder %s9580_s0, %s9575_s16 }
 0x158   : > { %p9584_p8 = scmp.lt.u32.totalorder %s9575_s16, %s10305_s8 }
 0x159   : > { %p9578_p9 = pnand %p9577_p3, %p9576_p10  ;;  %p9583_p12 = por %p9582_p1, %p9581_p7 }
 0x15b   : > { %p9579_p13 = pneg %p9578_p9  ;;  %p9585_p4 = por %p9584_p8, %p9583_p12 }
 0x15d   : > { %p9586_p11 = pnand %p9585_p4, %p9579_p13 }
 0x15f   : > { %9589 = shalt.err (!%p9586_p11)
}
 0x160   : > { %s9590_s10 = scalar_lea.vmem %s10307_s9, 1024  ;;  %s9804_s5 = smov [#allocation8]  }
 0x161   : > { %p9591_p2 = scmp.ne.s32.totalorder %s10307_s9, %s9590_s10  ;;  %s9595_s3 = sshll.u32 %s9804_s5, 4  ;;  %s9596_s3 = int_to_ptr.vmem [resolvable:$false] %s9595_s3 }
 0x162   : > { %s9597_s17 = scalar_lea.vmem %s9596_s3, 2048  ;;  %p9598_p5 = scmp.lt.s32.totalorder %s10307_s9, %s9596_s3 }
 0x163   : > { %p9593_p10 = pnand %p9591_p2, %p9577_p3  ;;  %p9599_p7 = scmp.lt.s32.totalorder %s9597_s17, %s9590_s10 }
 0x165   : > { %p9594_p9 = pneg %p9593_p10  ;;  %p9600_p1 = por %p9599_p7, %p9598_p5 }
 0x167   : > { %p9601_p12 = pnand %p9600_p1, %p9594_p9 }
 0x169   : > { %9604 = shalt.err (!%p9601_p12)
}
 0x16a   : > { %9153 = dma.hbm_to_vmem [thread:$0]  (!%p10311_p6), %s10305_s8, 1024, %s10307_s9, %s10097_s22, %s11388_s19, %s11388_s19, %s11387_s2  }
 0x16b   : > { %s11416_s16 = sld [smem:[#allocation38_spill]] }
 0x171   : > { %p11417_p3 = scmp.ne.s32.totalorder %s11416_s16, 0 }
 0x173   : > { %508 = sbr.rel (%p11417_p3) target bundleno = 1957 (0x7a5), region = 60 }
 0x17a   : > { %s11418_s4 = sld [smem:[#allocation34_spill]] }
 0x180   : > { %s10347_s0 = sand.u32 1, %s11418_s4  }
 0x181   : > { %s5481_s15 = sshll.u32 %s10347_s0, 8  ;;  %s511_s30 = scalar_lea.sflag [#allocation4], %s10347_s0 }
 0x182   : > { %s10353_s1 = scalar_lea.vmem [#allocation3], %s5481_s15 }
 0x183   : > { %9698 = dma.done.wait (%p10222_p0), %s511_s30, 4096  }
 0x184   : > { %9700 = vsyncadd (%p10222_p0), %s511_s30, 4294963200  ;;  %s11419_s22 = sld [smem:[#allocation32_spill]]  ;;  %s519_s19 = sand.u32 1, %s9939_s27  }
 0x185   : > { %s11420_s2 = sld [smem:[#allocation39_spill]]  ;;  %s520_s10 = scalar_lea.sflag [#allocation7], %s519_s19 }
 0x18a   : > { %s521_s8 = sand.u32 1, %s11419_s22  }
 0x18b   : > { %s5482_s9 = sshll.u32 %s521_s8, 6  ;;  %p11421_p5 = scmp.ne.s32.totalorder %s11420_s2, 0 }
 0x18c   : > { %s10361_s5 = scalar_lea.vmem [#allocation6], %s5482_s9 }
 0x18d   : > { %9702 = dma.done.wait (%p11421_p5), %s520_s10, 1024  }
 0x18e   : > { %9704 = vsyncadd (%p11421_p5), %s520_s10, 4294966272  ;;  %s11422_s3 = sld [smem:[#allocation30_spill]]  ;;  %p11423_p0 = scmp.ne.s32.totalorder %s11412_s13, 0 }
 0x194   : > { %s530_s17 = sand.u32 1, %s11422_s3  }
 0x195   : > { %s5483_s16 = sshll.u32 %s530_s17, 6 }
 0x196   : > { %s10368_s7 = scalar_lea.vmem [#allocation8], %s5483_s16 }
 0x197   : > { %9706 = dma.done.wait (%p11423_p0), %s520_s10, 1024  }
 0x198   : > { %9708 = vsyncadd (%p11423_p0), %s520_s10, 4294966272  ;;  %p11424_p6 = scmp.eq.s32.totalorder %s9939_s27, 0 }
 0x19a   : > { %9710 = dma.done.wait (%p11424_p6), [#allocation10], 2064   ;;  %p11425_p13 = pmov %p11424_p6 }
 0x19b   : > { %p11426_p8 = pmov %p11424_p6 }
 0x19c   : > { %9712 = vsyncadd (%p11425_p13), [#allocation10], 4294965232 }
 0x19d   : > { %9714 = dma.done.wait (%p11426_p8), [#allocation13], 55312   ;;  %p11427_p4 = pmov %p11424_p6 }
 0x19f   : > { %9716 = vsyncadd (%p11427_p4), [#allocation13], 4294911984  ;;  %p11428_p11 = pmov %p11427_p4 }
 0x1a0   : > { %p11429_p2 = pmov %p11427_p4 }
 0x1a1   : > { %9718 = dma.done.wait (%p11428_p11), [#allocation16], 2064  }
 0x1a2   : > { %9720 = vsyncadd (%p11429_p2), [#allocation16], 4294965232  ;;  %p11430_p10 = pmov %p11429_p2 }
 0x1a3   : > { %p11431_p9 = pmov %p11429_p2 }
 0x1a4   : > { %9722 = dma.done.wait (%p11430_p10), [#allocation19], 16  }
 0x1a5   : > { %9724 = vsyncadd (%p11431_p9), [#allocation19], 4294967280  ;;  %v10390_v0 = vld [vmem:[#allocation9] sm:$0xff]  ;;  %v10392_v1 = vld [vmem:[#allocation9 + $0x8] sm:$0xff]  ;;  %s10426_s27 = scalar_lea.vmem [#allocation20], %s5481_s15  ;;  %s10428_s13 = smov 0  }
 0x1a6   : > { %v10394_v2 = vld [vmem:[#allocation9 + $0x10] sm:$0xff]  ;;  %v10396_v3 = vld [vmem:[#allocation9 + $0x18] sm:$0xff]  ;;  %v10398_v4 = vld [vmem:[#allocation9 + $0x20] sm:$0xff] }
 0x1a7   : > { %v10400_v5 = vld [vmem:[#allocation9 + $0x28] sm:$0xff]  ;;  %v10402_v6 = vld [vmem:[#allocation9 + $0x30] sm:$0xff]  ;;  %v10404_v7 = vld [vmem:[#allocation9 + $0x38] sm:$0xff] }
 0x1a8   : > { %v10406_v8 = vld [vmem:[#allocation9 + $0x40] sm:$0xff]  ;;  %v10408_v9 = vld [vmem:[#allocation9 + $0x48] sm:$0xff]  ;;  %v10410_v10 = vld [vmem:[#allocation9 + $0x50] sm:$0xff] }
 0x1a9   : > { %v10412_v11 = vld [vmem:[#allocation9 + $0x58] sm:$0xff]  ;;  %v10414_v12 = vld [vmem:[#allocation9 + $0x60] sm:$0xff]  ;;  %v10416_v13 = vld [vmem:[#allocation9 + $0x68] sm:$0xff] }
 0x1aa   : > { %v10418_v14 = vld [vmem:[#allocation9 + $0x70] sm:$0xff]  ;;  %v10420_v15 = vld [vmem:[#allocation9 + $0x78] sm:$0xff]  ;;  %v10422_v16 = vld [vmem:[#allocation11] ss:$0 sm:$0xff] }
 0x1ab LB: >> { %v10435_v17 = vpack.c.bf16 %v10392_v1, %v10390_v0  ;;  %v10439_v18 = vpack.c.bf16 %v10396_v3, %v10394_v2  ;;  %s5492_s4 = sshll.u32 %s9787_s13, 6  ;;  %s5271_s15 = smul.u32 160, %s9787_s13  ;;  %v10454_v19 = vpack.c.bf16 %v10400_v5, %v10398_v4  ;;  %v9805_v22 = vmov 0.0   ;;  %s9787_s13 = sphi %s10428_s13, %s649_s13  }
 0x1ac   : >> { %s10448_s30 = scalar_lea.vmem %s10353_s1, %s5492_s4 [#allocation3]  ;;  %v10470_v23 = vpack.c.bf16 %v10404_v7, %v10402_v6  ;;  %v10478_v24 = vpack.c.bf16 %v10408_v9, %v10406_v8  ;;  %v10486_v25 = vpack.c.bf16 %v10412_v11, %v10410_v10  ;;  %v10494_v26 = vpack.c.bf16 %v10416_v13, %v10414_v12  ;;  %s649_s13 = sadd.s32 1, %s9787_s13  }
 0x1ad   : >> { %7839 = vmatprep.subr.bf16.mxu0 %v10435_v17  ;;  %8830 = vmatprep.subr.bf16.mxu1 %v10435_v17  ;;  %v652_v20 = vld [vmem:[%s10448_s30] sm:$0xff]  ;;  %s10458_s22 = scalar_lea.vmem [#allocation2], %s5271_s15  ;;  %v10502_v27 = vpack.c.bf16 %v10420_v15, %v10418_v14  ;;  %v653_v28 = vld [vmem:[%s10448_s30 + $0x8] sm:$0xff]  ;;  %v654_v30 = vld [vmem:[%s10448_s30 + $0x10] sm:$0xff]  ;;  %vm795_vm0 = vcmask 1040384   ;;  %p646_p7 = scmp.ge.s32.totalorder %s649_s13, 4  }
 0x1ae   : >> { %7841 = vmatpush3.bf16.msra.mxu0 %v10435_v17  ;;  %8838 = vmatpush3.bf16.msra.mxu1 %v10435_v17  ;;  %v656_v21 = vld [vmem:[%s10448_s30 + $0x20] sm:$0xff]  ;;  %5493 = vst [vmem:[%s10458_s22 + $0xa0] sm:$0xff] %v9805_v22  ;;  %5494 = vst [vmem:[%s10458_s22 + $0xa8] sm:$0x3] %v9805_v22  ;;  %v657_v29 = vld [vmem:[%s10448_s30 + $0x28] sm:$0xff]  ;;  %s11432_s2 = sld [smem:[#allocation36_spill]] (%p646_p7) }
 0x1af   : >> { %7843 = vmatprep.subr.bf16.mxu0 %v10439_v18  ;;  %8831 = vmatprep.subr.bf16.mxu1 %v10439_v18  ;;  %5511 = vst [vmem:[%s10458_s22 + $0x130] sm:$0xff] %v9805_v22  ;;  %5512 = vst [vmem:[%s10458_s22 + $0x138] sm:$0x3] %v9805_v22  ;;  %v658_v31 = vld [vmem:[%s10448_s30 + $0x30] sm:$0xff]  ;;  %v655_v32 = vld [vmem:[%s10448_s30 + $0x18] sm:$0xff] }
 0x1b0   : >> { %6506 = vmatprep.mubr.f32.mxu0 %v652_v20  ;;  %6512 = vmatprep.mubr.f32.mxu1 %v656_v21  ;;  %v659_v33 = vld [vmem:[%s10448_s30 + $0x38] sm:$0xff] }
 0x1b2   : >> { %7845 = vmatpush3.bf16.msra.mxu0 %v10439_v18  ;;  %8839 = vmatpush3.bf16.msra.mxu1 %v10439_v18 }
 0x1b3   : >> { %7847 = vmatprep.subr.bf16.mxu0 %v10454_v19  ;;  %8832 = vmatprep.subr.bf16.mxu1 %v10454_v19 }
 0x1b4   : > { %p5513_p1 = scmp.le.s32.totalorder (%p646_p7), %s11432_s2, 0 }
 0x1b6   : >> { %7849 = vmatpush3.bf16.msra.mxu0 %v10454_v19  ;;  %8840 = vmatpush3.bf16.msra.mxu1 %v10454_v19 }
 0x1b7   : >> { %7851 = vmatprep.subr.bf16.mxu0 %v10470_v23  ;;  %8833 = vmatprep.subr.bf16.mxu1 %v10470_v23 }
 0x1ba   : >> { %7853 = vmatpush3.bf16.msra.mxu0 %v10470_v23  ;;  %8841 = vmatpush3.bf16.msra.mxu1 %v10470_v23 }
 0x1bb   : >> { %7855 = vmatprep.subr.bf16.mxu0 %v10478_v24  ;;  %8834 = vmatprep.subr.bf16.mxu1 %v10478_v24 }
 0x1be   : >> { %7857 = vmatpush3.bf16.msra.mxu0 %v10478_v24  ;;  %8842 = vmatpush3.bf16.msra.mxu1 %v10478_v24 }
 0x1bf   : >> { %7859 = vmatprep.subr.bf16.mxu0 %v10486_v25  ;;  %8835 = vmatprep.subr.bf16.mxu1 %v10486_v25 }
 0x1c2   : >> { %7861 = vmatpush3.bf16.msra.mxu0 %v10486_v25  ;;  %8843 = vmatpush3.bf16.msra.mxu1 %v10486_v25 }
 0x1c3   : >> { %7863 = vmatprep.subr.bf16.mxu0 %v10494_v26  ;;  %8836 = vmatprep.subr.bf16.mxu1 %v10494_v26 }
 0x1c6   : >> { %7865 = vmatpush3.bf16.msra.mxu0 %v10494_v26  ;;  %8844 = vmatpush3.bf16.msra.mxu1 %v10494_v26 }
 0x1c7   : >> { %7867 = vmatprep.subr.bf16.mxu0 %v10502_v27  ;;  %8837 = vmatprep.subr.bf16.mxu1 %v10502_v27 }
 0x1ca   : >> { %7869 = vmatpush3.bf16.msra.mxu0 %v10502_v27  ;;  %8845 = vmatpush3.bf16.msra.mxu1 %v10502_v27 }
 0x1cd   : >> { %6507 = vmatmul.mubr.f32.vlgmr.msra.gmra.mrb[0].mxu0 %v653_v28  ;;  %6513 = vmatmul.mubr.f32.vlgmr.msra.gmra.mrb[0].mxu1 %v657_v29 }
 0x1ce   : >> { %6509 = vmatprep.mubr.f32.mxu0 %v654_v30  ;;  %6515 = vmatprep.mubr.f32.mxu1 %v658_v31 }
 0x1d1   : >> { %6510 = vmatmul.mubr.f32.gmra.mrb[2].mxu0 %v655_v32  ;;  %6516 = vmatmul.mubr.f32.gmra.mrb[2].mxu1 %v659_v33 }
 0x2a0   : >> { %v6508_v34 = vpop.f32.mrb[0].mxu0  ;;  %v6514_v35 = vpop.f32.mrb[0].mxu1 }
 0x2a1   : >> { %v738_v36 = vadd.f32 %v6508_v34, %v10422_v16  ;;  %v758_v37 = vadd.f32 %v6514_v35, %v10422_v16  ;;  %v732_v38 = vpop.f32.mrb[1].mxu0  ;;  %v752_v39 = vpop.f32.mrb[1].mxu1 }
 0x2a2   : >> { %v733_v40 = vadd.f32 %v10422_v16, %v732_v38  ;;  %v753_v41 = vadd.f32 %v10422_v16, %v752_v39 }
 0x2a3   : >> { %v780_v42 = vrot.slane %v738_v36, 7  ;;  %v784_v43 = vrot.slane %v758_v37, 7 }
 0x2a4   : >> { %v779_v44 = vrot.slane %v733_v40, 7  ;;  %v783_v45 = vrot.slane %v753_v41, 7  ;;  %v6511_v46 = vpop.f32.mrb[2].mxu0  ;;  %v6517_v47 = vpop.f32.mrb[2].mxu1 }
 0x2a5   : >> { %v797_v48 = vsel %vm795_vm0, 0.0, %v780_v42  ;;  %v805_v49 = vsel %vm795_vm0, %v780_v42, 0.0  ;;  %v801_v50 = vsel %vm795_vm0, 0.0, %v784_v43  ;;  %v809_v51 = vsel %vm795_vm0, %v784_v43, 0.0  ;;  %v742_v52 = vpop.f32.mrb[3].mxu0  ;;  %v762_v53 = vpop.f32.mrb[3].mxu1 }
 0x2a6   : >> { %5497 = vst [vmem:[%s10458_s22 + $0xc0] sm:$0xff] %v797_v48  ;;  %5498 = vst [vmem:[%s10458_s22 + $0xc8] sm:$0x3] %v805_v49  ;;  %v796_v54 = vsel %vm795_vm0, 0.0, %v779_v44  ;;  %v804_v55 = vsel %vm795_vm0, %v779_v44, 0.0  ;;  %v800_v56 = vsel %vm795_vm0, 0.0, %v783_v45  ;;  %v748_v58 = vadd.f32 %v6511_v46, %v10422_v16 }
 0x2a7   : >> { %5505 = vst [vmem:[%s10458_s22 + $0x100] sm:$0xff] %v801_v50  ;;  %5506 = vst [vmem:[%s10458_s22 + $0x108] sm:$0x3] %v809_v51  ;;  %v808_v57 = vsel %vm795_vm0, %v783_v45, 0.0  ;;  %v768_v59 = vadd.f32 %v6517_v47, %v10422_v16  ;;  %v743_v60 = vadd.f32 %v10422_v16, %v742_v52  ;;  %v763_v61 = vadd.f32 %v10422_v16, %v762_v53 }
 0x2a8   : >> { %5495 = vst [vmem:[%s10458_s22 + $0xb0] sm:$0xff] %v796_v54  ;;  %5496 = vst [vmem:[%s10458_s22 + $0xb8] sm:$0x3] %v804_v55  ;;  %v782_v62 = vrot.slane %v748_v58, 7  ;;  %648 = sbr.rel (!%p646_p7) target bundleno = 427 (0x1ab), region = 228 }
 0x2a9   : >> { %5503 = vst [vmem:[%s10458_s22 + $0xf0] sm:$0xff] %v800_v56  ;;  %5504 = vst [vmem:[%s10458_s22 + $0xf8] sm:$0x3] %v808_v57  ;;  %v786_v63 = vrot.slane %v768_v59, 7  ;;  %v781_v20 = vrot.slane %v743_v60, 7  ;;  %v785_v21 = vrot.slane %v763_v61, 7 }
 0x2aa   : >> { %v799_v22 = vsel %vm795_vm0, 0.0, %v782_v62  ;;  %v807_v28 = vsel %vm795_vm0, %v782_v62, 0.0 }
 0x2ab   : >> { %v803_v29 = vsel %vm795_vm0, 0.0, %v786_v63  ;;  %v811_v30 = vsel %vm795_vm0, %v786_v63, 0.0  ;;  %5501 = vst [vmem:[%s10458_s22 + $0xe0] sm:$0xff] %v799_v22  ;;  %5502 = vst [vmem:[%s10458_s22 + $0xe8] sm:$0x3] %v807_v28  ;;  %v798_v31 = vsel %vm795_vm0, 0.0, %v781_v20 }
 0x2ac   : >> { %5509 = vst [vmem:[%s10458_s22 + $0x120] sm:$0xff] %v803_v29  ;;  %5510 = vst [vmem:[%s10458_s22 + $0x128] sm:$0x3] %v811_v30  ;;  %v806_v32 = vsel %vm795_vm0, %v781_v20, 0.0  ;;  %v802_v33 = vsel %vm795_vm0, 0.0, %v785_v21  ;;  %v810_v34 = vsel %vm795_vm0, %v785_v21, 0.0 }
 0x2ad   : >> { %5499 = vst [vmem:[%s10458_s22 + $0xd0] sm:$0xff] %v798_v31  ;;  %5500 = vst [vmem:[%s10458_s22 + $0xd8] sm:$0x3] %v806_v32 }
 0x2ae   : >> { %5507 = vst [vmem:[%s10458_s22 + $0x110] sm:$0xff] %v802_v33  ;;  %5508 = vst [vmem:[%s10458_s22 + $0x118] sm:$0x3] %v810_v34 }
 0x2af   : > { %838 = sbr.rel (%p5513_p1) target bundleno = 945 (0x3b1), region = 111  ;;  %7871 = vmatprep.subr.bf16.mxu0 (!%p5513_p1), %v10435_v17  ;;  %8846 = vmatprep.subr.bf16.mxu1 (!%p5513_p1), %v10435_v17  ;;  %v839_v35 = vld [vmem:[%s10361_s5] sm:$0xff] (!%p5513_p1)  ;;  %v840_v0 = vld [vmem:[%s10361_s5 + $0x8] sm:$0xff] (!%p5513_p1)  ;;  %v841_v2 = vld [vmem:[%s10361_s5 + $0x10] sm:$0xff] (!%p5513_p1)  ;;  %v9806_v6 = vmov (!%p5513_p1), 0.0  }
 0x2b0   : > { %v843_v36 = vld [vmem:[%s10361_s5 + $0x20] sm:$0xff] (!%p5513_p1)  ;;  %7873 = vmatpush3.bf16.msra.mxu0 (!%p5513_p1), %v10435_v17  ;;  %8854 = vmatpush3.bf16.msra.mxu1 (!%p5513_p1), %v10435_v17  ;;  %v844_v1 = vld [vmem:[%s10361_s5 + $0x28] sm:$0xff] (!%p5513_p1)  ;;  %v845_v3 = vld [vmem:[%s10361_s5 + $0x30] sm:$0xff] (!%p5513_p1)  ;;  %999 = vst [vmem:[#allocation2] sm:$0xff] (!%p5513_p1), %v9806_v6 }
 0x2b1   : > { %7875 = vmatprep.subr.bf16.mxu0 (!%p5513_p1), %v10439_v18  ;;  %8847 = vmatprep.subr.bf16.mxu1 (!%p5513_p1), %v10439_v18  ;;  %v842_v4 = vld [vmem:[%s10361_s5 + $0x18] sm:$0xff] (!%p5513_p1)  ;;  %1000 = vst [vmem:[#allocation2 + $0x8] sm:$0x3] (!%p5513_p1), %v9806_v6  ;;  %1017 = vst [vmem:[#allocation2 + $0x90] sm:$0xff] (!%p5513_p1), %v9806_v6 }
 0x2b2   : > { %6550 = vmatprep.mubr.f32.mxu0 (!%p5513_p1), %v839_v35  ;;  %6556 = vmatprep.mubr.f32.mxu1 (!%p5513_p1), %v843_v36  ;;  %v846_v5 = vld [vmem:[%s10361_s5 + $0x38] sm:$0xff] (!%p5513_p1)  ;;  %1018 = vst [vmem:[#allocation2 + $0x98] sm:$0x3] (!%p5513_p1), %v9806_v6 }
 0x2b4   : > { %7877 = vmatpush3.bf16.msra.mxu0 (!%p5513_p1), %v10439_v18  ;;  %8855 = vmatpush3.bf16.msra.mxu1 (!%p5513_p1), %v10439_v18 }
 0x2b5   : > { %7879 = vmatprep.subr.bf16.mxu0 (!%p5513_p1), %v10454_v19  ;;  %8848 = vmatprep.subr.bf16.mxu1 (!%p5513_p1), %v10454_v19 }
 0x2b8   : > { %7881 = vmatpush3.bf16.msra.mxu0 %v10454_v19  ;;  %8856 = vmatpush3.bf16.msra.mxu1 %v10454_v19 }
 0x2b9   : > { %7883 = vmatprep.subr.bf16.mxu0 %v10470_v23  ;;  %8849 = vmatprep.subr.bf16.mxu1 %v10470_v23 }
 0x2bc   : > { %7885 = vmatpush3.bf16.msra.mxu0 %v10470_v23  ;;  %8857 = vmatpush3.bf16.msra.mxu1 %v10470_v23 }
 0x2bd   : > { %7887 = vmatprep.subr.bf16.mxu0 %v10478_v24  ;;  %8850 = vmatprep.subr.bf16.mxu1 %v10478_v24 }
 0x2c0   : > { %7889 = vmatpush3.bf16.msra.mxu0 %v10478_v24  ;;  %8858 = vmatpush3.bf16.msra.mxu1 %v10478_v24 }
 0x2c1   : > { %7891 = vmatprep.subr.bf16.mxu0 %v10486_v25  ;;  %8851 = vmatprep.subr.bf16.mxu1 %v10486_v25 }
 0x2c4   : > { %7893 = vmatpush3.bf16.msra.mxu0 %v10486_v25  ;;  %8859 = vmatpush3.bf16.msra.mxu1 %v10486_v25 }
 0x2c5   : > { %7895 = vmatprep.subr.bf16.mxu0 %v10494_v26  ;;  %8852 = vmatprep.subr.bf16.mxu1 %v10494_v26 }
 0x2c8   : > { %7897 = vmatpush3.bf16.msra.mxu0 %v10494_v26  ;;  %8860 = vmatpush3.bf16.msra.mxu1 %v10494_v26 }
 0x2c9   : > { %7899 = vmatprep.subr.bf16.mxu0 %v10502_v27  ;;  %8853 = vmatprep.subr.bf16.mxu1 %v10502_v27 }
 0x2cc   : > { %7901 = vmatpush3.bf16.msra.mxu0 %v10502_v27  ;;  %8861 = vmatpush3.bf16.msra.mxu1 %v10502_v27 }
 0x2cf   : > { %6551 = vmatmul.mubr.f32.vlgmr.msra.gmra.mrb[0].mxu0 %v840_v0  ;;  %6557 = vmatmul.mubr.f32.vlgmr.msra.gmra.mrb[0].mxu1 %v844_v1 }
 0x2d0   : > { %6553 = vmatprep.mubr.f32.mxu0 %v841_v2  ;;  %6559 = vmatprep.mubr.f32.mxu1 %v845_v3 }
 0x2d3   : > { %6554 = vmatmul.mubr.f32.gmra.mrb[2].mxu0 %v842_v4  ;;  %6560 = vmatmul.mubr.f32.gmra.mrb[2].mxu1 %v846_v5 }
 0x3a2   : > { %v6552_v7 = vpop.f32.mrb[0].mxu0  ;;  %v6558_v8 = vpop.f32.mrb[0].mxu1 }
 0x3a3   : > { %v925_v9 = vadd.f32 %v6552_v7, %v10422_v16  ;;  %v945_v10 = vadd.f32 %v6558_v8, %v10422_v16  ;;  %v919_v11 = vpop.f32.mrb[1].mxu0  ;;  %v939_v12 = vpop.f32.mrb[1].mxu1 }
 0x3a4   : > { %v920_v13 = vadd.f32 %v10422_v16, %v919_v11  ;;  %v940_v14 = vadd.f32 %v10422_v16, %v939_v12 }
 0x3a5   : > { %v967_v15 = vrot.slane %v925_v9, 7  ;;  %v971_v37 = vrot.slane %v945_v10, 7 }
 0x3a6   : > { %v966_v38 = vrot.slane %v920_v13, 7  ;;  %v970_v39 = vrot.slane %v940_v14, 7  ;;  %v6555_v40 = vpop.f32.mrb[2].mxu0  ;;  %v6561_v41 = vpop.f32.mrb[2].mxu1 }
 0x3a7   : > { %v984_v42 = vsel %vm795_vm0, 0.0, %v967_v15  ;;  %v992_v43 = vsel %vm795_vm0, %v967_v15, 0.0  ;;  %v988_v44 = vsel %vm795_vm0, 0.0, %v971_v37  ;;  %v996_v45 = vsel %vm795_vm0, %v971_v37, 0.0  ;;  %v929_v46 = vpop.f32.mrb[3].mxu0  ;;  %v949_v47 = vpop.f32.mrb[3].mxu1 }
 0x3a8   : > { %1003 = vst [vmem:[#allocation2 + $0x20] sm:$0xff] %v984_v42  ;;  %1004 = vst [vmem:[#allocation2 + $0x28] sm:$0x3] %v992_v43  ;;  %v983_v48 = vsel %vm795_vm0, 0.0, %v966_v38  ;;  %v991_v49 = vsel %vm795_vm0, %v966_v38, 0.0  ;;  %v987_v50 = vsel %vm795_vm0, 0.0, %v970_v39  ;;  %v935_v52 = vadd.f32 %v6555_v40, %v10422_v16 }
 0x3a9   : > { %1011 = vst [vmem:[#allocation2 + $0x60] sm:$0xff] %v988_v44  ;;  %1012 = vst [vmem:[#allocation2 + $0x68] sm:$0x3] %v996_v45  ;;  %v995_v51 = vsel %vm795_vm0, %v970_v39, 0.0  ;;  %v955_v53 = vadd.f32 %v6561_v41, %v10422_v16  ;;  %v930_v54 = vadd.f32 %v10422_v16, %v929_v46  ;;  %v950_v55 = vadd.f32 %v10422_v16, %v949_v47 }
 0x3aa   : > { %1001 = vst [vmem:[#allocation2 + $0x10] sm:$0xff] %v983_v48  ;;  %1002 = vst [vmem:[#allocation2 + $0x18] sm:$0x3] %v991_v49  ;;  %v969_v56 = vrot.slane %v935_v52, 7 }
 0x3ab   : > { %1009 = vst [vmem:[#allocation2 + $0x50] sm:$0xff] %v987_v50  ;;  %1010 = vst [vmem:[#allocation2 + $0x58] sm:$0x3] %v995_v51  ;;  %v973_v57 = vrot.slane %v955_v53, 7  ;;  %v968_v58 = vrot.slane %v930_v54, 7  ;;  %v972_v59 = vrot.slane %v950_v55, 7 }
 0x3ac   : > { %v986_v60 = vsel %vm795_vm0, 0.0, %v969_v56  ;;  %v994_v61 = vsel %vm795_vm0, %v969_v56, 0.0 }
 0x3ad   : > { %v990_v62 = vsel %vm795_vm0, 0.0, %v973_v57  ;;  %v998_v63 = vsel %vm795_vm0, %v973_v57, 0.0  ;;  %1007 = vst [vmem:[#allocation2 + $0x40] sm:$0xff] %v986_v60  ;;  %1008 = vst [vmem:[#allocation2 + $0x48] sm:$0x3] %v994_v61  ;;  %v985_v20 = vsel %vm795_vm0, 0.0, %v968_v58 }
 0x3ae   : > { %1015 = vst [vmem:[#allocation2 + $0x80] sm:$0xff] %v990_v62  ;;  %1016 = vst [vmem:[#allocation2 + $0x88] sm:$0x3] %v998_v63  ;;  %v993_v21 = vsel %vm795_vm0, %v968_v58, 0.0  ;;  %v989_v22 = vsel %vm795_vm0, 0.0, %v972_v59  ;;  %v997_v28 = vsel %vm795_vm0, %v972_v59, 0.0 }
 0x3af   : > { %1005 = vst [vmem:[#allocation2 + $0x30] sm:$0xff] %v985_v20  ;;  %1006 = vst [vmem:[#allocation2 + $0x38] sm:$0x3] %v993_v21 }
 0x3b0   : > { %1013 = vst [vmem:[#allocation2 + $0x70] sm:$0xff] %v989_v22  ;;  %1014 = vst [vmem:[#allocation2 + $0x78] sm:$0x3] %v997_v28 }
 0x3b1 PF: > { %s11433_s19 = sld [smem:[#allocation36_spill]] }
 0x3b7   : > { %p5514_p12 = scmp.ne.s32.totalorder %s11433_s19, 0 }
 0x3b8   : > { %v9807_v29 = vmov (!%p5514_p12), 0.0  }
 0x3b9   : > { %1022 = sbr.rel (%p5514_p12) target bundleno = 963 (0x3c3), region = 115  ;;  %1023 = vst [vmem:[#allocation2] sm:$0xff] (!%p5514_p12), %v9807_v29  ;;  %1024 = vst [vmem:[#allocation2 + $0x8] sm:$0x3] (!%p5514_p12), %v9807_v29 }
 0x3ba   : > { %1025 = vst [vmem:[#allocation2 + $0x10] sm:$0xff] (!%p5514_p12), %v9807_v29  ;;  %1026 = vst [vmem:[#allocation2 + $0x18] sm:$0x3] (!%p5514_p12), %v9807_v29 }
 0x3bb   : > { %1027 = vst [vmem:[#allocation2 + $0x20] sm:$0xff] (!%p5514_p12), %v9807_v29  ;;  %1028 = vst [vmem:[#allocation2 + $0x28] sm:$0x3] (!%p5514_p12), %v9807_v29 }
 0x3bc   : > { %1029 = vst [vmem:[#allocation2 + $0x30] sm:$0xff] (!%p5514_p12), %v9807_v29  ;;  %1030 = vst [vmem:[#allocation2 + $0x38] sm:$0x3] (!%p5514_p12), %v9807_v29 }
 0x3bd   : > { %1031 = vst [vmem:[#allocation2 + $0x40] sm:$0xff] (!%p5514_p12), %v9807_v29  ;;  %1032 = vst [vmem:[#allocation2 + $0x48] sm:$0x3] (!%p5514_p12), %v9807_v29 }
 0x3be   : > { %1033 = vst [vmem:[#allocation2 + $0x50] sm:$0xff] (!%p5514_p12), %v9807_v29  ;;  %1034 = vst [vmem:[#allocation2 + $0x58] sm:$0x3] (!%p5514_p12), %v9807_v29 }
 0x3bf   : > { %1035 = vst [vmem:[#allocation2 + $0x60] sm:$0xff] (!%p5514_p12), %v9807_v29  ;;  %1036 = vst [vmem:[#allocation2 + $0x68] sm:$0x3] (!%p5514_p12), %v9807_v29 }
 0x3c0   : > { %1037 = vst [vmem:[#allocation2 + $0x70] sm:$0xff] %v9807_v29  ;;  %1038 = vst [vmem:[#allocation2 + $0x78] sm:$0x3] %v9807_v29 }
 0x3c1   : > { %1039 = vst [vmem:[#allocation2 + $0x80] sm:$0xff] %v9807_v29  ;;  %1040 = vst [vmem:[#allocation2 + $0x88] sm:$0x3] %v9807_v29 }
 0x3c2   : > { %1041 = vst [vmem:[#allocation2 + $0x90] sm:$0xff] %v9807_v29  ;;  %1042 = vst [vmem:[#allocation2 + $0x98] sm:$0x3] %v9807_v29 }
 0x3c3 PF: > { %s11434_s8 = sld [smem:[#allocation36_spill]] }
 0x3c9   : > { %p5515_p3 = scmp.ge.s32.totalorder %s11434_s8, 1 }
 0x3ca   : > { %7903 = vmatprep.subr.bf16.mxu0 (!%p5515_p3), %v10435_v17  ;;  %8862 = vmatprep.subr.bf16.mxu1 (!%p5515_p3), %v10435_v17  ;;  %v1047_v30 = vld [vmem:[%s10368_s7] sm:$0xff] (!%p5515_p3) }
 0x3cb   : > { %1046 = sbr.rel (%p5515_p3) target bundleno = 1228 (0x4cc), region = 119  ;;  %v1051_v31 = vld [vmem:[%s10368_s7 + $0x20] sm:$0xff] (!%p5515_p3)  ;;  %7905 = vmatpush3.bf16.msra.mxu0 (!%p5515_p3), %v10435_v17  ;;  %8870 = vmatpush3.bf16.msra.mxu1 (!%p5515_p3), %v10435_v17  ;;  %v1048_v17 = vld [vmem:[%s10368_s7 + $0x8] sm:$0xff] (!%p5515_p3) }
 0x3cc   : > { %7907 = vmatprep.subr.bf16.mxu0 (!%p5515_p3), %v10439_v18  ;;  %8863 = vmatprep.subr.bf16.mxu1 (!%p5515_p3), %v10439_v18 }
 0x3cd   : > { %6594 = vmatprep.mubr.f32.mxu0 (!%p5515_p3), %v1047_v30  ;;  %6600 = vmatprep.mubr.f32.mxu1 (!%p5515_p3), %v1051_v31 }
 0x3cf   : > { %7909 = vmatpush3.bf16.msra.mxu0 (!%p5515_p3), %v10439_v18  ;;  %8871 = vmatpush3.bf16.msra.mxu1 (!%p5515_p3), %v10439_v18  ;;  %v1052_v18 = vld [vmem:[%s10368_s7 + $0x28] sm:$0xff] (!%p5515_p3) }
 0x3d0   : > { %7911 = vmatprep.subr.bf16.mxu0 (!%p5515_p3), %v10454_v19  ;;  %8864 = vmatprep.subr.bf16.mxu1 (!%p5515_p3), %v10454_v19 }
 0x3d3   : > { %7913 = vmatpush3.bf16.msra.mxu0 %v10454_v19  ;;  %8872 = vmatpush3.bf16.msra.mxu1 %v10454_v19  ;;  %v1049_v19 = vld [vmem:[%s10368_s7 + $0x10] sm:$0xff] }
 0x3d4   : > { %7915 = vmatprep.subr.bf16.mxu0 %v10470_v23  ;;  %8865 = vmatprep.subr.bf16.mxu1 %v10470_v23 }
 0x3d7   : > { %7917 = vmatpush3.bf16.msra.mxu0 %v10470_v23  ;;  %8873 = vmatpush3.bf16.msra.mxu1 %v10470_v23  ;;  %v1053_v23 = vld [vmem:[%s10368_s7 + $0x30] sm:$0xff] }
 0x3d8   : > { %7919 = vmatprep.subr.bf16.mxu0 %v10478_v24  ;;  %8866 = vmatprep.subr.bf16.mxu1 %v10478_v24 }
 0x3db   : > { %7921 = vmatpush3.bf16.msra.mxu0 %v10478_v24  ;;  %8874 = vmatpush3.bf16.msra.mxu1 %v10478_v24  ;;  %v1050_v24 = vld [vmem:[%s10368_s7 + $0x18] sm:$0xff] }
 0x3dc   : > { %7923 = vmatprep.subr.bf16.mxu0 %v10486_v25  ;;  %8867 = vmatprep.subr.bf16.mxu1 %v10486_v25 }
 0x3df   : > { %7925 = vmatpush3.bf16.msra.mxu0 %v10486_v25  ;;  %8875 = vmatpush3.bf16.msra.mxu1 %v10486_v25  ;;  %v1054_v25 = vld [vmem:[%s10368_s7 + $0x38] sm:$0xff] }
 0x3e0   : > { %7927 = vmatprep.subr.bf16.mxu0 %v10494_v26  ;;  %8868 = vmatprep.subr.bf16.mxu1 %v10494_v26 }
 0x3e3   : > { %7929 = vmatpush3.bf16.msra.mxu0 %v10494_v26  ;;  %8876 = vmatpush3.bf16.msra.mxu1 %v10494_v26  ;;  %v9808_v26 = vmov 0.0  }
 0x3e4   : > { %7931 = vmatprep.subr.bf16.mxu0 %v10502_v27  ;;  %8869 = vmatprep.subr.bf16.mxu1 %v10502_v27  ;;  %1208 = vst [vmem:[#allocation2 + $0x320] sm:$0xff] %v9808_v26  ;;  %1209 = vst [vmem:[#allocation2 + $0x328] sm:$0x3] %v9808_v26 }
 0x3e5   : > { %1226 = vst [vmem:[#allocation2 + $0x3b0] sm:$0xff] %v9808_v26  ;;  %1227 = vst [vmem:[#allocation2 + $0x3b8] sm:$0x3] %v9808_v26 }
 0x3e7   : > { %7933 = vmatpush3.bf16.msra.mxu0 %v10502_v27  ;;  %8877 = vmatpush3.bf16.msra.mxu1 %v10502_v27 }
 0x3ea   : > { %6595 = vmatmul.mubr.f32.vlgmr.msra.gmra.mrb[0].mxu0 %v1048_v17  ;;  %6601 = vmatmul.mubr.f32.vlgmr.msra.gmra.mrb[0].mxu1 %v1052_v18 }
 0x3eb   : > { %6597 = vmatprep.mubr.f32.mxu0 %v1049_v19  ;;  %6603 = vmatprep.mubr.f32.mxu1 %v1053_v23 }
 0x3ee   : > { %6598 = vmatmul.mubr.f32.gmra.mrb[2].mxu0 %v1050_v24  ;;  %6604 = vmatmul.mubr.f32.gmra.mrb[2].mxu1 %v1054_v25 }
 0x4bd   : > { %v6596_v32 = vpop.f32.mrb[0].mxu0  ;;  %v6602_v33 = vpop.f32.mrb[0].mxu1 }
 0x4be   : > { %v1133_v27 = vadd.f32 %v6596_v32, %v10422_v16  ;;  %v1153_v34 = vadd.f32 %v6602_v33, %v10422_v16  ;;  %v1127_v35 = vpop.f32.mrb[1].mxu0  ;;  %v1147_v36 = vpop.f32.mrb[1].mxu1 }
 0x4bf   : > { %v1128_v0 = vadd.f32 %v10422_v16, %v1127_v35  ;;  %v1148_v1 = vadd.f32 %v10422_v16, %v1147_v36 }
 0x4c0   : > { %v1175_v2 = vrot.slane %v1133_v27, 7  ;;  %v1179_v3 = vrot.slane %v1153_v34, 7 }
 0x4c1   : > { %v1174_v4 = vrot.slane %v1128_v0, 7  ;;  %v1178_v5 = vrot.slane %v1148_v1, 7  ;;  %v6599_v6 = vpop.f32.mrb[2].mxu0  ;;  %v6605_v7 = vpop.f32.mrb[2].mxu1 }
 0x4c2   : > { %v1192_v8 = vsel %vm795_vm0, 0.0, %v1175_v2  ;;  %v1200_v9 = vsel %vm795_vm0, %v1175_v2, 0.0  ;;  %v1196_v10 = vsel %vm795_vm0, 0.0, %v1179_v3  ;;  %v1204_v11 = vsel %vm795_vm0, %v1179_v3, 0.0  ;;  %v1137_v12 = vpop.f32.mrb[3].mxu0  ;;  %v1157_v13 = vpop.f32.mrb[3].mxu1 }
 0x4c3   : > { %1212 = vst [vmem:[#allocation2 + $0x340] sm:$0xff] %v1192_v8  ;;  %1213 = vst [vmem:[#allocation2 + $0x348] sm:$0x3] %v1200_v9  ;;  %v1191_v14 = vsel %vm795_vm0, 0.0, %v1174_v4  ;;  %v1199_v15 = vsel %vm795_vm0, %v1174_v4, 0.0  ;;  %v1195_v37 = vsel %vm795_vm0, 0.0, %v1178_v5  ;;  %v1143_v39 = vadd.f32 %v6599_v6, %v10422_v16 }
 0x4c4   : > { %1220 = vst [vmem:[#allocation2 + $0x380] sm:$0xff] %v1196_v10  ;;  %1221 = vst [vmem:[#allocation2 + $0x388] sm:$0x3] %v1204_v11  ;;  %v1203_v38 = vsel %vm795_vm0, %v1178_v5, 0.0  ;;  %v1163_v40 = vadd.f32 %v6605_v7, %v10422_v16  ;;  %v1138_v41 = vadd.f32 %v10422_v16, %v1137_v12  ;;  %v1158_v42 = vadd.f32 %v10422_v16, %v1157_v13 }
 0x4c5   : > { %1210 = vst [vmem:[#allocation2 + $0x330] sm:$0xff] %v1191_v14  ;;  %1211 = vst [vmem:[#allocation2 + $0x338] sm:$0x3] %v1199_v15  ;;  %v1177_v43 = vrot.slane %v1143_v39, 7 }
 0x4c6   : > { %1218 = vst [vmem:[#allocation2 + $0x370] sm:$0xff] %v1195_v37  ;;  %1219 = vst [vmem:[#allocation2 + $0x378] sm:$0x3] %v1203_v38  ;;  %v1181_v44 = vrot.slane %v1163_v40, 7  ;;  %v1176_v45 = vrot.slane %v1138_v41, 7  ;;  %v1180_v46 = vrot.slane %v1158_v42, 7 }
 0x4c7   : > { %v1194_v47 = vsel %vm795_vm0, 0.0, %v1177_v43  ;;  %v1202_v48 = vsel %vm795_vm0, %v1177_v43, 0.0 }
 0x4c8   : > { %v1198_v49 = vsel %vm795_vm0, 0.0, %v1181_v44  ;;  %v1206_v50 = vsel %vm795_vm0, %v1181_v44, 0.0  ;;  %1216 = vst [vmem:[#allocation2 + $0x360] sm:$0xff] %v1194_v47  ;;  %1217 = vst [vmem:[#allocation2 + $0x368] sm:$0x3] %v1202_v48  ;;  %v1193_v51 = vsel %vm795_vm0, 0.0, %v1176_v45 }
 0x4c9   : > { %1224 = vst [vmem:[#allocation2 + $0x3a0] sm:$0xff] %v1198_v49  ;;  %1225 = vst [vmem:[#allocation2 + $0x3a8] sm:$0x3] %v1206_v50  ;;  %v1201_v16 = vsel %vm795_vm0, %v1176_v45, 0.0  ;;  %v1197_v52 = vsel %vm795_vm0, 0.0, %v1180_v46  ;;  %v1205_v53 = vsel %vm795_vm0, %v1180_v46, 0.0 }
 0x4ca   : > { %1214 = vst [vmem:[#allocation2 + $0x350] sm:$0xff] %v1193_v51  ;;  %1215 = vst [vmem:[#allocation2 + $0x358] sm:$0x3] %v1201_v16 }
 0x4cb   : > { %1222 = vst [vmem:[#allocation2 + $0x390] sm:$0xff] %v1197_v52  ;;  %1223 = vst [vmem:[#allocation2 + $0x398] sm:$0x3] %v1205_v53 }
 0x4cc PF: > { %s11435_s9 = sld [smem:[#allocation36_spill]] }
 0x4d2   : > { %p5516_p5 = scmp.ne.s32.totalorder %s11435_s9, 1 }
 0x4d3   : > { %v9809_v54 = vmov (!%p5516_p5), 0.0  }
 0x4d4   : > { %1231 = sbr.rel (%p5516_p5) target bundleno = 1246 (0x4de), region = 123  ;;  %1233 = vst [vmem:[#allocation2 + $0x320] sm:$0xff] (!%p5516_p5), %v9809_v54  ;;  %1234 = vst [vmem:[#allocation2 + $0x328] sm:$0x3] (!%p5516_p5), %v9809_v54 }
 0x4d5   : > { %1235 = vst [vmem:[#allocation2 + $0x330] sm:$0xff] (!%p5516_p5), %v9809_v54  ;;  %1236 = vst [vmem:[#allocation2 + $0x338] sm:$0x3] (!%p5516_p5), %v9809_v54 }
 0x4d6   : > { %1237 = vst [vmem:[#allocation2 + $0x340] sm:$0xff] (!%p5516_p5), %v9809_v54  ;;  %1238 = vst [vmem:[#allocation2 + $0x348] sm:$0x3] (!%p5516_p5), %v9809_v54 }
 0x4d7   : > { %1239 = vst [vmem:[#allocation2 + $0x350] sm:$0xff] (!%p5516_p5), %v9809_v54  ;;  %1240 = vst [vmem:[#allocation2 + $0x358] sm:$0x3] (!%p5516_p5), %v9809_v54 }
 0x4d8   : > { %1241 = vst [vmem:[#allocation2 + $0x360] sm:$0xff] (!%p5516_p5), %v9809_v54  ;;  %1242 = vst [vmem:[#allocation2 + $0x368] sm:$0x3] (!%p5516_p5), %v9809_v54 }
 0x4d9   : > { %1243 = vst [vmem:[#allocation2 + $0x370] sm:$0xff] (!%p5516_p5), %v9809_v54  ;;  %1244 = vst [vmem:[#allocation2 + $0x378] sm:$0x3] (!%p5516_p5), %v9809_v54 }
 0x4da   : > { %1245 = vst [vmem:[#allocation2 + $0x380] sm:$0xff] (!%p5516_p5), %v9809_v54  ;;  %1246 = vst [vmem:[#allocation2 + $0x388] sm:$0x3] (!%p5516_p5), %v9809_v54 }
 0x4db   : > { %1247 = vst [vmem:[#allocation2 + $0x390] sm:$0xff] %v9809_v54  ;;  %1248 = vst [vmem:[#allocation2 + $0x398] sm:$0x3] %v9809_v54 }
 0x4dc   : > { %1249 = vst [vmem:[#allocation2 + $0x3a0] sm:$0xff] %v9809_v54  ;;  %1250 = vst [vmem:[#allocation2 + $0x3a8] sm:$0x3] %v9809_v54 }
 0x4dd   : > { %1251 = vst [vmem:[#allocation2 + $0x3b0] sm:$0xff] %v9809_v54  ;;  %1252 = vst [vmem:[#allocation2 + $0x3b8] sm:$0x3] %v9809_v54 }
 0x4de PF: > { %v10691_v55 = vld [vmem:[#allocation14] ss:$0 sm:$0xff]  ;;  %v10693_v56 = vld [vmem:[#allocation15] ss:$0 sm:$0xff]  ;;  %v10695_v57 = vld [vmem:[#allocation17] sm:$0xff]  ;;  %s10729_s10 = smov 0  }
 0x4df   : > { %11436 = vst [vmem:[#allocation40_spill] sm:$0xff] %v10691_v55  ;;  %11437 = vst [vmem:[#allocation41_spill] sm:$0xff] %v10693_v56  ;;  %v10697_v58 = vld [vmem:[#allocation17 + $0x8] sm:$0xff]  ;;  %v10699_v59 = vld [vmem:[#allocation17 + $0x10] sm:$0xff] }
 0x4e0   : > { %v10701_v60 = vld [vmem:[#allocation17 + $0x18] sm:$0xff]  ;;  %v10703_v61 = vld [vmem:[#allocation17 + $0x20] sm:$0xff]  ;;  %v10705_v62 = vld [vmem:[#allocation17 + $0x28] sm:$0xff] }
 0x4e1   : > { %v10707_v63 = vld [vmem:[#allocation17 + $0x30] sm:$0xff]  ;;  %v10709_v20 = vld [vmem:[#allocation17 + $0x38] sm:$0xff]  ;;  %v10711_v21 = vld [vmem:[#allocation17 + $0x40] sm:$0xff] }
 0x4e2   : > { %v10713_v22 = vld [vmem:[#allocation17 + $0x48] sm:$0xff]  ;;  %v10715_v28 = vld [vmem:[#allocation17 + $0x50] sm:$0xff]  ;;  %v10717_v29 = vld [vmem:[#allocation17 + $0x58] sm:$0xff] }
 0x4e3   : > { %11438 = vst [vmem:[#allocation42_spill] sm:$0xff] %v10717_v29  ;;  %v10719_v30 = vld [vmem:[#allocation17 + $0x60] sm:$0xff]  ;;  %v10721_v31 = vld [vmem:[#allocation17 + $0x68] sm:$0xff]  ;;  %v10723_v17 = vld [vmem:[#allocation17 + $0x70] sm:$0xff] }
 0x4e4   : > { %11439 = vst [vmem:[#allocation43_spill] sm:$0xff] %v10719_v30  ;;  %11440 = vst [vmem:[#allocation44_spill] sm:$0xff] %v10721_v31  ;;  %v10725_v18 = vld [vmem:[#allocation17 + $0x78] sm:$0xff]  ;;  %v10727_v19 = vld [vmem:[#allocation18] ss:$0 sm:$0xff] }
 0x4e5   : > { %11441 = vst [vmem:[#allocation45_spill] sm:$0xff] %v10723_v17  ;;  %11442 = vst [vmem:[#allocation46_spill] sm:$0xff] %v10725_v18 }
 0x4e6   : > { %11443 = vst [vmem:[#allocation47_spill] sm:$0xff] %v10727_v19 }
 0x4e7 LB: >> { %v1313_v23 = vld [vmem:[#allocation12 + $0x80] sm:$0xff]  ;;  %v1314_v24 = vld [vmem:[#allocation12 + $0x88] sm:$0xff]  ;;  %v1315_v33 = vld [vmem:[#allocation12 + $0x90] sm:$0xff]  ;;  %s1278_s5 = smul.u32 160, %s9791_s10  ;;  %s5711_s17 = sshll.u32 %s9791_s10, 6  ;;  %s9791_s10 = sphi %s10729_s10, %s1277_s10  }
 0x4e8   : >> { %v3075_v25 = vld [vmem:[#allocation12 + $0x680] sm:$0xff]  ;;  %v7934_v26 = vpack.c.bf16 %v1314_v24, %v1313_v23  ;;  %v3076_v32 = vld [vmem:[#allocation12 + $0x688] sm:$0xff]  ;;  %v1316_v27 = vld [vmem:[#allocation12 + $0x98] sm:$0xff]  ;;  %s11159_s16 = scalar_lea.vmem %s10353_s1, %s5711_s17 [#allocation3]  ;;  %s11201_s7 = scalar_lea.vmem %s10426_s27, %s5711_s17 [#allocation20] }
 0x4e9   : >> { %v8350_v34 = vpack.c.bf16 %v3076_v32, %v3075_v25  ;;  %v7938_v35 = vpack.c.bf16 %v1316_v27, %v1315_v33  ;;  %v3077_v36 = vld [vmem:[#allocation12 + $0x690] sm:$0xff]  ;;  %v3078_v0 = vld [vmem:[#allocation12 + $0x698] sm:$0xff]  ;;  %v1317_v1 = vld [vmem:[#allocation12 + $0xa0] sm:$0xff]  ;;  %s10735_s3 = scalar_lea.vmem [#allocation2], %s1278_s5  ;;  %s1277_s10 = sadd.s32 1, %s9791_s10  }
 0x4ea   : >> { %7935 = vmatprep.subr.bf16.mxu1 %v7934_v26  ;;  %v8354_v2 = vpack.c.bf16 %v3078_v0, %v3077_v36  ;;  %v1318_v3 = vld [vmem:[#allocation12 + $0xa8] sm:$0xff]  ;;  %v3079_v4 = vld [vmem:[#allocation12 + $0x6a0] sm:$0xff]  ;;  %v1319_v8 = vld [vmem:[#allocation12 + $0xb0] sm:$0xff]  ;;  %p1274_p0 = scmp.ge.s32.totalorder %s1277_s10, 4  }
 0x4eb   : >> { %v3080_v5 = vld [vmem:[#allocation12 + $0x6a8] sm:$0xff]  ;;  %8351 = vmatprep.subr.bf16.mxu0 %v8350_v34  ;;  %7937 = vmatpush3.bf16.msra.mxu1 %v7934_v26  ;;  %v7942_v6 = vpack.c.bf16 %v1318_v3, %v1317_v1  ;;  %v1320_v9 = vld [vmem:[#allocation12 + $0xb8] sm:$0xff]  ;;  %v3081_v10 = vld [vmem:[#allocation12 + $0x6b0] sm:$0xff]  ;;  %s11452_s13 = sld [smem:[#allocation37_spill]] (%p1274_p0)  ;;  %s11453_s4 = sld [smem:[#allocation36_spill]] (%p1274_p0) }
 0x4ec   : >> { %8353 = vmatpush3.bf16.msra.mxu0 %v8350_v34  ;;  %7939 = vmatprep.subr.bf16.mxu1 %v7938_v35  ;;  %v8358_v7 = vpack.c.bf16 %v3080_v5, %v3079_v4  ;;  %v3082_v11 = vld [vmem:[#allocation12 + $0x6b8] sm:$0xff]  ;;  %v7946_v12 = vpack.c.bf16 %v1320_v9, %v1319_v8  ;;  %v1321_v14 = vld [vmem:[#allocation12 + $0xc0] sm:$0xff]  ;;  %v1322_v15 = vld [vmem:[#allocation12 + $0xc8] sm:$0xff]  ;;  %s5197_s22 = sshll.u32 (%p1274_p0), %s10426_s27, 4  ;;  %s11454_s9 = sld [smem:[#allocation58_spill]] (%p1274_p0)  ;;  %s11233_s22 = int_to_ptr.vmem [resolvable:$true] %s5197_s22 }
 0x4ed   : >> { %8355 = vmatprep.subr.bf16.mxu0 %v8354_v2  ;;  %v8362_v13 = vpack.c.bf16 %v3082_v11, %v3081_v10  ;;  %v1304_v37 = vld [vmem:[%s10735_s3 + $0x1] sm:$0xff]  ;;  %v3084_v39 = vld [vmem:[#allocation12 + $0x6c8] sm:$0xff]  ;;  %v7950_v41 = vpack.c.bf16 %v1322_v15, %v1321_v14  ;;  %v1323_v43 = vld [vmem:[#allocation12 + $0xd0] sm:$0xff]  ;;  %s5182_s10 = scalar_lea.sflag (%p1274_p0), [#allocation5], %s10347_s0  ;;  %s9605_s1 = scalar_lea.vmem (%p1274_p0), %s11233_s22, 4096 }
 0x4ee   : >> { %v3083_v38 = vld [vmem:[#allocation12 + $0x6c0] sm:$0xff]  ;;  %6638 = vmatprep.mubr.f32.mxu1 %v1304_v37  ;;  %v5597_v40 = vld [vmem:[%s10735_s3 + $0xb1] sm:$0xff]  ;;  %v1324_v44 = vld [vmem:[#allocation12 + $0xd8] sm:$0xff]  ;;  %p9606_p6 = scmp.ne.s32.totalorder (%p1274_p0), %s11233_s22, %s9605_s1  ;;  %p11455_p13 = scmp.ne.s32.totalorder (%p1274_p0), %s11400_s14, 0 }
 0x4ef   : >> { %7941 = vmatpush3.bf16.msra.mxu1 %v7938_v35  ;;  %7210 = vmatprep.mubr.f32.mxu0 %v5597_v40  ;;  %v8366_v42 = vpack.c.bf16 %v3084_v39, %v3083_v38  ;;  %v3085_v45 = vld [vmem:[#allocation12 + $0x6d0] sm:$0xff]  ;;  %v3086_v46 = vld [vmem:[#allocation12 + $0x6d8] sm:$0xff]  ;;  %v7954_v47 = vpack.c.bf16 %v1324_v44, %v1323_v43  ;;  %v1325_v49 = vld [vmem:[#allocation12 + $0xe0] sm:$0xff] }
 0x4f0   : >> { %8357 = vmatpush3.bf16.msra.mxu0 %v8354_v2  ;;  %7943 = vmatprep.subr.bf16.mxu1 %v7942_v6  ;;  %v8370_v48 = vpack.c.bf16 %v3086_v46, %v3085_v45  ;;  %v1326_v50 = vld [vmem:[#allocation12 + $0xe8] sm:$0xff]  ;;  %v3087_v51 = vld [vmem:[#allocation12 + $0x6e0] sm:$0xff]  ;;  %v1327_v54 = vld [vmem:[#allocation12 + $0xf0] sm:$0xff]  ;;  %p9607_p8 = pnand (%p1274_p0), %p9606_p6, %p11455_p13 }
 0x4f1   : >> { %8359 = vmatprep.subr.bf16.mxu0 %v8358_v7  ;;  %v3088_v16 = vld [vmem:[#allocation12 + $0x6e8] sm:$0xff]  ;;  %v7958_v52 = vpack.c.bf16 %v1326_v50, %v1325_v49  ;;  %v1328_v23 = vld [vmem:[#allocation12 + $0xf8] sm:$0xff]  ;;  %v3089_v24 = vld [vmem:[#allocation12 + $0x6f0] sm:$0xff]  ;;  %s5714_s15 = sshll.u32 (%p1274_p0), %s11452_s13, 1 }
 0x4f2   : >> { %v8374_v53 = vpack.c.bf16 %v3088_v16, %v3087_v51  ;;  %v3090_v25 = vld [vmem:[#allocation12 + $0x6f8] sm:$0xff]  ;;  %v7962_v26 = vpack.c.bf16 %v1328_v23, %v1327_v54  ;;  %v1288_v33 = vld [vmem:[#allocation12] sm:$0xff]  ;;  %v1289_v27 = vld [vmem:[#allocation12 + $0x8] sm:$0xff]  ;;  %s5190_s30 = sadd.s32 (%p1274_p0), %s11453_s4, %s5714_s15  ;;  %p9608_p4 = pneg (%p1274_p0), %p9607_p8 }
 0x4f3   : >> { %7945 = vmatpush3.bf16.msra.mxu1 %v7942_v6  ;;  %v8378_v32 = vpack.c.bf16 %v3090_v25, %v3089_v24  ;;  %v3213_v34 = vld [vmem:[#allocation12 + $0x700] sm:$0xff]  ;;  %v3214_v35 = vld [vmem:[#allocation12 + $0x708] sm:$0xff]  ;;  %v7966_v36 = vpack.c.bf16 %v1289_v27, %v1288_v33  ;;  %v1290_v1 = vld [vmem:[#allocation12 + $0x10] sm:$0xff]  ;;  %s5728_s2 = sshll.u32 (%p1274_p0), %s5190_s30, 12 }
 0x4f4   : >> { %8361 = vmatpush3.bf16.msra.mxu0 %v8358_v7  ;;  %7947 = vmatprep.subr.bf16.mxu1 %v7946_v12  ;;  %v8382_v0 = vpack.c.bf16 %v3214_v35, %v3213_v34  ;;  %v1291_v2 = vld [vmem:[#allocation12 + $0x18] sm:$0xff]  ;;  %v3215_v3 = vld [vmem:[#allocation12 + $0x710] sm:$0xff]  ;;  %v1292_v9 = vld [vmem:[#allocation12 + $0x20] sm:$0xff]  ;;  %s11238_s5 = scalar_lea.hbm (%p1274_p0), %s11454_s9, %s5728_s2 }
 0x4f5   : >> { %8363 = vmatprep.subr.bf16.mxu0 %v8362_v13  ;;  %v3216_v4 = vld [vmem:[#allocation12 + $0x718] sm:$0xff]  ;;  %v10740_v5 = vld [vmem:[%s10735_s3 + $0x11] sm:$0xff]  ;;  %v7970_v7 = vpack.c.bf16 %v1291_v2, %v1290_v1  ;;  %v3217_v11 = vld [vmem:[#allocation12 + $0x720] sm:$0xff] }
 0x4f6   : >> { %v10743_v6 = vld [vmem:[%s10735_s3 + $0xc1] sm:$0xff]  ;;  %v8386_v8 = vpack.c.bf16 %v3216_v4, %v3215_v3  ;;  %v1293_v10 = vld [vmem:[#allocation12 + $0x28] sm:$0xff]  ;;  %v1294_v40 = vld [vmem:[#allocation12 + $0x30] sm:$0xff] }
 0x4f7   : >> { %7949 = vmatpush3.bf16.msra.mxu1 %v7946_v12  ;;  %v3218_v12 = vld [vmem:[#allocation12 + $0x728] sm:$0xff]  ;;  %v7974_v37 = vpack.c.bf16 %v1293_v10, %v1292_v9  ;;  %v10757_v38 = vld [vmem:[%s10735_s3 + $0xe1] sm:$0xff]  ;;  %v3223_v27 = vld [vmem:[#allocation12 + $0x750] sm:$0xff] }
 0x4f8   : >> { %8365 = vmatpush3.bf16.msra.mxu0 %v8362_v13  ;;  %7951 = vmatprep.subr.bf16.mxu1 %v7950_v41  ;;  %v10747_v13 = vld [vmem:[%s10735_s3 + $0x21] sm:$0xff]  ;;  %v10751_v14 = vld [vmem:[%s10735_s3 + $0xd1] sm:$0xff]  ;;  %v8390_v39 = vpack.c.bf16 %v3218_v12, %v3217_v11 }
 0x4f9   : >> { %8367 = vmatprep.subr.bf16.mxu0 %v8366_v42  ;;  %v10754_v15 = vld [vmem:[%s10735_s3 + $0x31] sm:$0xff]  ;;  %v3220_v43 = vld [vmem:[#allocation12 + $0x738] sm:$0xff]  ;;  %v1296_v50 = vld [vmem:[#allocation12 + $0x40] sm:$0xff] }
 0x4fa   : >> { %v10763_v44 = vld [vmem:[%s10735_s3 + $0x41] sm:$0xff]  ;;  %v10767_v45 = vld [vmem:[%s10735_s3 + $0xf1] sm:$0xff] }
 0x4fb   : >> { %7953 = vmatpush3.bf16.msra.mxu1 %v7950_v41  ;;  %v1295_v41 = vld [vmem:[#allocation12 + $0x38] sm:$0xff]  ;;  %v10770_v46 = vld [vmem:[%s10735_s3 + $0x51] sm:$0xff]  ;;  %v3221_v16 = vld [vmem:[#allocation12 + $0x740] sm:$0xff] }
 0x4fc   : >> { %8369 = vmatpush3.bf16.msra.mxu0 %v8366_v42  ;;  %7955 = vmatprep.subr.bf16.mxu1 %v7954_v47  ;;  %v3219_v42 = vld [vmem:[#allocation12 + $0x730] sm:$0xff]  ;;  %v1297_v51 = vld [vmem:[#allocation12 + $0x48] sm:$0xff]  ;;  %v10789_v25 = vld [vmem:[%s10735_s3 + $0x121] sm:$0xff] }
 0x4fd   : >> { %8371 = vmatprep.subr.bf16.mxu0 %v8370_v48  ;;  %v8394_v49 = vpack.c.bf16 %v3220_v43, %v3219_v42  ;;  %v10783_v54 = vld [vmem:[%s10735_s3 + $0x111] sm:$0xff]  ;;  %v7982_v24 = vpack.c.bf16 %v1297_v51, %v1296_v50  ;;  %v1299_v33 = vld [vmem:[#allocation12 + $0x58] sm:$0xff]  ;;  %v1300_v2 = vld [vmem:[#allocation12 + $0x60] sm:$0xff] }
 0x4fe   : >> { %v10786_v23 = vld [vmem:[%s10735_s3 + $0x71] sm:$0xff]  ;;  %v3224_v34 = vld [vmem:[#allocation12 + $0x758] sm:$0xff]  ;;  %v3225_v4 = vld [vmem:[#allocation12 + $0x760] sm:$0xff] }
 0x4ff   : >> { %7957 = vmatpush3.bf16.msra.mxu1 %v7954_v47  ;;  %v7978_v47 = vpack.c.bf16 %v1295_v41, %v1294_v40  ;;  %v1280_v35 = vld [vmem:[%s10735_s3] sm:$0xff]  ;;  %v8402_v1 = vpack.c.bf16 %v3224_v34, %v3223_v27  ;;  %v1301_v3 = vld [vmem:[#allocation12 + $0x68] sm:$0xff]  ;;  %v1302_v10 = vld [vmem:[#allocation12 + $0x70] sm:$0xff] }
 0x500   : >> { %8373 = vmatpush3.bf16.msra.mxu0 %v8370_v48  ;;  %7959 = vmatprep.subr.bf16.mxu1 %v7958_v52  ;;  %v10773_v48 = vld [vmem:[%s10735_s3 + $0x101] sm:$0xff]  ;;  %v3227_v12 = vld [vmem:[#allocation12 + $0x770] sm:$0xff]  ;;  %v1549_v42 = vld [vmem:[#allocation12 + $0x108] sm:$0xff] }
 0x501   : >> { %8375 = vmatprep.subr.bf16.mxu0 %v8374_v53  ;;  %v1303_v11 = vld [vmem:[#allocation12 + $0x78] sm:$0xff]  ;;  %v1548_v41 = vld [vmem:[#allocation12 + $0x100] sm:$0xff]  ;;  %v1550_v51 = vld [vmem:[#allocation12 + $0x110] sm:$0xff] }
 0x502   : >> { %v3353_v43 = vld [vmem:[#allocation12 + $0x780] sm:$0xff]  ;;  %v1562_v56 = vld [vmem:[#allocation12 + $0x170] sm:$0xff]  ;;  %v1563_v19 = vld [vmem:[#allocation12 + $0x178] sm:$0xff] }
 0x503   : >> { %7961 = vmatpush3.bf16.msra.mxu1 %v7958_v52  ;;  %v3222_v52 = vld [vmem:[#allocation12 + $0x748] sm:$0xff]  ;;  %v1552_v34 = vld [vmem:[#allocation12 + $0x120] sm:$0xff]  ;;  %v3367_v55 = vld [vmem:[#allocation12 + $0x7f0] sm:$0xff] }
 0x504   : >> { %8377 = vmatpush3.bf16.msra.mxu0 %v8374_v53  ;;  %7963 = vmatprep.subr.bf16.mxu1 %v7962_v26  ;;  %v10779_v53 = vld [vmem:[%s10735_s3 + $0x61] sm:$0xff]  ;;  %v10885_v17 = vld [vmem:[%s10735_s3 + $0x72] sm:$0xff] }
 0x505   : >> { %8379 = vmatprep.subr.bf16.mxu0 %v8378_v32  ;;  %v3499_v18 = vld [vmem:[#allocation12 + $0x840] sm:$0xff]  ;;  %v1699_v31 = vld [vmem:[#allocation12 + $0x1d8] sm:$0xff] }
 0x506   : >> { %v3502_v30 = vld [vmem:[#allocation12 + $0x858] sm:$0xff]  ;;  %v3629_v29 = vld [vmem:[#allocation12 + $0x880] sm:$0xff] }
 0x507   : >> { %7965 = vmatpush3.bf16.msra.mxu1 %v7962_v26  ;;  %v8398_v26 = vpack.c.bf16 %v3222_v52, %v3221_v16  ;;  %v1551_v16 = vld [vmem:[#allocation12 + $0x118] sm:$0xff]  ;;  %v3355_v52 = vld [vmem:[#allocation12 + $0x790] sm:$0xff] }
 0x508   : >> { %8381 = vmatpush3.bf16.msra.mxu0 %v8378_v32  ;;  %7967 = vmatprep.subr.bf16.mxu1 %v7966_v36  ;;  %v1298_v32 = vld [vmem:[#allocation12 + $0x50] sm:$0xff] }
 0x509   : >> { %8383 = vmatprep.subr.bf16.mxu0 %v8382_v0 }
 0x50a   : >> { %6639 = vmatmul.mubr.f32.vlgmr.msra.gmra.mrb[0].mxu1 %v10740_v5 }
 0x50b   : >> { %7969 = vmatpush3.bf16.msra.mxu1 %v7966_v36  ;;  %7211 = vmatmul.mubr.f32.vlgmr.msra.gmra.mrb[0].mxu0 %v10743_v6  ;;  %v5605_v36 = vld [vmem:[%s10735_s3 + $0xb2] sm:$0xff] }
 0x50c   : >> { %8385 = vmatpush3.bf16.msra.mxu0 %v8382_v0  ;;  %7971 = vmatprep.subr.bf16.mxu1 %v7970_v7  ;;  %v7986_v0 = vpack.c.bf16 %v1299_v33, %v1298_v32  ;;  %v10801_v32 = vld [vmem:[%s10735_s3 + $0xc2] sm:$0xff]  ;;  %v8002_v33 = vpack.c.bf16 %v1551_v16, %v1550_v51  ;;  %v3362_v51 = vld [vmem:[#allocation12 + $0x7c8] sm:$0xff] }
 0x50d   : >> { %8387 = vmatprep.subr.bf16.mxu0 %v8386_v8  ;;  %6641 = vmatprep.mubr.f32.mxu1 %v10747_v13  ;;  %v10837_v16 = vld [vmem:[%s10735_s3 + $0x60] sm:$0xff] }
 0x50e   : >> { %7213 = vmatprep.mubr.f32.mxu0 %v10751_v14  ;;  %6642 = vmatmul.mubr.f32.gmra.mrb[2].mxu1 %v10754_v15 }
 0x50f   : >> { %7973 = vmatpush3.bf16.msra.mxu1 %v7970_v7  ;;  %7214 = vmatmul.mubr.f32.gmra.mrb[2].mxu0 %v10757_v38  ;;  %v3226_v7 = vld [vmem:[#allocation12 + $0x768] sm:$0xff] }
 0x510   : >> { %8389 = vmatpush3.bf16.msra.mxu0 %v8386_v8  ;;  %7975 = vmatprep.subr.bf16.mxu1 %v7974_v37  ;;  %v7990_v8 = vpack.c.bf16 %v1301_v3, %v1300_v2  ;;  %v8406_v9 = vpack.c.bf16 %v3226_v7, %v3225_v4  ;;  %v10809_v2 = vld [vmem:[%s10735_s3 + $0xd2] sm:$0xff]  ;;  %v10815_v7 = vld [vmem:[%s10735_s3 + $0xe2] sm:$0xff] }
 0x511   : >> { %8391 = vmatprep.subr.bf16.mxu0 %v8390_v39  ;;  %6644 = vmatprep.mubr.f32.mxu1 %v10763_v44  ;;  %v10812_v3 = vld [vmem:[%s10735_s3 + $0x30] sm:$0xff] }
 0x512   : >> { %7216 = vmatprep.mubr.f32.mxu0 %v10767_v45  ;;  %6645 = vmatmul.mubr.f32.gmra.mrb[4].mxu1 %v10770_v46 }
 0x513   : >> { %7977 = vmatpush3.bf16.msra.mxu1 %v7974_v37  ;;  %7217 = vmatmul.mubr.f32.gmra.mrb[4].mxu0 %v10773_v48  ;;  %v3228_v37 = vld [vmem:[#allocation12 + $0x778] sm:$0xff] }
 0x514   : >> { %8393 = vmatpush3.bf16.msra.mxu0 %v8390_v39  ;;  %7979 = vmatprep.subr.bf16.mxu1 %v7978_v47  ;;  %v7994_v39 = vpack.c.bf16 %v1303_v11, %v1302_v10  ;;  %v8410_v40 = vpack.c.bf16 %v3228_v37, %v3227_v12  ;;  %v1555_v10 = vld [vmem:[#allocation12 + $0x138] sm:$0xff]  ;;  %v3359_v11 = vld [vmem:[#allocation12 + $0x7b0] sm:$0xff] }
 0x515   : >> { %8395 = vmatprep.subr.bf16.mxu0 %v8394_v49  ;;  %6647 = vmatprep.mubr.f32.mxu1 %v10779_v53  ;;  %v3360_v12 = vld [vmem:[#allocation12 + $0x7b8] sm:$0xff] }
 0x516   : >> { %7219 = vmatprep.mubr.f32.mxu0 %v10783_v54  ;;  %6648 = vmatmul.mubr.f32.gmra.mrb[6].mxu1 %v10786_v23  ;;  %v10821_v37 = vld [vmem:[%s10735_s3 + $0x40] sm:$0xff] }
 0x517   : >> { %7981 = vmatpush3.bf16.msra.mxu1 %v7978_v47  ;;  %7220 = vmatmul.mubr.f32.gmra.mrb[6].mxu0 %v10789_v25  ;;  %v3354_v47 = vld [vmem:[#allocation12 + $0x788] sm:$0xff] }
 0x518   : >> { %8397 = vmatpush3.bf16.msra.mxu0 %v8394_v49  ;;  %7983 = vmatprep.subr.bf16.mxu1 %v7982_v24  ;;  %v7998_v49 = vpack.c.bf16 %v1549_v42, %v1548_v41  ;;  %v8414_v50 = vpack.c.bf16 %v3354_v47, %v3353_v43  ;;  %v10831_v42 = vld [vmem:[%s10735_s3 + $0x102] sm:$0xff]  ;;  %v8426_v43 = vpack.c.bf16 %v3360_v12, %v3359_v11 }
 0x519   : >> { %8399 = vmatprep.subr.bf16.mxu0 %v8398_v26  ;;  %6682 = vmatprep.mubr.f32.mxu1 %v1280_v35  ;;  %v1553_v35 = vld [vmem:[#allocation12 + $0x128] sm:$0xff]  ;;  %v1556_v47 = vld [vmem:[#allocation12 + $0x140] sm:$0xff] }
 0x51a   : >> { %7254 = vmatprep.mubr.f32.mxu0 %v5605_v36  ;;  %v3357_v36 = vld [vmem:[#allocation12 + $0x7a0] sm:$0xff]  ;;  %v8006_v4 = vpack.c.bf16 %v1553_v35, %v1552_v34  ;;  %v1558_v35 = vld [vmem:[#allocation12 + $0x150] sm:$0xff] }
 0x51b   : >> { %7985 = vmatpush3.bf16.msra.mxu1 %v7982_v24  ;;  %v3356_v24 = vld [vmem:[#allocation12 + $0x798] sm:$0xff]  ;;  %v1560_v12 = vld [vmem:[#allocation12 + $0x160] sm:$0xff] }
 0x51c   : >> { %8401 = vmatpush3.bf16.msra.mxu0 %v8398_v26  ;;  %7987 = vmatprep.subr.bf16.mxu1 %v7986_v0  ;;  %v10798_v26 = vld [vmem:[%s10735_s3 + $0x10] sm:$0xff]  ;;  %v8418_v27 = vpack.c.bf16 %v3356_v24, %v3355_v52 }
 0x51d   : >> { %8403 = vmatprep.subr.bf16.mxu0 %v8402_v1  ;;  %v10841_v52 = vld [vmem:[%s10735_s3 + $0x112] sm:$0xff] }
 0x51e   : >> { %v10844_v24 = vld [vmem:[%s10735_s3 + $0x70] sm:$0xff] }
 0x51f   : >> { %7989 = vmatpush3.bf16.msra.mxu1 %v7986_v0  ;;  %v3358_v0 = vld [vmem:[#allocation12 + $0x7a8] sm:$0xff] }
 0x520   : >> { %8405 = vmatpush3.bf16.msra.mxu0 %v8402_v1  ;;  %7991 = vmatprep.subr.bf16.mxu1 %v7990_v8  ;;  %v10805_v1 = vld [vmem:[%s10735_s3 + $0x20] sm:$0xff] }
 0x521   : >> { %8407 = vmatprep.subr.bf16.mxu0 %v8406_v9 }
 0x523   : >> { %7993 = vmatpush3.bf16.msra.mxu1 %v7990_v8  ;;  %v8422_v8 = vpack.c.bf16 %v3358_v0, %v3357_v36  ;;  %v1559_v36 = vld [vmem:[#allocation12 + $0x158] sm:$0xff]  ;;  %v3363_v0 = vld [vmem:[#allocation12 + $0x7d0] sm:$0xff] }
 0x524   : >> { %8409 = vmatpush3.bf16.msra.mxu0 %v8406_v9  ;;  %7995 = vmatprep.subr.bf16.mxu1 %v7994_v39  ;;  %v1554_v9 = vld [vmem:[#allocation12 + $0x130] sm:$0xff] }
 0x525   : >> { %8411 = vmatprep.subr.bf16.mxu0 %v8410_v40  ;;  %v8010_v41 = vpack.c.bf16 %v1555_v10, %v1554_v9  ;;  %v1539_v9 = vld [vmem:[%s10735_s3 + $0x2] sm:$0xff]  ;;  %v8018_v10 = vpack.c.bf16 %v1559_v36, %v1558_v35  ;;  %v8026_v35 = vpack.c.bf16 %v1563_v19, %v1562_v56  ;;  %v5614_v56 = vld [vmem:[%s10735_s3 + $0xd0] sm:$0xff] }
 0x527   : >> { %7997 = vmatpush3.bf16.msra.mxu1 %v7994_v39  ;;  %v10825_v39 = vld [vmem:[%s10735_s3 + $0xf2] sm:$0xff] }
 0x528   : >> { %8413 = vmatpush3.bf16.msra.mxu0 %v8410_v40  ;;  %7999 = vmatprep.subr.bf16.mxu1 %v7998_v49  ;;  %v10828_v40 = vld [vmem:[%s10735_s3 + $0x50] sm:$0xff] }
 0x529   : >> { %8415 = vmatprep.subr.bf16.mxu0 %v8414_v50 }
 0x52a   : >> { %6683 = vmatmul.mubr.f32.vlgmr.msra.gmra.mrb[0].mxu1 %v10798_v26 }
 0x52b   : >> { %8001 = vmatpush3.bf16.msra.mxu1 %v7998_v49  ;;  %7255 = vmatmul.mubr.f32.vlgmr.msra.gmra.mrb[0].mxu0 %v10801_v32  ;;  %v1557_v49 = vld [vmem:[#allocation12 + $0x148] sm:$0xff] }
 0x52c   : >> { %8417 = vmatpush3.bf16.msra.mxu0 %v8414_v50  ;;  %8003 = vmatprep.subr.bf16.mxu1 %v8002_v33  ;;  %v3361_v50 = vld [vmem:[#allocation12 + $0x7c0] sm:$0xff] }
 0x52d   : >> { %8419 = vmatprep.subr.bf16.mxu0 %v8418_v27  ;;  %6685 = vmatprep.mubr.f32.mxu1 %v10805_v1  ;;  %v8430_v34 = vpack.c.bf16 %v3362_v51, %v3361_v50  ;;  %v3366_v50 = vld [vmem:[#allocation12 + $0x7e8] sm:$0xff] }
 0x52e   : >> { %7257 = vmatprep.mubr.f32.mxu0 %v10809_v2  ;;  %6686 = vmatmul.mubr.f32.gmra.mrb[2].mxu1 %v10812_v3 }
 0x52f   : >> { %8005 = vmatpush3.bf16.msra.mxu1 %v8002_v33  ;;  %7258 = vmatmul.mubr.f32.gmra.mrb[2].mxu0 %v10815_v7  ;;  %v8014_v33 = vpack.c.bf16 %v1557_v49, %v1556_v47  ;;  %v1561_v47 = vld [vmem:[#allocation12 + $0x168] sm:$0xff]  ;;  %v3365_v49 = vld [vmem:[#allocation12 + $0x7e0] sm:$0xff] }
 0x530   : >> { %8421 = vmatpush3.bf16.msra.mxu0 %v8418_v27  ;;  %8007 = vmatprep.subr.bf16.mxu1 %v8006_v4  ;;  %v10847_v27 = vld [vmem:[%s10735_s3 + $0x122] sm:$0xff]  ;;  %v8022_v51 = vpack.c.bf16 %v1561_v47, %v1560_v12  ;;  %v1690_v12 = vld [vmem:[#allocation12 + $0x190] sm:$0xff]  ;;  %v1691_v47 = vld [vmem:[#allocation12 + $0x198] sm:$0xff] }
 0x531   : >> { %8423 = vmatprep.subr.bf16.mxu0 %v8422_v8  ;;  %6688 = vmatprep.mubr.f32.mxu1 %v10821_v37  ;;  %v8034_v19 = vpack.c.bf16 %v1691_v47, %v1690_v12  ;;  %v1694_v12 = vld [vmem:[#allocation12 + $0x1b0] sm:$0xff]  ;;  %v1695_v47 = vld [vmem:[#allocation12 + $0x1b8] sm:$0xff] }
 0x532   : >> { %7260 = vmatprep.mubr.f32.mxu0 %v10825_v39  ;;  %6689 = vmatmul.mubr.f32.gmra.mrb[4].mxu1 %v10828_v40 }
 0x533   : >> { %8009 = vmatpush3.bf16.msra.mxu1 %v8006_v4  ;;  %7261 = vmatmul.mubr.f32.gmra.mrb[4].mxu0 %v10831_v42  ;;  %v3364_v4 = vld [vmem:[#allocation12 + $0x7d8] sm:$0xff] }
 0x534   : >> { %8425 = vmatpush3.bf16.msra.mxu0 %v8422_v8  ;;  %8011 = vmatprep.subr.bf16.mxu1 %v8010_v41  ;;  %v5613_v8 = vld [vmem:[%s10735_s3 + $0xc0] sm:$0xff]  ;;  %v8434_v11 = vpack.c.bf16 %v3364_v4, %v3363_v0  ;;  %v1689_v4 = vld [vmem:[#allocation12 + $0x188] sm:$0xff] }
 0x535   : >> { %8427 = vmatprep.subr.bf16.mxu0 %v8426_v43  ;;  %6691 = vmatprep.mubr.f32.mxu1 %v10837_v16  ;;  %v1688_v0 = vld [vmem:[#allocation12 + $0x180] sm:$0xff] }
 0x536   : >> { %7263 = vmatprep.mubr.f32.mxu0 %v10841_v52  ;;  %6692 = vmatmul.mubr.f32.gmra.mrb[6].mxu1 %v10844_v24 }
 0x537   : >> { %8013 = vmatpush3.bf16.msra.mxu1 %v8010_v41  ;;  %7264 = vmatmul.mubr.f32.gmra.mrb[6].mxu0 %v10847_v27  ;;  %v8438_v41 = vpack.c.bf16 %v3366_v50, %v3365_v49  ;;  %v1692_v50 = vld [vmem:[#allocation12 + $0x1a0] sm:$0xff] }
 0x538   : >> { %8429 = vmatpush3.bf16.msra.mxu0 %v8426_v43  ;;  %8015 = vmatprep.subr.bf16.mxu1 %v8014_v33  ;;  %v3368_v43 = vld [vmem:[#allocation12 + $0x7f8] sm:$0xff] }
 0x539   : >> { %8431 = vmatprep.subr.bf16.mxu0 %v8430_v34  ;;  %6726 = vmatprep.mubr.f32.mxu1 %v1539_v9  ;;  %v8442_v36 = vpack.c.bf16 %v3368_v43, %v3367_v55  ;;  %v3491_v9 = vld [vmem:[#allocation12 + $0x800] sm:$0xff]  ;;  %v10856_v55 = vld [vmem:[%s10735_s3 + $0x12] sm:$0xff]  ;;  %v3496_v43 = vld [vmem:[#allocation12 + $0x828] sm:$0xff] }
 0x53a   : >> { %7298 = vmatprep.mubr.f32.mxu0 %v5613_v8 }
 0x53b   : >> { %8017 = vmatpush3.bf16.msra.mxu1 %v8014_v33  ;;  %v3492_v33 = vld [vmem:[#allocation12 + $0x808] sm:$0xff] }
 0x53c   : >> { %8433 = vmatpush3.bf16.msra.mxu0 %v8430_v34  ;;  %8019 = vmatprep.subr.bf16.mxu1 %v8018_v10  ;;  %v8030_v34 = vpack.c.bf16 %v1689_v4, %v1688_v0  ;;  %v8446_v8 = vpack.c.bf16 %v3492_v33, %v3491_v9  ;;  %v10861_v0 = vld [vmem:[%s10735_s3 + $0x22] sm:$0xff]  ;;  %v10865_v4 = vld [vmem:[%s10735_s3 + $0x32] sm:$0xff] }
 0x53d   : >> { %8435 = vmatprep.subr.bf16.mxu0 %v8434_v11  ;;  %v5616_v9 = vld [vmem:[%s10735_s3 + $0xf0] sm:$0xff] }
 0x53f   : >> { %8021 = vmatpush3.bf16.msra.mxu1 %v8018_v10  ;;  %v3493_v10 = vld [vmem:[#allocation12 + $0x810] sm:$0xff] }
 0x540   : >> { %8437 = vmatpush3.bf16.msra.mxu0 %v8434_v11  ;;  %8023 = vmatprep.subr.bf16.mxu1 %v8022_v51  ;;  %v3494_v11 = vld [vmem:[#allocation12 + $0x818] sm:$0xff] }
 0x541   : >> { %8439 = vmatprep.subr.bf16.mxu0 %v8438_v41  ;;  %v8450_v49 = vpack.c.bf16 %v3494_v11, %v3493_v10  ;;  %v3497_v10 = vld [vmem:[#allocation12 + $0x830] sm:$0xff]  ;;  %v10871_v11 = vld [vmem:[%s10735_s3 + $0x42] sm:$0xff] }
 0x543   : >> { %8025 = vmatpush3.bf16.msra.mxu1 %v8022_v51  ;;  %v1693_v51 = vld [vmem:[#allocation12 + $0x1a8] sm:$0xff] }
 0x544   : >> { %8441 = vmatpush3.bf16.msra.mxu0 %v8438_v41  ;;  %8027 = vmatprep.subr.bf16.mxu1 %v8026_v35  ;;  %v3495_v41 = vld [vmem:[#allocation12 + $0x820] sm:$0xff] }
 0x545   : >> { %8443 = vmatprep.subr.bf16.mxu0 %v8442_v36  ;;  %v8454_v33 = vpack.c.bf16 %v3496_v43, %v3495_v41  ;;  %v1696_v43 = vld [vmem:[#allocation12 + $0x1c0] sm:$0xff] }
 0x547   : >> { %8029 = vmatpush3.bf16.msra.mxu1 %v8026_v35  ;;  %v5615_v35 = vld [vmem:[%s10735_s3 + $0xe0] sm:$0xff] }
 0x548   : >> { %8445 = vmatpush3.bf16.msra.mxu0 %v8442_v36  ;;  %8031 = vmatprep.subr.bf16.mxu1 %v8030_v34  ;;  %v8038_v36 = vpack.c.bf16 %v1693_v51, %v1692_v50  ;;  %v8042_v50 = vpack.c.bf16 %v1695_v47, %v1694_v12  ;;  %v5618_v51 = vld [vmem:[%s10735_s3 + $0x110] sm:$0xff] }
 0x549   : >> { %8447 = vmatprep.subr.bf16.mxu0 %v8446_v8  ;;  %v5620_v47 = vld [vmem:[%s10735_s3 + $0x130] sm:$0xff] }
 0x54a   : >> { %6727 = vmatmul.mubr.f32.vlgmr.msra.gmra.mrb[0].mxu1 %v10856_v55 }
 0x54b   : >> { %8033 = vmatpush3.bf16.msra.mxu1 %v8030_v34  ;;  %7299 = vmatmul.mubr.f32.vlgmr.msra.gmra.mrb[0].mxu0 %v5614_v56  ;;  %v3498_v34 = vld [vmem:[#allocation12 + $0x838] sm:$0xff]  ;;  %v10875_v56 = vld [vmem:[%s10735_s3 + $0x52] sm:$0xff] }
 0x54c   : >> { %8449 = vmatpush3.bf16.msra.mxu0 %v8446_v8  ;;  %8035 = vmatprep.subr.bf16.mxu1 %v8034_v19  ;;  %v5617_v8 = vld [vmem:[%s10735_s3 + $0x100] sm:$0xff]  ;;  %v8458_v41 = vpack.c.bf16 %v3498_v34, %v3497_v10  ;;  %v1698_v34 = vld [vmem:[#allocation12 + $0x1d0] sm:$0xff] }
 0x54d   : >> { %8451 = vmatprep.subr.bf16.mxu0 %v8450_v49  ;;  %6729 = vmatprep.mubr.f32.mxu1 %v10861_v0 }
 0x54e   : >> { %7301 = vmatprep.mubr.f32.mxu0 %v5615_v35  ;;  %6730 = vmatmul.mubr.f32.gmra.mrb[2].mxu1 %v10865_v4  ;;  %v1697_v35 = vld [vmem:[#allocation12 + $0x1c8] sm:$0xff] }
 0x54f   : >> { %8037 = vmatpush3.bf16.msra.mxu1 %v8034_v19  ;;  %7302 = vmatmul.mubr.f32.gmra.mrb[2].mxu0 %v5616_v9  ;;  %v3500_v19 = vld [vmem:[#allocation12 + $0x848] sm:$0xff]  ;;  %v10881_v9 = vld [vmem:[%s10735_s3 + $0x62] sm:$0xff]  ;;  %v8046_v12 = vpack.c.bf16 %v1697_v35, %v1696_v43 }
 0x550   : >> { %8453 = vmatpush3.bf16.msra.mxu0 %v8450_v49  ;;  %8039 = vmatprep.subr.bf16.mxu1 %v8038_v36  ;;  %v5619_v49 = vld [vmem:[%s10735_s3 + $0x120] sm:$0xff]  ;;  %v8462_v10 = vpack.c.bf16 %v3500_v19, %v3499_v18  ;;  %v1701_v43 = vld [vmem:[#allocation12 + $0x1e8] sm:$0xff] }
 0x551   : >> { %8455 = vmatprep.subr.bf16.mxu0 %v8454_v33  ;;  %6732 = vmatprep.mubr.f32.mxu1 %v10871_v11  ;;  %v3503_v18 = vld [vmem:[#allocation12 + $0x860] sm:$0xff]  ;;  %v3504_v35 = vld [vmem:[#allocation12 + $0x868] sm:$0xff] }
 0x552   : >> { %7304 = vmatprep.mubr.f32.mxu0 %v5617_v8  ;;  %6733 = vmatmul.mubr.f32.gmra.mrb[4].mxu1 %v10875_v56  ;;  %v3501_v8 = vld [vmem:[#allocation12 + $0x850] sm:$0xff] }
 0x553   : >> { %8041 = vmatpush3.bf16.msra.mxu1 %v8038_v36  ;;  %7305 = vmatmul.mubr.f32.gmra.mrb[4].mxu0 %v5618_v51  ;;  %v8050_v36 = vpack.c.bf16 %v1699_v31, %v1698_v34  ;;  %v1700_v51 = vld [vmem:[#allocation12 + $0x1e0] sm:$0xff]  ;;  %v3506_v31 = vld [vmem:[#allocation12 + $0x878] sm:$0xff] }
 0x554   : >> { %8457 = vmatpush3.bf16.msra.mxu0 %v8454_v33  ;;  %8043 = vmatprep.subr.bf16.mxu1 %v8042_v50  ;;  %v8466_v33 = vpack.c.bf16 %v3502_v30, %v3501_v8  ;;  %v8054_v19 = vpack.c.bf16 %v1701_v43, %v1700_v51  ;;  %v1826_v34 = vld [vmem:[#allocation12 + $0x200] sm:$0xff]  ;;  %v1827_v8 = vld [vmem:[#allocation12 + $0x208] sm:$0xff]  ;;  %v1828_v51 = vld [vmem:[#allocation12 + $0x210] sm:$0xff] }
 0x555   : >> { %8459 = vmatprep.subr.bf16.mxu0 %v8458_v41  ;;  %6735 = vmatprep.mubr.f32.mxu1 %v10881_v9  ;;  %v1829_v43 = vld [vmem:[#allocation12 + $0x218] sm:$0xff] }
 0x556   : >> { %7307 = vmatprep.mubr.f32.mxu0 %v5619_v49  ;;  %6736 = vmatmul.mubr.f32.gmra.mrb[6].mxu1 %v10885_v17  ;;  %v1702_v49 = vld [vmem:[#allocation12 + $0x1f0] sm:$0xff] }
 0x557   : >> { %8045 = vmatpush3.bf16.msra.mxu1 %v8042_v50  ;;  %7308 = vmatmul.mubr.f32.gmra.mrb[6].mxu0 %v5620_v47  ;;  %v8470_v50 = vpack.c.bf16 %v3504_v35, %v3503_v18  ;;  %v3505_v47 = vld [vmem:[#allocation12 + $0x870] sm:$0xff]  ;;  %v3632_v35 = vld [vmem:[#allocation12 + $0x898] sm:$0xff] }
 0x558   : >> { %8461 = vmatpush3.bf16.msra.mxu0 %v8458_v41  ;;  %8047 = vmatprep.subr.bf16.mxu1 %v8046_v12  ;;  %v1703_v41 = vld [vmem:[#allocation12 + $0x1f8] sm:$0xff]  ;;  %v3631_v18 = vld [vmem:[#allocation12 + $0x890] sm:$0xff] }
 0x559   : >> { %8463 = vmatprep.subr.bf16.mxu0 %v8462_v10  ;;  %6770 = vmatprep.mubr.f32.mxu1 %v10798_v26  ;;  %v8058_v30 = vpack.c.bf16 %v1703_v41, %v1702_v49  ;;  %v8474_v26 = vpack.c.bf16 %v3506_v31, %v3505_v47  ;;  %v1830_v49 = vld [vmem:[#allocation12 + $0x220] sm:$0xff]  ;;  %v1831_v41 = vld [vmem:[#allocation12 + $0x228] sm:$0xff]  ;;  %v1832_v31 = vld [vmem:[#allocation12 + $0x230] sm:$0xff] }
 0x55a   : >> { %7342 = vmatprep.mubr.f32.mxu0 %v10743_v6  ;;  %v3630_v6 = vld [vmem:[#allocation12 + $0x888] sm:$0xff] }
 0x55b   : >> { %8049 = vmatpush3.bf16.msra.mxu1 %v8046_v12  ;;  %v8062_v12 = vpack.c.bf16 %v1827_v8, %v1826_v34  ;;  %v3636_v34 = vld [vmem:[#allocation12 + $0x8b8] sm:$0xff] }
 0x55c   : >> { %8465 = vmatpush3.bf16.msra.mxu0 %v8462_v10  ;;  %8051 = vmatprep.subr.bf16.mxu1 %v8050_v36  ;;  %v8478_v10 = vpack.c.bf16 %v3630_v6, %v3629_v29  ;;  %v8070_v29 = vpack.c.bf16 %v1831_v41, %v1830_v49  ;;  %v1834_v6 = vld [vmem:[#allocation12 + $0x240] sm:$0xff]  ;;  %v3642_v49 = vld [vmem:[#allocation12 + $0x8e8] sm:$0xff]  ;;  %v1840_v41 = vld [vmem:[#allocation12 + $0x270] sm:$0xff] }
 0x55d   : >> { %8467 = vmatprep.subr.bf16.mxu0 %v8466_v33 }
 0x55f   : >> { %8053 = vmatpush3.bf16.msra.mxu1 %v8050_v36  ;;  %v8066_v36 = vpack.c.bf16 %v1829_v43, %v1828_v51  ;;  %v1836_v43 = vld [vmem:[#allocation12 + $0x250] sm:$0xff] }
 0x560   : >> { %8469 = vmatpush3.bf16.msra.mxu0 %v8466_v33  ;;  %8055 = vmatprep.subr.bf16.mxu1 %v8054_v19  ;;  %v8482_v33 = vpack.c.bf16 %v3632_v35, %v3631_v18  ;;  %v1837_v18 = vld [vmem:[#allocation12 + $0x258] sm:$0xff] }
 0x561   : >> { %8471 = vmatprep.subr.bf16.mxu0 %v8470_v50  ;;  %v3640_v35 = vld [vmem:[#allocation12 + $0x8d8] sm:$0xff] }
 0x563   : >> { %8057 = vmatpush3.bf16.msra.mxu1 %v8054_v19  ;;  %v3633_v19 = vld [vmem:[#allocation12 + $0x8a0] sm:$0xff] }
 0x564   : >> { %8473 = vmatpush3.bf16.msra.mxu0 %v8470_v50  ;;  %8059 = vmatprep.subr.bf16.mxu1 %v8058_v30  ;;  %v3634_v50 = vld [vmem:[#allocation12 + $0x8a8] sm:$0xff] }
 0x565   : >> { %8475 = vmatprep.subr.bf16.mxu0 %v8474_v26  ;;  %v8486_v47 = vpack.c.bf16 %v3634_v50, %v3633_v19  ;;  %v1841_v19 = vld [vmem:[#allocation12 + $0x278] sm:$0xff]  ;;  %v3643_v50 = vld [vmem:[#allocation12 + $0x8f0] sm:$0xff] }
 0x567   : >> { %8061 = vmatpush3.bf16.msra.mxu1 %v8058_v30  ;;  %v1833_v30 = vld [vmem:[#allocation12 + $0x238] sm:$0xff] }
 0x568   : >> { %8477 = vmatpush3.bf16.msra.mxu0 %v8474_v26  ;;  %8063 = vmatprep.subr.bf16.mxu1 %v8062_v12  ;;  %v3635_v26 = vld [vmem:[#allocation12 + $0x8b0] sm:$0xff] }
 0x569   : >> { %8479 = vmatprep.subr.bf16.mxu0 %v8478_v10  ;;  %v8490_v8 = vpack.c.bf16 %v3636_v34, %v3635_v26  ;;  %v3770_v26 = vld [vmem:[#allocation12 + $0x900] sm:$0xff] }
 0x56a   : >> { %6771 = vmatmul.mubr.f32.vlgmr.msra.gmra.mrb[0].mxu1 %v10805_v1 }
 0x56b   : >> { %8065 = vmatpush3.bf16.msra.mxu1 %v8062_v12  ;;  %7343 = vmatmul.mubr.f32.vlgmr.msra.gmra.mrb[0].mxu0 %v10751_v14  ;;  %v8074_v14 = vpack.c.bf16 %v1833_v30, %v1832_v31  ;;  %v1835_v12 = vld [vmem:[#allocation12 + $0x248] sm:$0xff]  ;;  %v1964_v31 = vld [vmem:[#allocation12 + $0x280] sm:$0xff] }
 0x56c   : >> { %8481 = vmatpush3.bf16.msra.mxu0 %v8478_v10  ;;  %8067 = vmatprep.subr.bf16.mxu1 %v8066_v36  ;;  %v3638_v10 = vld [vmem:[#allocation12 + $0x8c8] sm:$0xff] }
 0x56d   : >> { %8483 = vmatprep.subr.bf16.mxu0 %v8482_v33  ;;  %6773 = vmatprep.mubr.f32.mxu1 %v10812_v3  ;;  %v3637_v3 = vld [vmem:[#allocation12 + $0x8c0] sm:$0xff]  ;;  %v1965_v30 = vld [vmem:[#allocation12 + $0x288] sm:$0xff] }
 0x56e   : >> { %7345 = vmatprep.mubr.f32.mxu0 %v10757_v38  ;;  %6774 = vmatmul.mubr.f32.gmra.mrb[2].mxu1 %v10821_v37  ;;  %v10903_v38 = vld [vmem:[%s10735_s3 + $0x80] sm:$0xff]  ;;  %v5628_v37 = vld [vmem:[%s10735_s3 + $0x131] sm:$0xff]  ;;  %v8494_v51 = vpack.c.bf16 %v3638_v10, %v3637_v3  ;;  %v8094_v34 = vpack.c.bf16 %v1965_v30, %v1964_v31 }
 0x56f   : >> { %8069 = vmatpush3.bf16.msra.mxu1 %v8066_v36  ;;  %7346 = vmatmul.mubr.f32.gmra.mrb[2].mxu0 %v10767_v45  ;;  %v8078_v45 = vpack.c.bf16 %v1835_v12, %v1834_v6  ;;  %v1839_v36 = vld [vmem:[#allocation12 + $0x268] sm:$0xff]  ;;  %v1967_v6 = vld [vmem:[#allocation12 + $0x298] sm:$0xff]  ;;  %v3772_v12 = vld [vmem:[#allocation12 + $0x910] sm:$0xff] }
 0x570   : >> { %8485 = vmatpush3.bf16.msra.mxu0 %v8482_v33  ;;  %8071 = vmatprep.subr.bf16.mxu1 %v8070_v29  ;;  %v3641_v33 = vld [vmem:[#allocation12 + $0x8e0] sm:$0xff]  ;;  %v3773_v3 = vld [vmem:[#allocation12 + $0x918] sm:$0xff]  ;;  %v1978_v30 = vld [vmem:[#allocation12 + $0x2f0] sm:$0xff] }
 0x571   : >> { %8487 = vmatprep.subr.bf16.mxu0 %v8486_v47  ;;  %6776 = vmatprep.mubr.f32.mxu1 %v10828_v40  ;;  %v3639_v40 = vld [vmem:[#allocation12 + $0x8d0] sm:$0xff] }
 0x572   : >> { %7348 = vmatprep.mubr.f32.mxu0 %v10773_v48  ;;  %6777 = vmatmul.mubr.f32.gmra.mrb[4].mxu1 %v10837_v16  ;;  %v8082_v48 = vpack.c.bf16 %v1837_v18, %v1836_v43  ;;  %v1838_v16 = vld [vmem:[#allocation12 + $0x260] sm:$0xff]  ;;  %v3775_v18 = vld [vmem:[#allocation12 + $0x928] sm:$0xff] }
 0x573   : >> { %8073 = vmatpush3.bf16.msra.mxu1 %v8070_v29  ;;  %7349 = vmatmul.mubr.f32.gmra.mrb[4].mxu0 %v10783_v54  ;;  %v8498_v54 = vpack.c.bf16 %v3640_v35, %v3639_v40  ;;  %v3644_v29 = vld [vmem:[#allocation12 + $0x8f8] sm:$0xff]  ;;  %v3774_v43 = vld [vmem:[#allocation12 + $0x920] sm:$0xff] }
 0x574   : >> { %8489 = vmatpush3.bf16.msra.mxu0 %v8486_v47  ;;  %8075 = vmatprep.subr.bf16.mxu1 %v8074_v14  ;;  %v8090_v47 = vpack.c.bf16 %v1841_v19, %v1840_v41  ;;  %v8518_v35 = vpack.c.bf16 %v3775_v18, %v3774_v43  ;;  %v1974_v41 = vld [vmem:[#allocation12 + $0x2d0] sm:$0xff]  ;;  %v3911_v18 = vld [vmem:[#allocation12 + $0x998] sm:$0xff] }
 0x575   : >> { %8491 = vmatprep.subr.bf16.mxu0 %v8490_v8  ;;  %6779 = vmatprep.mubr.f32.mxu1 %v10844_v24  ;;  %v8502_v24 = vpack.c.bf16 %v3642_v49, %v3641_v33  ;;  %v1972_v33 = vld [vmem:[#allocation12 + $0x2c0] sm:$0xff]  ;;  %v1973_v49 = vld [vmem:[#allocation12 + $0x2c8] sm:$0xff]  ;;  %v3780_v19 = vld [vmem:[#allocation12 + $0x950] sm:$0xff] }
 0x576   : >> { %7351 = vmatprep.mubr.f32.mxu0 %v10789_v25  ;;  %6780 = vmatmul.mubr.f32.gmra.mrb[6].mxu1 %v10903_v38  ;;  %v8086_v25 = vpack.c.bf16 %v1839_v36, %v1838_v16  ;;  %v3776_v16 = vld [vmem:[#allocation12 + $0x930] sm:$0xff]  ;;  %v3777_v36 = vld [vmem:[#allocation12 + $0x938] sm:$0xff] }
 0x577   : >> { %8077 = vmatpush3.bf16.msra.mxu1 %v8074_v14  ;;  %7352 = vmatmul.mubr.f32.gmra.mrb[6].mxu0 %v5628_v37  ;;  %v1968_v37 = vld [vmem:[#allocation12 + $0x2a0] sm:$0xff]  ;;  %v3910_v43 = vld [vmem:[#allocation12 + $0x990] sm:$0xff] }
 0x578   : >> { %8493 = vmatpush3.bf16.msra.mxu0 %v8490_v8  ;;  %8079 = vmatprep.subr.bf16.mxu1 %v8078_v45  ;;  %v1966_v8 = vld [vmem:[#allocation12 + $0x290] sm:$0xff] }
 0x579   : >> { %8495 = vmatprep.subr.bf16.mxu0 %v8494_v51  ;;  %6814 = vmatprep.mubr.f32.mxu1 %v10740_v5  ;;  %v8506_v5 = vpack.c.bf16 %v3644_v29, %v3643_v50  ;;  %v8098_v10 = vpack.c.bf16 %v1967_v6, %v1966_v8  ;;  %v1976_v29 = vld [vmem:[#allocation12 + $0x2e0] sm:$0xff]  ;;  %v2105_v6 = vld [vmem:[#allocation12 + $0x308] sm:$0xff] }
 0x57a   : >> { %7386 = vmatprep.mubr.f32.mxu0 %v10801_v32  ;;  %v3771_v32 = vld [vmem:[#allocation12 + $0x908] sm:$0xff] }
 0x57b   : >> { %8081 = vmatpush3.bf16.msra.mxu1 %v8078_v45  ;;  %v8510_v14 = vpack.c.bf16 %v3771_v32, %v3770_v26  ;;  %v8514_v45 = vpack.c.bf16 %v3773_v3, %v3772_v12  ;;  %v1979_v26 = vld [vmem:[#allocation12 + $0x2f8] sm:$0xff]  ;;  %v3784_v32 = vld [vmem:[#allocation12 + $0x970] sm:$0xff]  ;;  %v3908_v12 = vld [vmem:[#allocation12 + $0x980] sm:$0xff] }
 0x57c   : >> { %8497 = vmatpush3.bf16.msra.mxu0 %v8494_v51  ;;  %8083 = vmatprep.subr.bf16.mxu1 %v8082_v48  ;;  %v1969_v51 = vld [vmem:[#allocation12 + $0x2a8] sm:$0xff] }
 0x57d   : >> { %8499 = vmatprep.subr.bf16.mxu0 %v8498_v54  ;;  %v8102_v40 = vpack.c.bf16 %v1969_v51, %v1968_v37  ;;  %v3909_v3 = vld [vmem:[#allocation12 + $0x988] sm:$0xff]  ;;  %v2106_v37 = vld [vmem:[#allocation12 + $0x310] sm:$0xff]  ;;  %v2107_v51 = vld [vmem:[#allocation12 + $0x318] sm:$0xff] }
 0x57f   : >> { %8085 = vmatpush3.bf16.msra.mxu1 %v8082_v48  ;;  %v1970_v48 = vld [vmem:[#allocation12 + $0x2b0] sm:$0xff] }
 0x580   : >> { %8501 = vmatpush3.bf16.msra.mxu0 %v8498_v54  ;;  %8087 = vmatprep.subr.bf16.mxu1 %v8086_v25  ;;  %v1971_v54 = vld [vmem:[#allocation12 + $0x2b8] sm:$0xff] }
 0x581   : >> { %8503 = vmatprep.subr.bf16.mxu0 %v8502_v24 }
 0x583   : >> { %8089 = vmatpush3.bf16.msra.mxu1 %v8086_v25  ;;  %v3779_v25 = vld [vmem:[#allocation12 + $0x948] sm:$0xff] }
 0x584   : >> { %8505 = vmatpush3.bf16.msra.mxu0 %v8502_v24  ;;  %8091 = vmatprep.subr.bf16.mxu1 %v8090_v47 }
 0x585   : >> { %8507 = vmatprep.subr.bf16.mxu0 %v8506_v5 }
 0x587   : >> { %8093 = vmatpush3.bf16.msra.mxu1 %v8090_v47  ;;  %v1977_v47 = vld [vmem:[#allocation12 + $0x2e8] sm:$0xff] }
 0x588   : >> { %8509 = vmatpush3.bf16.msra.mxu0 %v8506_v5  ;;  %8095 = vmatprep.subr.bf16.mxu1 %v8094_v34  ;;  %v3782_v5 = vld [vmem:[#allocation12 + $0x960] sm:$0xff] }
 0x589   : >> { %8511 = vmatprep.subr.bf16.mxu0 %v8510_v14 }
 0x58a   : >> { %6815 = vmatmul.mubr.f32.vlgmr.msra.gmra.mrb[0].mxu1 %v10747_v13  ;;  %v8106_v13 = vpack.c.bf16 %v1971_v54, %v1970_v48  ;;  %v8546_v48 = vpack.c.bf16 %v3911_v18, %v3910_v43  ;;  %v2108_v54 = vld [vmem:[#allocation12 + $0x320] sm:$0xff]  ;;  %v4047_v18 = vld [vmem:[#allocation12 + $0xa08] sm:$0xff] }
 0x58b   : >> { %8097 = vmatpush3.bf16.msra.mxu1 %v8094_v34  ;;  %7387 = vmatmul.mubr.f32.vlgmr.msra.gmra.mrb[0].mxu0 %v10809_v2  ;;  %v8522_v2 = vpack.c.bf16 %v3777_v36, %v3776_v16  ;;  %v3785_v34 = vld [vmem:[#allocation12 + $0x978] sm:$0xff]  ;;  %v2109_v16 = vld [vmem:[#allocation12 + $0x328] sm:$0xff]  ;;  %v3912_v36 = vld [vmem:[#allocation12 + $0x9a0] sm:$0xff] }
 0x58c   : >> { %8513 = vmatpush3.bf16.msra.mxu0 %v8510_v14  ;;  %8099 = vmatprep.subr.bf16.mxu1 %v8098_v10  ;;  %v8122_v14 = vpack.c.bf16 %v1979_v26, %v1978_v30  ;;  %v8538_v8 = vpack.c.bf16 %v3785_v34, %v3784_v32  ;;  %v2116_v32 = vld [vmem:[#allocation12 + $0x360] sm:$0xff]  ;;  %v2117_v34 = vld [vmem:[#allocation12 + $0x368] sm:$0xff] }
 0x58d   : >> { %8515 = vmatprep.subr.bf16.mxu0 %v8514_v45  ;;  %6817 = vmatprep.mubr.f32.mxu1 %v10754_v15  ;;  %v3778_v15 = vld [vmem:[#allocation12 + $0x940] sm:$0xff] }
 0x58e   : >> { %7389 = vmatprep.mubr.f32.mxu0 %v10815_v7  ;;  %6818 = vmatmul.mubr.f32.gmra.mrb[2].mxu1 %v10763_v44  ;;  %v10922_v44 = vld [vmem:[%s10735_s3 + $0x81] sm:$0xff]  ;;  %v8110_v7 = vpack.c.bf16 %v1973_v49, %v1972_v33  ;;  %v8526_v24 = vpack.c.bf16 %v3779_v25, %v3778_v15  ;;  %v8134_v33 = vpack.c.bf16 %v2109_v16, %v2108_v54  ;;  %v10939_v49 = vld [vmem:[%s10735_s3 + $0x170] sm:$0xff] }
 0x58f   : >> { %8101 = vmatpush3.bf16.msra.mxu1 %v8098_v10  ;;  %7390 = vmatmul.mubr.f32.gmra.mrb[2].mxu0 %v10825_v39  ;;  %v5636_v39 = vld [vmem:[%s10735_s3 + $0x132] sm:$0xff]  ;;  %v4046_v43 = vld [vmem:[#allocation12 + $0xa00] sm:$0xff]  ;;  %v2245_v16 = vld [vmem:[#allocation12 + $0x398] sm:$0xff] }
 0x590   : >> { %8517 = vmatpush3.bf16.msra.mxu0 %v8514_v45  ;;  %8103 = vmatprep.subr.bf16.mxu1 %v8102_v40  ;;  %v8542_v45 = vpack.c.bf16 %v3909_v3, %v3908_v12  ;;  %v2110_v25 = vld [vmem:[#allocation12 + $0x330] sm:$0xff]  ;;  %v2119_v12 = vld [vmem:[#allocation12 + $0x378] sm:$0xff] }
 0x591   : >> { %8519 = vmatprep.subr.bf16.mxu0 %v8518_v35  ;;  %6820 = vmatprep.mubr.f32.mxu1 %v10770_v46  ;;  %v1975_v46 = vld [vmem:[#allocation12 + $0x2d8] sm:$0xff]  ;;  %v3922_v3 = vld [vmem:[#allocation12 + $0x9f0] sm:$0xff] }
 0x592   : >> { %7392 = vmatprep.mubr.f32.mxu0 %v10831_v42  ;;  %6821 = vmatmul.mubr.f32.gmra.mrb[4].mxu1 %v10779_v53  ;;  %v3781_v42 = vld [vmem:[#allocation12 + $0x958] sm:$0xff]  ;;  %v2244_v54 = vld [vmem:[#allocation12 + $0x390] sm:$0xff] }
 0x593   : >> { %8105 = vmatpush3.bf16.msra.mxu1 %v8102_v40  ;;  %7393 = vmatmul.mubr.f32.gmra.mrb[4].mxu0 %v10841_v52  ;;  %v5637_v53 = vld [vmem:[%s10735_s3 + $0x140] sm:$0xff]  ;;  %v8114_v52 = vpack.c.bf16 %v1975_v46, %v1974_v41  ;;  %v8530_v50 = vpack.c.bf16 %v3781_v42, %v3780_v19  ;;  %v10931_v40 = vld [vmem:[%s10735_s3 + $0x150] sm:$0xff] }
 0x594   : >> { %8521 = vmatpush3.bf16.msra.mxu0 %v8518_v35  ;;  %8107 = vmatprep.subr.bf16.mxu1 %v8106_v13  ;;  %v8130_v35 = vpack.c.bf16 %v2107_v51, %v2106_v37  ;;  %v10949_v46 = vld [vmem:[%s10735_s3 + $0x190] sm:$0xff]  ;;  %v2112_v19 = vld [vmem:[#allocation12 + $0x340] sm:$0xff] }
 0x595   : >> { %8523 = vmatprep.subr.bf16.mxu0 %v8522_v2  ;;  %6823 = vmatprep.mubr.f32.mxu1 %v10786_v23  ;;  %v3783_v23 = vld [vmem:[#allocation12 + $0x968] sm:$0xff] }
 0x596   : >> { %7395 = vmatprep.mubr.f32.mxu0 %v10847_v27  ;;  %6824 = vmatmul.mubr.f32.gmra.mrb[6].mxu1 %v10922_v44  ;;  %v8118_v27 = vpack.c.bf16 %v1977_v47, %v1976_v29  ;;  %v8534_v31 = vpack.c.bf16 %v3783_v23, %v3782_v5  ;;  %v2113_v42 = vld [vmem:[#allocation12 + $0x348] sm:$0xff]  ;;  %v2114_v5 = vld [vmem:[#allocation12 + $0x350] sm:$0xff]  ;;  %v2115_v23 = vld [vmem:[#allocation12 + $0x358] sm:$0xff] }
 0x597   : >> { %8109 = vmatpush3.bf16.msra.mxu1 %v8106_v13  ;;  %7396 = vmatmul.mubr.f32.gmra.mrb[6].mxu0 %v5636_v39  ;;  %v3913_v13 = vld [vmem:[#allocation12 + $0x9a8] sm:$0xff]  ;;  %v3915_v39 = vld [vmem:[#allocation12 + $0x9b8] sm:$0xff]  ;;  %v8142_v29 = vpack.c.bf16 %v2113_v42, %v2112_v19  ;;  %v8146_v30 = vpack.c.bf16 %v2115_v23, %v2114_v5  ;;  %v2248_v5 = vld [vmem:[#allocation12 + $0x3b0] sm:$0xff] }
 0x598   : >> { %8525 = vmatpush3.bf16.msra.mxu0 %v8522_v2  ;;  %8111 = vmatprep.subr.bf16.mxu1 %v8110_v7  ;;  %v10936_v2 = vld [vmem:[%s10735_s3 + $0x160] sm:$0xff]  ;;  %v8550_v15 = vpack.c.bf16 %v3913_v13, %v3912_v36  ;;  %v10962_v47 = vld [vmem:[%s10735_s3 + $0x1b0] sm:$0xff] }
 0x599   : >> { %8527 = vmatprep.subr.bf16.mxu0 %v8526_v24  ;;  %6858 = vmatprep.mubr.f32.mxu1 %v10856_v55  ;;  %v2104_v55 = vld [vmem:[#allocation12 + $0x300] sm:$0xff]  ;;  %v2243_v51 = vld [vmem:[#allocation12 + $0x388] sm:$0xff]  ;;  %v4048_v36 = vld [vmem:[#allocation12 + $0xa10] sm:$0xff] }
 0x59a   : >> { %7430 = vmatprep.mubr.f32.mxu0 %v5637_v53  ;;  %v8126_v10 = vpack.c.bf16 %v2105_v6, %v2104_v55  ;;  %v3917_v53 = vld [vmem:[#allocation12 + $0x9c8] sm:$0xff]  ;;  %v2118_v6 = vld [vmem:[#allocation12 + $0x370] sm:$0xff]  ;;  %v4049_v13 = vld [vmem:[#allocation12 + $0xa18] sm:$0xff] }
 0x59b   : >> { %8113 = vmatpush3.bf16.msra.mxu1 %v8110_v7  ;;  %v2111_v7 = vld [vmem:[#allocation12 + $0x338] sm:$0xff] }
 0x59c   : >> { %8529 = vmatpush3.bf16.msra.mxu0 %v8526_v24  ;;  %8115 = vmatprep.subr.bf16.mxu1 %v8114_v52  ;;  %v10946_v24 = vld [vmem:[%s10735_s3 + $0x180] sm:$0xff]  ;;  %v8138_v41 = vpack.c.bf16 %v2111_v7, %v2110_v25  ;;  %v8578_v25 = vpack.c.bf16 %v4049_v13, %v4048_v36  ;;  %v2255_v13 = vld [vmem:[#allocation12 + $0x3e8] sm:$0xff] }
 0x59d   : >> { %8531 = vmatprep.subr.bf16.mxu0 %v8530_v50  ;;  %v2246_v7 = vld [vmem:[#allocation12 + $0x3a0] sm:$0xff]  ;;  %v2249_v23 = vld [vmem:[#allocation12 + $0x3b8] sm:$0xff] }
 0x59e   : >> { %v5543_v19 = vld [vmem:[%s10735_s3 + $0x40] sm:$0xff] }
 0x59f   : >> { %8117 = vmatpush3.bf16.msra.mxu1 %v8114_v52  ;;  %v10956_v52 = vld [vmem:[%s10735_s3 + $0x1a0] sm:$0xff] }
 0x5a0   : >> { %8533 = vmatpush3.bf16.msra.mxu0 %v8530_v50  ;;  %8119 = vmatprep.subr.bf16.mxu1 %v8118_v27  ;;  %v10959_v50 = vld [vmem:[%s10735_s3 + $0x82] sm:$0xff] }
 0x5a1   : >> { %8535 = vmatprep.subr.bf16.mxu0 %v8534_v31  ;;  %v10977_v42 = vld [vmem:[%s10735_s3 + $0x161] sm:$0xff] }
 0x5a2   : >> { %v2254_v36 = vld [vmem:[#allocation12 + $0x3e0] sm:$0xff] }
 0x5a3   : >> { %8121 = vmatpush3.bf16.msra.mxu1 %v8118_v27  ;;  %v3919_v27 = vld [vmem:[#allocation12 + $0x9d8] sm:$0xff] }
 0x5a4   : >> { %8537 = vmatpush3.bf16.msra.mxu0 %v8534_v31  ;;  %8123 = vmatprep.subr.bf16.mxu1 %v8122_v14  ;;  %v5645_v31 = vld [vmem:[%s10735_s3 + $0x141] sm:$0xff] }
 0x5a5   : >> { %8539 = vmatprep.subr.bf16.mxu0 %v8538_v8 }
 0x5a7   : >> { %8125 = vmatpush3.bf16.msra.mxu1 %v8122_v14  ;;  %v3921_v14 = vld [vmem:[#allocation12 + $0x9e8] sm:$0xff] }
 0x5a8   : >> { %8541 = vmatpush3.bf16.msra.mxu0 %v8538_v8  ;;  %8127 = vmatprep.subr.bf16.mxu1 %v8126_v10  ;;  %v8150_v8 = vpack.c.bf16 %v2117_v34, %v2116_v32  ;;  %v8170_v32 = vpack.c.bf16 %v2249_v23, %v2248_v5  ;;  %v10991_v34 = vld [vmem:[%s10735_s3 + $0x191] sm:$0xff]  ;;  %v4186_v5 = vld [vmem:[#allocation12 + $0xa80] sm:$0xff] }
 0x5a9   : >> { %8543 = vmatprep.subr.bf16.mxu0 %v8542_v45  ;;  %v4187_v23 = vld [vmem:[#allocation12 + $0xa88] sm:$0xff] }
 0x5aa   : >> { %6859 = vmatmul.mubr.f32.vlgmr.msra.gmra.mrb[0].mxu1 %v10861_v0  ;;  %v3914_v0 = vld [vmem:[#allocation12 + $0x9b0] sm:$0xff] }
 0x5ab   : >> { %8129 = vmatpush3.bf16.msra.mxu1 %v8126_v10  ;;  %7431 = vmatmul.mubr.f32.vlgmr.msra.gmra.mrb[0].mxu0 %v10931_v40  ;;  %v3923_v10 = vld [vmem:[#allocation12 + $0x9f8] sm:$0xff] }
 0x5ac   : >> { %8545 = vmatpush3.bf16.msra.mxu0 %v8542_v45  ;;  %8131 = vmatprep.subr.bf16.mxu1 %v8130_v35  ;;  %v8154_v45 = vpack.c.bf16 %v2119_v12, %v2118_v6  ;;  %v8570_v37 = vpack.c.bf16 %v3923_v10, %v3922_v3  ;;  %v4055_v6 = vld [vmem:[#allocation12 + $0xa48] sm:$0xff]  ;;  %v10996_v12 = vld [vmem:[%s10735_s3 + $0x1a1] sm:$0xff] }
 0x5ad   : >> { %8547 = vmatprep.subr.bf16.mxu0 %v8546_v48  ;;  %6861 = vmatprep.mubr.f32.mxu1 %v10865_v4  ;;  %v8554_v4 = vpack.c.bf16 %v3915_v39, %v3914_v0  ;;  %v2247_v0 = vld [vmem:[#allocation12 + $0x3a8] sm:$0xff] }
 0x5ae   : >> { %7433 = vmatprep.mubr.f32.mxu0 %v10936_v2  ;;  %6862 = vmatmul.mubr.f32.gmra.mrb[2].mxu1 %v10871_v11  ;;  %v3916_v11 = vld [vmem:[#allocation12 + $0x9c0] sm:$0xff]  ;;  %v9318_v39 = vld [vmem:[%s10735_s3 + $0x30] sm:$0xff] }
 0x5af   : >> { %8133 = vmatpush3.bf16.msra.mxu1 %v8130_v35  ;;  %7434 = vmatmul.mubr.f32.gmra.mrb[2].mxu0 %v10939_v49  ;;  %v5548_v3 = vld [vmem:[%s10735_s3 + $0x90] sm:$0xff] }
 0x5b0   : >> { %8549 = vmatpush3.bf16.msra.mxu0 %v8546_v48  ;;  %8135 = vmatprep.subr.bf16.mxu1 %v8134_v33  ;;  %v8574_v48 = vpack.c.bf16 %v4047_v18, %v4046_v43  ;;  %v4056_v43 = vld [vmem:[#allocation12 + $0xa50] sm:$0xff]  ;;  %v4057_v18 = vld [vmem:[#allocation12 + $0xa58] sm:$0xff] }
 0x5b1   : >> { %8551 = vmatprep.subr.bf16.mxu0 %v8550_v15  ;;  %6864 = vmatprep.mubr.f32.mxu1 %v10875_v56  ;;  %v8558_v56 = vpack.c.bf16 %v3917_v53, %v3916_v11  ;;  %v5544_v11 = vld [vmem:[%s10735_s3 + $0x50] sm:$0xff]  ;;  %v8166_v53 = vpack.c.bf16 %v2247_v0, %v2246_v7 }
 0x5b2   : >> { %7436 = vmatprep.mubr.f32.mxu0 %v10946_v24  ;;  %6865 = vmatmul.mubr.f32.gmra.mrb[4].mxu1 %v10881_v9  ;;  %v3918_v9 = vld [vmem:[#allocation12 + $0x9d0] sm:$0xff] }
 0x5b3   : >> { %8137 = vmatpush3.bf16.msra.mxu1 %v8134_v33  ;;  %7437 = vmatmul.mubr.f32.gmra.mrb[4].mxu0 %v10949_v46  ;;  %v8562_v26 = vpack.c.bf16 %v3919_v27, %v3918_v9  ;;  %v10971_v33 = vld [vmem:[%s10735_s3 + $0x151] sm:$0xff]  ;;  %v4053_v27 = vld [vmem:[#allocation12 + $0xa38] sm:$0xff] }
 0x5b4   : >> { %8553 = vmatpush3.bf16.msra.mxu0 %v8550_v15  ;;  %8139 = vmatprep.subr.bf16.mxu1 %v8138_v41  ;;  %v8162_v15 = vpack.c.bf16 %v2245_v16, %v2244_v54  ;;  %v4052_v9 = vld [vmem:[#allocation12 + $0xa30] sm:$0xff]  ;;  %v8594_v16 = vpack.c.bf16 %v4057_v18, %v4056_v43  ;;  %v11014_v43 = vld [vmem:[%s10735_s3 + $0x162] sm:$0xff] }
 0x5b5   : >> { %8555 = vmatprep.subr.bf16.mxu0 %v8554_v4  ;;  %6867 = vmatprep.mubr.f32.mxu1 %v10885_v17  ;;  %v3920_v17 = vld [vmem:[#allocation12 + $0x9e0] sm:$0xff]  ;;  %v2256_v0 = vld [vmem:[#allocation12 + $0x3f0] sm:$0xff] }
 0x5b6   : >> { %7439 = vmatprep.mubr.f32.mxu0 %v10956_v52  ;;  %6868 = vmatmul.mubr.f32.gmra.mrb[6].mxu1 %v10959_v50  ;;  %v8566_v55 = vpack.c.bf16 %v3921_v14, %v3920_v17  ;;  %v8586_v17 = vpack.c.bf16 %v4053_v27, %v4052_v9  ;;  %v2250_v14 = vld [vmem:[#allocation12 + $0x3c0] sm:$0xff]  ;;  %v8606_v27 = vpack.c.bf16 %v4187_v23, %v4186_v5  ;;  %v5552_v18 = vld [vmem:[%s10735_s3 + $0x51] sm:$0xff] }
 0x5b7   : >> { %8141 = vmatpush3.bf16.msra.mxu1 %v8138_v41  ;;  %7440 = vmatmul.mubr.f32.gmra.mrb[6].mxu0 %v10962_v47  ;;  %v4050_v41 = vld [vmem:[#allocation12 + $0xa20] sm:$0xff]  ;;  %v5556_v5 = vld [vmem:[%s10735_s3 + $0x91] sm:$0xff] }
 0x5b8   : >> { %8557 = vmatpush3.bf16.msra.mxu0 %v8554_v4  ;;  %8143 = vmatprep.subr.bf16.mxu1 %v8142_v29  ;;  %v4051_v4 = vld [vmem:[#allocation12 + $0xa28] sm:$0xff] }
 0x5b9   : >> { %8559 = vmatprep.subr.bf16.mxu0 %v8558_v56  ;;  %6902 = vmatprep.mubr.f32.mxu1 %v10805_v1  ;;  %v2242_v1 = vld [vmem:[#allocation12 + $0x380] sm:$0xff] }
 0x5ba   : >> { %7474 = vmatprep.mubr.f32.mxu0 %v5645_v31  ;;  %v8158_v35 = vpack.c.bf16 %v2243_v51, %v2242_v1  ;;  %v5545_v31 = vld [vmem:[%s10735_s3 + $0x60] sm:$0xff]  ;;  %v2252_v1 = vld [vmem:[#allocation12 + $0x3d0] sm:$0xff] }
 0x5bb   : >> { %8145 = vmatpush3.bf16.msra.mxu1 %v8142_v29  ;;  %v10981_v29 = vld [vmem:[%s10735_s3 + $0x171] sm:$0xff]  ;;  %v2253_v51 = vld [vmem:[#allocation12 + $0x3d8] sm:$0xff] }
 0x5bc   : >> { %8561 = vmatpush3.bf16.msra.mxu0 %v8558_v56  ;;  %8147 = vmatprep.subr.bf16.mxu1 %v8146_v30  ;;  %v8582_v56 = vpack.c.bf16 %v4051_v4, %v4050_v41  ;;  %v8178_v54 = vpack.c.bf16 %v2253_v51, %v2252_v1  ;;  %v4060_v41 = vld [vmem:[#allocation12 + $0xa70] sm:$0xff]  ;;  %v4061_v4 = vld [vmem:[#allocation12 + $0xa78] sm:$0xff]  ;;  %v4191_v1 = vld [vmem:[#allocation12 + $0xaa8] sm:$0xff] }
 0x5bd   : >> { %8563 = vmatprep.subr.bf16.mxu0 %v8562_v26  ;;  %v5551_v51 = vld [vmem:[%s10735_s3 + $0x41] sm:$0xff] }
 0x5bf   : >> { %8149 = vmatpush3.bf16.msra.mxu1 %v8146_v30  ;;  %v10987_v30 = vld [vmem:[%s10735_s3 + $0x181] sm:$0xff] }
 0x5c0   : >> { %8565 = vmatpush3.bf16.msra.mxu0 %v8562_v26  ;;  %8151 = vmatprep.subr.bf16.mxu1 %v8150_v8  ;;  %v5546_v26 = vld [vmem:[%s10735_s3 + $0x70] sm:$0xff] }
 0x5c1   : >> { %8567 = vmatprep.subr.bf16.mxu0 %v8566_v55 }
 0x5c3   : >> { %8153 = vmatpush3.bf16.msra.mxu1 %v8150_v8  ;;  %v2251_v8 = vld [vmem:[#allocation12 + $0x3c8] sm:$0xff] }
 0x5c4   : >> { %8569 = vmatpush3.bf16.msra.mxu0 %v8566_v55  ;;  %8155 = vmatprep.subr.bf16.mxu1 %v8154_v45  ;;  %v4054_v55 = vld [vmem:[#allocation12 + $0xa40] sm:$0xff]  ;;  %v8174_v10 = vpack.c.bf16 %v2251_v8, %v2250_v14  ;;  %v5550_v14 = vld [vmem:[%s10735_s3 + $0x31] sm:$0xff] }
 0x5c5   : >> { %8571 = vmatprep.subr.bf16.mxu0 %v8570_v37  ;;  %v11009_v8 = vld [vmem:[%s10735_s3 + $0x152] sm:$0xff] }
 0x5c7   : >> { %8157 = vmatpush3.bf16.msra.mxu1 %v8154_v45  ;;  %v11000_v45 = vld [vmem:[%s10735_s3 + $0x1b1] sm:$0xff] }
 0x5c8   : >> { %8573 = vmatpush3.bf16.msra.mxu0 %v8570_v37  ;;  %8159 = vmatprep.subr.bf16.mxu1 %v8158_v35  ;;  %v8590_v37 = vpack.c.bf16 %v4055_v6, %v4054_v55 }
 0x5c9   : >> { %8575 = vmatprep.subr.bf16.mxu0 %v8574_v48 }
 0x5ca   : >> { %6903 = vmatmul.mubr.f32.vlgmr.msra.gmra.mrb[0].mxu1 %v9318_v39  ;;  %v2257_v39 = vld [vmem:[#allocation12 + $0x3f8] sm:$0xff] }
 0x5cb   : >> { %8161 = vmatpush3.bf16.msra.mxu1 %v8158_v35  ;;  %7475 = vmatmul.mubr.f32.vlgmr.msra.gmra.mrb[0].mxu0 %v10971_v33  ;;  %v5549_v35 = vld [vmem:[%s10735_s3 + $0x21] sm:$0xff] }
 0x5cc   : >> { %8577 = vmatpush3.bf16.msra.mxu0 %v8574_v48  ;;  %8163 = vmatprep.subr.bf16.mxu1 %v8162_v15  ;;  %v5653_v48 = vld [vmem:[%s10735_s3 + $0x142] sm:$0xff] }
 0x5cd   : >> { %8579 = vmatprep.subr.bf16.mxu0 %v8578_v25  ;;  %6905 = vmatprep.mubr.f32.mxu1 %v5543_v19  ;;  %v8186_v19 = vpack.c.bf16 %v2257_v39, %v2256_v0  ;;  %v11028_v39 = vld [vmem:[%s10735_s3 + $0x192] sm:$0xff] }
 0x5ce   : >> { %7477 = vmatprep.mubr.f32.mxu0 %v10977_v42  ;;  %6906 = vmatmul.mubr.f32.gmra.mrb[2].mxu1 %v5544_v11  ;;  %v8602_v11 = vpack.c.bf16 %v4061_v4, %v4060_v41  ;;  %v2388_v4 = vld [vmem:[#allocation12 + $0x440] sm:$0xff] }
 0x5cf   : >> { %8165 = vmatpush3.bf16.msra.mxu1 %v8162_v15  ;;  %7478 = vmatmul.mubr.f32.gmra.mrb[2].mxu0 %v10981_v29  ;;  %v4058_v15 = vld [vmem:[#allocation12 + $0xa60] sm:$0xff] }
 0x5d0   : >> { %8581 = vmatpush3.bf16.msra.mxu0 %v8578_v25  ;;  %8167 = vmatprep.subr.bf16.mxu1 %v8166_v53  ;;  %v8182_v25 = vpack.c.bf16 %v2255_v13, %v2254_v36  ;;  %v2387_v36 = vld [vmem:[#allocation12 + $0x438] sm:$0xff]  ;;  %v4192_v13 = vld [vmem:[#allocation12 + $0xab0] sm:$0xff] }
 0x5d1   : >> { %8583 = vmatprep.subr.bf16.mxu0 %v8582_v56  ;;  %6908 = vmatprep.mubr.f32.mxu1 %v5545_v31  ;;  %v2382_v31 = vld [vmem:[#allocation12 + $0x410] sm:$0xff] }
 0x5d2   : >> { %7480 = vmatprep.mubr.f32.mxu0 %v10987_v30  ;;  %6909 = vmatmul.mubr.f32.gmra.mrb[4].mxu1 %v5546_v26  ;;  %v2383_v26 = vld [vmem:[#allocation12 + $0x418] sm:$0xff] }
 0x5d3   : >> { %8169 = vmatpush3.bf16.msra.mxu1 %v8166_v53  ;;  %7481 = vmatmul.mubr.f32.gmra.mrb[4].mxu0 %v10991_v34  ;;  %v2380_v53 = vld [vmem:[#allocation12 + $0x400] sm:$0xff]  ;;  %v8194_v55 = vpack.c.bf16 %v2383_v26, %v2382_v31  ;;  %v2390_v31 = vld [vmem:[#allocation12 + $0x450] sm:$0xff]  ;;  %v2391_v26 = vld [vmem:[#allocation12 + $0x458] sm:$0xff] }
 0x5d4   : >> { %8585 = vmatpush3.bf16.msra.mxu0 %v8582_v56  ;;  %8171 = vmatprep.subr.bf16.mxu1 %v8170_v32  ;;  %v2381_v56 = vld [vmem:[#allocation12 + $0x408] sm:$0xff] }
 0x5d5   : >> { %8587 = vmatprep.subr.bf16.mxu0 %v8586_v17  ;;  %6911 = vmatprep.mubr.f32.mxu1 %v10903_v38  ;;  %v4059_v38 = vld [vmem:[#allocation12 + $0xa68] sm:$0xff]  ;;  %v8190_v9 = vpack.c.bf16 %v2381_v56, %v2380_v53  ;;  %v11033_v56 = vld [vmem:[%s10735_s3 + $0x1a2] sm:$0xff] }
 0x5d6   : >> { %7483 = vmatprep.mubr.f32.mxu0 %v10996_v12  ;;  %6912 = vmatmul.mubr.f32.gmra.mrb[6].mxu1 %v5548_v3  ;;  %v8598_v7 = vpack.c.bf16 %v4059_v38, %v4058_v15  ;;  %v2384_v3 = vld [vmem:[#allocation12 + $0x420] sm:$0xff]  ;;  %v4193_v15 = vld [vmem:[#allocation12 + $0xab8] sm:$0xff]  ;;  %v4195_v53 = vld [vmem:[#allocation12 + $0xac8] sm:$0xff] }
 0x5d7   : >> { %8173 = vmatpush3.bf16.msra.mxu1 %v8170_v32  ;;  %7484 = vmatmul.mubr.f32.gmra.mrb[6].mxu0 %v11000_v45  ;;  %v4188_v32 = vld [vmem:[#allocation12 + $0xa90] sm:$0xff]  ;;  %v5553_v38 = vld [vmem:[%s10735_s3 + $0x61] sm:$0xff]  ;;  %v8618_v41 = vpack.c.bf16 %v4193_v15, %v4192_v13 }
 0x5d8   : >> { %8589 = vmatpush3.bf16.msra.mxu0 %v8586_v17  ;;  %8175 = vmatprep.subr.bf16.mxu1 %v8174_v10  ;;  %v4189_v17 = vld [vmem:[#allocation12 + $0xa98] sm:$0xff]  ;;  %v2521_v15 = vld [vmem:[#allocation12 + $0x480] sm:$0xff] }
 0x5d9   : >> { %8591 = vmatprep.subr.bf16.mxu0 %v8590_v37  ;;  %6946 = vmatprep.mubr.f32.mxu1 %v5549_v35  ;;  %v8610_v6 = vpack.c.bf16 %v4189_v17, %v4188_v32  ;;  %v4196_v32 = vld [vmem:[#allocation12 + $0xad0] sm:$0xff]  ;;  %v4197_v17 = vld [vmem:[#allocation12 + $0xad8] sm:$0xff] }
 0x5da   : >> { %7518 = vmatprep.mubr.f32.mxu0 %v5653_v48  ;;  %v11018_v48 = vld [vmem:[%s10735_s3 + $0x172] sm:$0xff] }
 0x5db   : >> { %8177 = vmatpush3.bf16.msra.mxu1 %v8174_v10  ;;  %v2385_v10 = vld [vmem:[#allocation12 + $0x428] sm:$0xff] }
 0x5dc   : >> { %8593 = vmatpush3.bf16.msra.mxu0 %v8590_v37  ;;  %8179 = vmatprep.subr.bf16.mxu1 %v8178_v54  ;;  %v4190_v37 = vld [vmem:[#allocation12 + $0xaa0] sm:$0xff]  ;;  %v8198_v35 = vpack.c.bf16 %v2385_v10, %v2384_v3  ;;  %v2393_v10 = vld [vmem:[#allocation12 + $0x468] sm:$0xff] }
 0x5dd   : >> { %8595 = vmatprep.subr.bf16.mxu0 %v8594_v16  ;;  %v2392_v3 = vld [vmem:[#allocation12 + $0x460] sm:$0xff] }
 0x5df   : >> { %8181 = vmatpush3.bf16.msra.mxu1 %v8178_v54  ;;  %v8614_v54 = vpack.c.bf16 %v4191_v1, %v4190_v37  ;;  %v4198_v37 = vld [vmem:[#allocation12 + $0xae0] sm:$0xff]  ;;  %v4199_v1 = vld [vmem:[#allocation12 + $0xae8] sm:$0xff] }
 0x5e0   : >> { %8597 = vmatpush3.bf16.msra.mxu0 %v8594_v16  ;;  %8183 = vmatprep.subr.bf16.mxu1 %v8182_v25  ;;  %v2386_v16 = vld [vmem:[#allocation12 + $0x430] sm:$0xff] }
 0x5e1   : >> { %8599 = vmatprep.subr.bf16.mxu0 %v8598_v7  ;;  %v8202_v0 = vpack.c.bf16 %v2387_v36, %v2386_v16  ;;  %v4201_v16 = vld [vmem:[#allocation12 + $0xaf8] sm:$0xff] }
 0x5e3   : >> { %8185 = vmatpush3.bf16.msra.mxu1 %v8182_v25  ;;  %v11024_v25 = vld [vmem:[%s10735_s3 + $0x182] sm:$0xff] }
 0x5e4   : >> { %8601 = vmatpush3.bf16.msra.mxu0 %v8598_v7  ;;  %8187 = vmatprep.subr.bf16.mxu1 %v8186_v19  ;;  %v5554_v7 = vld [vmem:[%s10735_s3 + $0x71] sm:$0xff] }
 0x5e5   : >> { %8603 = vmatprep.subr.bf16.mxu0 %v8602_v11 }
 0x5e7   : >> { %8189 = vmatpush3.bf16.msra.mxu1 %v8186_v19  ;;  %v2389_v19 = vld [vmem:[#allocation12 + $0x448] sm:$0xff] }
 0x5e8   : >> { %8605 = vmatpush3.bf16.msra.mxu0 %v8602_v11  ;;  %8191 = vmatprep.subr.bf16.mxu1 %v8190_v9  ;;  %v4194_v11 = vld [vmem:[#allocation12 + $0xac0] sm:$0xff]  ;;  %v8206_v23 = vpack.c.bf16 %v2389_v19, %v2388_v4  ;;  %v2523_v4 = vld [vmem:[#allocation12 + $0x490] sm:$0xff]  ;;  %v2524_v19 = vld [vmem:[#allocation12 + $0x498] sm:$0xff] }
 0x5e9   : >> { %8607 = vmatprep.subr.bf16.mxu0 %v8606_v27 }
 0x5ea   : >> { %6947 = vmatmul.mubr.f32.vlgmr.msra.gmra.mrb[0].mxu1 %v5550_v14  ;;  %v5557_v14 = vld [vmem:[%s10735_s3 + $0x22] sm:$0xff] }
 0x5eb   : >> { %8193 = vmatpush3.bf16.msra.mxu1 %v8190_v9  ;;  %7519 = vmatmul.mubr.f32.vlgmr.msra.gmra.mrb[0].mxu0 %v11009_v8  ;;  %v11037_v9 = vld [vmem:[%s10735_s3 + $0x1b2] sm:$0xff] }
 0x5ec   : >> { %8609 = vmatpush3.bf16.msra.mxu0 %v8606_v27  ;;  %8195 = vmatprep.subr.bf16.mxu1 %v8194_v55  ;;  %v8622_v27 = vpack.c.bf16 %v4195_v53, %v4194_v11  ;;  %v4326_v11 = vld [vmem:[#allocation12 + $0xb10] sm:$0xff]  ;;  %v4327_v53 = vld [vmem:[#allocation12 + $0xb18] sm:$0xff] }
 0x5ed   : >> { %8611 = vmatprep.subr.bf16.mxu0 %v8610_v6  ;;  %6949 = vmatprep.mubr.f32.mxu1 %v5551_v51  ;;  %v8630_v51 = vpack.c.bf16 %v4199_v1, %v4198_v37  ;;  %v2528_v37 = vld [vmem:[#allocation12 + $0x4b8] sm:$0xff]  ;;  %v4330_v1 = vld [vmem:[#allocation12 + $0xb30] sm:$0xff] }
 0x5ee   : >> { %7521 = vmatprep.mubr.f32.mxu0 %v11014_v43  ;;  %6950 = vmatmul.mubr.f32.gmra.mrb[2].mxu1 %v5552_v18  ;;  %v2394_v18 = vld [vmem:[#allocation12 + $0x470] sm:$0xff] }
 0x5ef   : >> { %8197 = vmatpush3.bf16.msra.mxu1 %v8194_v55  ;;  %7522 = vmatmul.mubr.f32.gmra.mrb[2].mxu0 %v11018_v48  ;;  %v8210_v55 = vpack.c.bf16 %v2391_v26, %v2390_v31  ;;  %v2525_v31 = vld [vmem:[#allocation12 + $0x4a0] sm:$0xff]  ;;  %v2526_v26 = vld [vmem:[#allocation12 + $0x4a8] sm:$0xff] }
 0x5f0   : >> { %8613 = vmatpush3.bf16.msra.mxu0 %v8610_v6  ;;  %8199 = vmatprep.subr.bf16.mxu1 %v8198_v35  ;;  %v8626_v6 = vpack.c.bf16 %v4197_v17, %v4196_v32  ;;  %v4328_v32 = vld [vmem:[#allocation12 + $0xb20] sm:$0xff]  ;;  %v4329_v17 = vld [vmem:[#allocation12 + $0xb28] sm:$0xff] }
 0x5f1   : >> { %8615 = vmatprep.subr.bf16.mxu0 %v8614_v54  ;;  %6952 = vmatprep.mubr.f32.mxu1 %v5553_v38  ;;  %v2522_v38 = vld [vmem:[#allocation12 + $0x488] sm:$0xff] }
 0x5f2   : >> { %7524 = vmatprep.mubr.f32.mxu0 %v11024_v25  ;;  %6953 = vmatmul.mubr.f32.gmra.mrb[4].mxu1 %v5554_v7  ;;  %v4325_v7 = vld [vmem:[#allocation12 + $0xb08] sm:$0xff] }
 0x5f3   : >> { %8201 = vmatpush3.bf16.msra.mxu1 %v8198_v35  ;;  %7525 = vmatmul.mubr.f32.gmra.mrb[4].mxu0 %v11028_v39  ;;  %v2395_v35 = vld [vmem:[#allocation12 + $0x478] sm:$0xff] }
 0x5f4   : >> { %8617 = vmatpush3.bf16.msra.mxu0 %v8614_v54  ;;  %8203 = vmatprep.subr.bf16.mxu1 %v8202_v0  ;;  %v4200_v54 = vld [vmem:[#allocation12 + $0xaf0] sm:$0xff]  ;;  %v8218_v36 = vpack.c.bf16 %v2395_v35, %v2394_v18 }
 0x5f5   : >> { %8619 = vmatprep.subr.bf16.mxu0 %v8618_v41  ;;  %6955 = vmatprep.mubr.f32.mxu1 %v10922_v44  ;;  %v8214_v44 = vpack.c.bf16 %v2393_v10, %v2392_v3  ;;  %v8634_v13 = vpack.c.bf16 %v4201_v16, %v4200_v54  ;;  %v8646_v3 = vpack.c.bf16 %v4329_v17, %v4328_v32  ;;  %v2527_v10 = vld [vmem:[#allocation12 + $0x4b0] sm:$0xff]  ;;  %v2529_v54 = vld [vmem:[#allocation12 + $0x4c0] sm:$0xff]  ;;  %v2530_v16 = vld [vmem:[#allocation12 + $0x4c8] sm:$0xff] }
 0x5f6   : >> { %7527 = vmatprep.mubr.f32.mxu0 %v11033_v56  ;;  %6956 = vmatmul.mubr.f32.gmra.mrb[6].mxu1 %v5556_v5  ;;  %v5558_v5 = vld [vmem:[%s10735_s3 + $0x32] sm:$0xff]  ;;  %v8234_v18 = vpack.c.bf16 %v2528_v37, %v2527_v10 }
 0x5f7   : >> { %8205 = vmatpush3.bf16.msra.mxu1 %v8202_v0  ;;  %7528 = vmatmul.mubr.f32.gmra.mrb[6].mxu0 %v11037_v9  ;;  %v8222_v0 = vpack.c.bf16 %v2522_v38, %v2521_v15  ;;  %v11056_v15 = vld [vmem:[%s10735_s3 + $0x1c0] sm:$0xff]  ;;  %v2661_v37 = vld [vmem:[#allocation12 + $0x510] sm:$0xff] }
 0x5f8   : >> { %8621 = vmatpush3.bf16.msra.mxu0 %v8618_v41  ;;  %8207 = vmatprep.subr.bf16.mxu1 %v8206_v23 }
 0x5f9   : >> { %8623 = vmatprep.subr.bf16.mxu0 %v8622_v27  ;;  %6990 = vmatprep.mubr.f32.mxu1 %v5557_v14  ;;  %v5559_v14 = vld [vmem:[%s10735_s3 + $0x42] sm:$0xff] }
 0x5fa   : >> { %7562 = vmatprep.mubr.f32.mxu0 %v10931_v40  ;;  %v4324_v40 = vld [vmem:[#allocation12 + $0xb00] sm:$0xff] }
 0x5fb   : >> { %8209 = vmatpush3.bf16.msra.mxu1 %v8206_v23  ;;  %v8638_v41 = vpack.c.bf16 %v4325_v7, %v4324_v40  ;;  %v8226_v23 = vpack.c.bf16 %v2524_v19, %v2523_v4  ;;  %v2531_v40 = vld [vmem:[#allocation12 + $0x4d0] sm:$0xff]  ;;  %v2532_v7 = vld [vmem:[#allocation12 + $0x4d8] sm:$0xff]  ;;  %v2533_v19 = vld [vmem:[#allocation12 + $0x4e0] sm:$0xff] }
 0x5fc   : >> { %8625 = vmatpush3.bf16.msra.mxu0 %v8622_v27  ;;  %8211 = vmatprep.subr.bf16.mxu1 %v8210_v55  ;;  %v8642_v27 = vpack.c.bf16 %v4327_v53, %v4326_v11  ;;  %v2534_v11 = vld [vmem:[#allocation12 + $0x4e8] sm:$0xff]  ;;  %v4336_v53 = vld [vmem:[#allocation12 + $0xb60] sm:$0xff] }
 0x5fd   : >> { %8627 = vmatprep.subr.bf16.mxu0 %v8626_v6 }
 0x5ff   : >> { %8213 = vmatpush3.bf16.msra.mxu1 %v8210_v55  ;;  %v5560_v55 = vld [vmem:[%s10735_s3 + $0x52] sm:$0xff] }
 0x600   : >> { %8629 = vmatpush3.bf16.msra.mxu0 %v8626_v6  ;;  %8215 = vmatprep.subr.bf16.mxu1 %v8214_v44  ;;  %v8230_v6 = vpack.c.bf16 %v2526_v26, %v2525_v31  ;;  %v4338_v31 = vld [vmem:[#allocation12 + $0xb70] sm:$0xff]  ;;  %v4339_v26 = vld [vmem:[#allocation12 + $0xb78] sm:$0xff] }
 0x601   : >> { %8631 = vmatprep.subr.bf16.mxu0 %v8630_v51  ;;  %v8666_v17 = vpack.c.bf16 %v4339_v26, %v4338_v31  ;;  %v2669_v31 = vld [vmem:[#allocation12 + $0x550] sm:$0xff]  ;;  %v2670_v26 = vld [vmem:[#allocation12 + $0x558] sm:$0xff] }
 0x603   : >> { %8217 = vmatpush3.bf16.msra.mxu1 %v8214_v44  ;;  %v4331_v44 = vld [vmem:[#allocation12 + $0xb38] sm:$0xff] }
 0x604   : >> { %8633 = vmatpush3.bf16.msra.mxu0 %v8630_v51  ;;  %8219 = vmatprep.subr.bf16.mxu1 %v8218_v36  ;;  %v5561_v51 = vld [vmem:[%s10735_s3 + $0x62] sm:$0xff]  ;;  %v8650_v35 = vpack.c.bf16 %v4331_v44, %v4330_v1  ;;  %v2662_v1 = vld [vmem:[#allocation12 + $0x518] sm:$0xff]  ;;  %v4464_v44 = vld [vmem:[#allocation12 + $0xb90] sm:$0xff] }
 0x605   : >> { %8635 = vmatprep.subr.bf16.mxu0 %v8634_v13 }
 0x607   : >> { %8221 = vmatpush3.bf16.msra.mxu1 %v8218_v36  ;;  %v4332_v36 = vld [vmem:[#allocation12 + $0xb40] sm:$0xff] }
 0x608   : >> { %8637 = vmatpush3.bf16.msra.mxu0 %v8634_v13  ;;  %8223 = vmatprep.subr.bf16.mxu1 %v8222_v0  ;;  %v4333_v13 = vld [vmem:[#allocation12 + $0xb48] sm:$0xff] }
 0x609   : >> { %8639 = vmatprep.subr.bf16.mxu0 %v8638_v41  ;;  %v8654_v38 = vpack.c.bf16 %v4333_v13, %v4332_v36  ;;  %v4466_v36 = vld [vmem:[#allocation12 + $0xba0] sm:$0xff]  ;;  %v4467_v13 = vld [vmem:[#allocation12 + $0xba8] sm:$0xff] }
 0x60a   : >> { %6991 = vmatmul.mubr.f32.vlgmr.msra.gmra.mrb[0].mxu1 %v5558_v5  ;;  %v4337_v5 = vld [vmem:[#allocation12 + $0xb68] sm:$0xff] }
 0x60b   : >> { %8225 = vmatpush3.bf16.msra.mxu1 %v8222_v0  ;;  %7563 = vmatmul.mubr.f32.vlgmr.msra.gmra.mrb[0].mxu0 %v10936_v2  ;;  %v5562_v2 = vld [vmem:[%s10735_s3 + $0x72] sm:$0xff] }
 0x60c   : >> { %8641 = vmatpush3.bf16.msra.mxu0 %v8638_v41  ;;  %8227 = vmatprep.subr.bf16.mxu1 %v8226_v23  ;;  %v4334_v0 = vld [vmem:[#allocation12 + $0xb50] sm:$0xff]  ;;  %v4335_v41 = vld [vmem:[#allocation12 + $0xb58] sm:$0xff] }
 0x60d   : >> { %8643 = vmatprep.subr.bf16.mxu0 %v8642_v27  ;;  %6993 = vmatprep.mubr.f32.mxu1 %v5559_v14  ;;  %v8658_v4 = vpack.c.bf16 %v4335_v41, %v4334_v0  ;;  %v2659_v14 = vld [vmem:[#allocation12 + $0x500] sm:$0xff]  ;;  %v2666_v0 = vld [vmem:[#allocation12 + $0x538] sm:$0xff]  ;;  %v4468_v41 = vld [vmem:[#allocation12 + $0xbb0] sm:$0xff] }
 0x60e   : >> { %7565 = vmatprep.mubr.f32.mxu0 %v10939_v49  ;;  %6994 = vmatmul.mubr.f32.gmra.mrb[2].mxu1 %v5560_v55  ;;  %v5564_v49 = vld [vmem:[%s10735_s3 + $0x92] sm:$0xff]  ;;  %v2660_v55 = vld [vmem:[#allocation12 + $0x508] sm:$0xff] }
 0x60f   : >> { %8229 = vmatpush3.bf16.msra.mxu1 %v8226_v23  ;;  %7566 = vmatmul.mubr.f32.gmra.mrb[2].mxu0 %v10946_v24  ;;  %v8238_v24 = vpack.c.bf16 %v2530_v16, %v2529_v54  ;;  %v2535_v23 = vld [vmem:[#allocation12 + $0x4f0] sm:$0xff]  ;;  %v2663_v54 = vld [vmem:[#allocation12 + $0x520] sm:$0xff]  ;;  %v2664_v16 = vld [vmem:[#allocation12 + $0x528] sm:$0xff] }
 0x610   : >> { %8645 = vmatpush3.bf16.msra.mxu0 %v8642_v27  ;;  %8231 = vmatprep.subr.bf16.mxu1 %v8230_v6  ;;  %v2536_v27 = vld [vmem:[#allocation12 + $0x4f8] sm:$0xff] }
 0x611   : >> { %8647 = vmatprep.subr.bf16.mxu0 %v8646_v3  ;;  %6996 = vmatprep.mubr.f32.mxu1 %v5561_v51  ;;  %v8250_v32 = vpack.c.bf16 %v2536_v27, %v2535_v23  ;;  %v4465_v51 = vld [vmem:[#allocation12 + $0xb98] sm:$0xff] }
 0x612   : >> { %7568 = vmatprep.mubr.f32.mxu0 %v10949_v46  ;;  %6997 = vmatmul.mubr.f32.gmra.mrb[4].mxu1 %v5562_v2  ;;  %v5565_v46 = vld [vmem:[%s10735_s3 + $0xa0] sm:$0xff]  ;;  %v11064_v2 = vld [vmem:[%s10735_s3 + $0xb0] sm:$0xff] }
 0x613   : >> { %8233 = vmatpush3.bf16.msra.mxu1 %v8230_v6  ;;  %7569 = vmatmul.mubr.f32.gmra.mrb[4].mxu0 %v10956_v52  ;;  %v8242_v52 = vpack.c.bf16 %v2532_v7, %v2531_v40  ;;  %v4463_v6 = vld [vmem:[#allocation12 + $0xb88] sm:$0xff]  ;;  %v8678_v40 = vpack.c.bf16 %v4467_v13, %v4466_v36  ;;  %v2665_v7 = vld [vmem:[#allocation12 + $0x530] sm:$0xff]  ;;  %v11095_v23 = vld [vmem:[%s10735_s3 + $0x1c1] sm:$0xff] }
 0x614   : >> { %8649 = vmatpush3.bf16.msra.mxu0 %v8646_v3  ;;  %8235 = vmatprep.subr.bf16.mxu1 %v8234_v18  ;;  %v8254_v3 = vpack.c.bf16 %v2660_v55, %v2659_v14  ;;  %v2671_v55 = vld [vmem:[#allocation12 + $0x560] sm:$0xff]  ;;  %v4603_v36 = vld [vmem:[#allocation12 + $0xc08] sm:$0xff] }
 0x615   : >> { %8651 = vmatprep.subr.bf16.mxu0 %v8650_v35  ;;  %6999 = vmatprep.mubr.f32.mxu1 %v10959_v50  ;;  %v8246_v50 = vpack.c.bf16 %v2534_v11, %v2533_v19  ;;  %v2667_v11 = vld [vmem:[#allocation12 + $0x540] sm:$0xff] }
 0x616   : >> { %7571 = vmatprep.mubr.f32.mxu0 %v10962_v47  ;;  %7000 = vmatmul.mubr.f32.gmra.mrb[6].mxu1 %v5564_v49  ;;  %v8662_v47 = vpack.c.bf16 %v4337_v5, %v4336_v53  ;;  %v11068_v49 = vld [vmem:[%s10735_s3 + $0xc0] sm:$0xff]  ;;  %v2668_v53 = vld [vmem:[#allocation12 + $0x548] sm:$0xff] }
 0x617   : >> { %8237 = vmatpush3.bf16.msra.mxu1 %v8234_v18  ;;  %7572 = vmatmul.mubr.f32.gmra.mrb[6].mxu0 %v11056_v15  ;;  %v8258_v18 = vpack.c.bf16 %v2662_v1, %v2661_v37  ;;  %v4471_v5 = vld [vmem:[#allocation12 + $0xbc8] sm:$0xff]  ;;  %v2673_v37 = vld [vmem:[#allocation12 + $0x570] sm:$0xff]  ;;  %v2674_v1 = vld [vmem:[#allocation12 + $0x578] sm:$0xff] }
 0x618   : >> { %8653 = vmatpush3.bf16.msra.mxu0 %v8650_v35  ;;  %8239 = vmatprep.subr.bf16.mxu1 %v8238_v24  ;;  %v8674_v35 = vpack.c.bf16 %v4465_v51, %v4464_v44  ;;  %v4476_v44 = vld [vmem:[#allocation12 + $0xbf0] sm:$0xff]  ;;  %v4477_v51 = vld [vmem:[#allocation12 + $0xbf8] sm:$0xff] }
 0x619   : >> { %8655 = vmatprep.subr.bf16.mxu0 %v8654_v38  ;;  %7034 = vmatprep.mubr.f32.mxu1 %v5565_v46  ;;  %v4469_v46 = vld [vmem:[#allocation12 + $0xbb8] sm:$0xff] }
 0x61a   : >> { %7606 = vmatprep.mubr.f32.mxu0 %v10971_v33  ;;  %v4462_v33 = vld [vmem:[#allocation12 + $0xb80] sm:$0xff]  ;;  %v8682_v19 = vpack.c.bf16 %v4469_v46, %v4468_v41  ;;  %v4605_v41 = vld [vmem:[#allocation12 + $0xc18] sm:$0xff]  ;;  %v5574_v46 = vld [vmem:[%s10735_s3 + $0xb1] sm:$0xff] }
 0x61b   : >> { %8241 = vmatpush3.bf16.msra.mxu1 %v8238_v24  ;;  %v8670_v10 = vpack.c.bf16 %v4463_v6, %v4462_v33  ;;  %v11072_v24 = vld [vmem:[%s10735_s3 + $0xd0] sm:$0xff]  ;;  %v4474_v6 = vld [vmem:[#allocation12 + $0xbe0] sm:$0xff] }
 0x61c   : >> { %8657 = vmatpush3.bf16.msra.mxu0 %v8654_v38  ;;  %8243 = vmatprep.subr.bf16.mxu1 %v8242_v52  ;;  %v8262_v38 = vpack.c.bf16 %v2664_v16, %v2663_v54  ;;  %v2672_v33 = vld [vmem:[#allocation12 + $0x568] sm:$0xff]  ;;  %v2797_v54 = vld [vmem:[#allocation12 + $0x580] sm:$0xff] }
 0x61d   : >> { %8659 = vmatprep.subr.bf16.mxu0 %v8658_v4  ;;  %v2798_v16 = vld [vmem:[#allocation12 + $0x588] sm:$0xff] }
 0x61e   : >> { %v8286_v13 = vpack.c.bf16 %v2798_v16, %v2797_v54  ;;  %v5581_v54 = vld [vmem:[%s10735_s3 + $0xa2] sm:$0xff] }
 0x61f   : >> { %8245 = vmatpush3.bf16.msra.mxu1 %v8242_v52  ;;  %v11078_v52 = vld [vmem:[%s10735_s3 + $0xe0] sm:$0xff] }
 0x620   : >> { %8661 = vmatpush3.bf16.msra.mxu0 %v8658_v4  ;;  %8247 = vmatprep.subr.bf16.mxu1 %v8246_v50  ;;  %v8266_v4 = vpack.c.bf16 %v2666_v0, %v2665_v7  ;;  %v2800_v7 = vld [vmem:[#allocation12 + $0x598] sm:$0xff]  ;;  %v4604_v0 = vld [vmem:[#allocation12 + $0xc10] sm:$0xff] }
 0x621   : >> { %8663 = vmatprep.subr.bf16.mxu0 %v8662_v47 }
 0x623   : >> { %8249 = vmatpush3.bf16.msra.mxu1 %v8246_v50  ;;  %v11092_v50 = vld [vmem:[%s10735_s3 + $0x110] sm:$0xff] }
 0x624   : >> { %8665 = vmatpush3.bf16.msra.mxu0 %v8662_v47  ;;  %8251 = vmatprep.subr.bf16.mxu1 %v8250_v32  ;;  %v8270_v47 = vpack.c.bf16 %v2668_v53, %v2667_v11  ;;  %v2801_v11 = vld [vmem:[#allocation12 + $0x5a0] sm:$0xff]  ;;  %v2802_v53 = vld [vmem:[#allocation12 + $0x5a8] sm:$0xff] }
 0x625   : >> { %8667 = vmatprep.subr.bf16.mxu0 %v8666_v17 }
 0x627   : >> { %8253 = vmatpush3.bf16.msra.mxu1 %v8250_v32  ;;  %v4473_v32 = vld [vmem:[#allocation12 + $0xbd8] sm:$0xff] }
 0x628   : >> { %8669 = vmatpush3.bf16.msra.mxu0 %v8666_v17  ;;  %8255 = vmatprep.subr.bf16.mxu1 %v8254_v3  ;;  %v8274_v17 = vpack.c.bf16 %v2670_v26, %v2669_v31  ;;  %v8294_v31 = vpack.c.bf16 %v2802_v53, %v2801_v11  ;;  %v2937_v53 = vld [vmem:[#allocation12 + $0x600] sm:$0xff] }
 0x629   : >> { %8671 = vmatprep.subr.bf16.mxu0 %v8670_v10 }
 0x62a   : >> { %7035 = vmatmul.mubr.f32.vlgmr.msra.gmra.mrb[0].mxu1 %v11064_v2 }
 0x62b   : >> { %8257 = vmatpush3.bf16.msra.mxu1 %v8254_v3  ;;  %7607 = vmatmul.mubr.f32.vlgmr.msra.gmra.mrb[0].mxu0 %v10977_v42  ;;  %v11082_v42 = vld [vmem:[%s10735_s3 + $0xf0] sm:$0xff] }
 0x62c   : >> { %8673 = vmatpush3.bf16.msra.mxu0 %v8670_v10  ;;  %8259 = vmatprep.subr.bf16.mxu1 %v8258_v18  ;;  %v4475_v3 = vld [vmem:[#allocation12 + $0xbe8] sm:$0xff] }
 0x62d   : >> { %8675 = vmatprep.subr.bf16.mxu0 %v8674_v35  ;;  %7037 = vmatprep.mubr.f32.mxu1 %v11068_v49  ;;  %v8694_v10 = vpack.c.bf16 %v4475_v3, %v4474_v6  ;;  %v2805_v6 = vld [vmem:[#allocation12 + $0x5c0] sm:$0xff]  ;;  %v2806_v3 = vld [vmem:[#allocation12 + $0x5c8] sm:$0xff] }
 0x62e   : >> { %7609 = vmatprep.mubr.f32.mxu0 %v10981_v29  ;;  %7038 = vmatmul.mubr.f32.gmra.mrb[2].mxu1 %v11072_v24  ;;  %v4470_v29 = vld [vmem:[#allocation12 + $0xbc0] sm:$0xff] }
 0x62f   : >> { %8261 = vmatpush3.bf16.msra.mxu1 %v8258_v18  ;;  %7610 = vmatmul.mubr.f32.gmra.mrb[2].mxu0 %v10987_v30  ;;  %v11088_v30 = vld [vmem:[%s10735_s3 + $0x100] sm:$0xff]  ;;  %v8686_v27 = vpack.c.bf16 %v4471_v5, %v4470_v29  ;;  %v8282_v18 = vpack.c.bf16 %v2674_v1, %v2673_v37  ;;  %v4607_v5 = vld [vmem:[#allocation12 + $0xc28] sm:$0xff]  ;;  %v8302_v37 = vpack.c.bf16 %v2806_v3, %v2805_v6 }
 0x630   : >> { %8677 = vmatpush3.bf16.msra.mxu0 %v8674_v35  ;;  %8263 = vmatprep.subr.bf16.mxu1 %v8262_v38  ;;  %v8698_v35 = vpack.c.bf16 %v4477_v51, %v4476_v44  ;;  %v4606_v29 = vld [vmem:[#allocation12 + $0xc20] sm:$0xff]  ;;  %v2807_v51 = vld [vmem:[#allocation12 + $0x5d0] sm:$0xff]  ;;  %v2942_v6 = vld [vmem:[#allocation12 + $0x628] sm:$0xff] }
 0x631   : >> { %8679 = vmatprep.subr.bf16.mxu0 %v8678_v40  ;;  %7040 = vmatprep.mubr.f32.mxu1 %v11078_v52  ;;  %v8710_v26 = vpack.c.bf16 %v4607_v5, %v4606_v29  ;;  %v11116_v1 = vld [vmem:[%s10735_s3 + $0x1c2] sm:$0xff]  ;;  %v2938_v29 = vld [vmem:[#allocation12 + $0x608] sm:$0xff] }
 0x632   : >> { %7612 = vmatprep.mubr.f32.mxu0 %v10991_v34  ;;  %7041 = vmatmul.mubr.f32.gmra.mrb[4].mxu1 %v11082_v42  ;;  %v4472_v34 = vld [vmem:[#allocation12 + $0xbd0] sm:$0xff]  ;;  %v4740_v5 = vld [vmem:[#allocation12 + $0xc80] sm:$0xff] }
 0x633   : >> { %8265 = vmatpush3.bf16.msra.mxu1 %v8262_v38  ;;  %7613 = vmatmul.mubr.f32.gmra.mrb[4].mxu0 %v10996_v12  ;;  %v5573_v12 = vld [vmem:[%s10735_s3 + $0xa1] sm:$0xff]  ;;  %v8690_v14 = vpack.c.bf16 %v4473_v32, %v4472_v34  ;;  %v2803_v34 = vld [vmem:[#allocation12 + $0x5b0] sm:$0xff] }
 0x634   : >> { %8681 = vmatpush3.bf16.msra.mxu0 %v8678_v40  ;;  %8267 = vmatprep.subr.bf16.mxu1 %v8266_v4  ;;  %v2799_v40 = vld [vmem:[#allocation12 + $0x590] sm:$0xff]  ;;  %v2804_v32 = vld [vmem:[#allocation12 + $0x5b8] sm:$0xff]  ;;  %v4744_v3 = vld [vmem:[#allocation12 + $0xca0] sm:$0xff] }
 0x635   : >> { %8683 = vmatprep.subr.bf16.mxu0 %v8682_v19  ;;  %7043 = vmatprep.mubr.f32.mxu1 %v11088_v30 }
 0x636   : >> { %7615 = vmatprep.mubr.f32.mxu0 %v11000_v45  ;;  %7044 = vmatmul.mubr.f32.gmra.mrb[6].mxu1 %v11092_v50  ;;  %v8278_v45 = vpack.c.bf16 %v2672_v33, %v2671_v55  ;;  %v8298_v55 = vpack.c.bf16 %v2804_v32, %v2803_v34  ;;  %v2940_v34 = vld [vmem:[#allocation12 + $0x618] sm:$0xff]  ;;  %v4742_v32 = vld [vmem:[#allocation12 + $0xc90] sm:$0xff] }
 0x637   : >> { %8269 = vmatpush3.bf16.msra.mxu1 %v8266_v4  ;;  %7616 = vmatmul.mubr.f32.gmra.mrb[6].mxu0 %v11095_v23  ;;  %v8290_v4 = vpack.c.bf16 %v2800_v7, %v2799_v40  ;;  %v4615_v40 = vld [vmem:[#allocation12 + $0xc68] sm:$0xff] }
 0x638   : >> { %8685 = vmatpush3.bf16.msra.mxu0 %v8682_v19  ;;  %8271 = vmatprep.subr.bf16.mxu1 %v8270_v47  ;;  %v8706_v19 = vpack.c.bf16 %v4605_v41, %v4604_v0  ;;  %v2811_v0 = vld [vmem:[#allocation12 + $0x5f0] sm:$0xff]  ;;  %v2812_v41 = vld [vmem:[#allocation12 + $0x5f8] sm:$0xff] }
 0x639   : >> { %8687 = vmatprep.subr.bf16.mxu0 %v8686_v27  ;;  %7078 = vmatprep.mubr.f32.mxu1 %v5573_v12  ;;  %v4608_v12 = vld [vmem:[#allocation12 + $0xc30] sm:$0xff] }
 0x63a   : >> { %7650 = vmatprep.mubr.f32.mxu0 %v11009_v8  ;;  %v4602_v8 = vld [vmem:[#allocation12 + $0xc00] sm:$0xff] }
 0x63b   : >> { %8273 = vmatpush3.bf16.msra.mxu1 %v8270_v47  ;;  %v8702_v38 = vpack.c.bf16 %v4603_v36, %v4602_v8  ;;  %v5575_v47 = vld [vmem:[%s10735_s3 + $0xc1] sm:$0xff] }
 0x63c   : >> { %8689 = vmatpush3.bf16.msra.mxu0 %v8686_v27  ;;  %8275 = vmatprep.subr.bf16.mxu1 %v8274_v17  ;;  %v5576_v27 = vld [vmem:[%s10735_s3 + $0xd1] sm:$0xff]  ;;  %v2809_v36 = vld [vmem:[#allocation12 + $0x5e0] sm:$0xff] }
 0x63d   : >> { %8691 = vmatprep.subr.bf16.mxu0 %v8690_v14 }
 0x63f   : >> { %8277 = vmatpush3.bf16.msra.mxu1 %v8274_v17  ;;  %v4609_v17 = vld [vmem:[#allocation12 + $0xc38] sm:$0xff] }
 0x640   : >> { %8693 = vmatpush3.bf16.msra.mxu0 %v8690_v14  ;;  %8279 = vmatprep.subr.bf16.mxu1 %v8278_v45  ;;  %v5577_v14 = vld [vmem:[%s10735_s3 + $0xe1] sm:$0xff]  ;;  %v8714_v33 = vpack.c.bf16 %v4609_v17, %v4608_v12  ;;  %v5582_v17 = vld [vmem:[%s10735_s3 + $0xb2] sm:$0xff] }
 0x641   : >> { %8695 = vmatprep.subr.bf16.mxu0 %v8694_v10  ;;  %v4743_v12 = vld [vmem:[#allocation12 + $0xc98] sm:$0xff] }
 0x643   : >> { %8281 = vmatpush3.bf16.msra.mxu1 %v8278_v45  ;;  %v4610_v45 = vld [vmem:[#allocation12 + $0xc40] sm:$0xff] }
 0x644   : >> { %8697 = vmatpush3.bf16.msra.mxu0 %v8694_v10  ;;  %8283 = vmatprep.subr.bf16.mxu1 %v8282_v18  ;;  %v4611_v10 = vld [vmem:[#allocation12 + $0xc48] sm:$0xff] }
 0x645   : >> { %8699 = vmatprep.subr.bf16.mxu0 %v8698_v35  ;;  %v8718_v44 = vpack.c.bf16 %v4611_v10, %v4610_v45  ;;  %v4745_v45 = vld [vmem:[#allocation12 + $0xca8] sm:$0xff]  ;;  %v5583_v10 = vld [vmem:[%s10735_s3 + $0xc2] sm:$0xff] }
 0x647   : >> { %8285 = vmatpush3.bf16.msra.mxu1 %v8282_v18  ;;  %v2808_v18 = vld [vmem:[#allocation12 + $0x5d8] sm:$0xff] }
 0x648   : >> { %8701 = vmatpush3.bf16.msra.mxu0 %v8698_v35  ;;  %8287 = vmatprep.subr.bf16.mxu1 %v8286_v13  ;;  %v4612_v35 = vld [vmem:[#allocation12 + $0xc50] sm:$0xff]  ;;  %v8306_v16 = vpack.c.bf16 %v2808_v18, %v2807_v51  ;;  %v8742_v51 = vpack.c.bf16 %v4745_v45, %v4744_v3  ;;  %v4878_v45 = vld [vmem:[#allocation12 + $0xd00] sm:$0xff] }
 0x649   : >> { %8703 = vmatprep.subr.bf16.mxu0 %v8702_v38  ;;  %v2943_v18 = vld [vmem:[#allocation12 + $0x630] sm:$0xff] }
 0x64a   : >> { %7079 = vmatmul.mubr.f32.vlgmr.msra.gmra.mrb[0].mxu1 %v5574_v46  ;;  %v4616_v46 = vld [vmem:[#allocation12 + $0xc70] sm:$0xff] }
 0x64b   : >> { %8289 = vmatpush3.bf16.msra.mxu1 %v8286_v13  ;;  %7651 = vmatmul.mubr.f32.vlgmr.msra.gmra.mrb[0].mxu0 %v11014_v43  ;;  %v5578_v43 = vld [vmem:[%s10735_s3 + $0xf1] sm:$0xff] }
 0x64c   : >> { %8705 = vmatpush3.bf16.msra.mxu0 %v8702_v38  ;;  %8291 = vmatprep.subr.bf16.mxu1 %v8290_v4  ;;  %v2810_v13 = vld [vmem:[#allocation12 + $0x5e8] sm:$0xff]  ;;  %v4614_v38 = vld [vmem:[#allocation12 + $0xc60] sm:$0xff] }
 0x64d   : >> { %8707 = vmatprep.subr.bf16.mxu0 %v8706_v19  ;;  %7081 = vmatprep.mubr.f32.mxu1 %v5575_v47  ;;  %v8726_v7 = vpack.c.bf16 %v4615_v40, %v4614_v38  ;;  %v4741_v47 = vld [vmem:[#allocation12 + $0xc88] sm:$0xff]  ;;  %v2945_v40 = vld [vmem:[#allocation12 + $0x640] sm:$0xff] }
 0x64e   : >> { %7653 = vmatprep.mubr.f32.mxu0 %v11018_v48  ;;  %7082 = vmatmul.mubr.f32.gmra.mrb[2].mxu1 %v5576_v27  ;;  %v5579_v48 = vld [vmem:[%s10735_s3 + $0x101] sm:$0xff]  ;;  %v8318_v27 = vpack.c.bf16 %v2938_v29, %v2937_v53  ;;  %v2947_v53 = vld [vmem:[#allocation12 + $0x650] sm:$0xff] }
 0x64f   : >> { %8293 = vmatpush3.bf16.msra.mxu1 %v8290_v4  ;;  %7654 = vmatmul.mubr.f32.gmra.mrb[2].mxu0 %v11024_v25  ;;  %v5580_v25 = vld [vmem:[%s10735_s3 + $0x111] sm:$0xff]  ;;  %v4617_v4 = vld [vmem:[#allocation12 + $0xc78] sm:$0xff] }
 0x650   : >> { %8709 = vmatpush3.bf16.msra.mxu0 %v8706_v19  ;;  %8295 = vmatprep.subr.bf16.mxu1 %v8294_v31  ;;  %v8314_v19 = vpack.c.bf16 %v2812_v41, %v2811_v0  ;;  %v8730_v11 = vpack.c.bf16 %v4617_v4, %v4616_v46  ;;  %v4749_v0 = vld [vmem:[#allocation12 + $0xcc8] sm:$0xff]  ;;  %v5587_v41 = vld [vmem:[%s10735_s3 + $0x102] sm:$0xff]  ;;  %v5588_v46 = vld [vmem:[%s10735_s3 + $0x112] sm:$0xff] }
 0x651   : >> { %8711 = vmatprep.subr.bf16.mxu0 %v8710_v26  ;;  %7084 = vmatprep.mubr.f32.mxu1 %v5577_v14  ;;  %v5686_v14 = vld [vmem:[%s10735_s3 + $0x170] sm:$0xff]  ;;  %v2948_v29 = vld [vmem:[#allocation12 + $0x658] sm:$0xff] }
 0x652   : >> { %7656 = vmatprep.mubr.f32.mxu0 %v11028_v39  ;;  %7085 = vmatmul.mubr.f32.gmra.mrb[4].mxu1 %v5578_v43  ;;  %v4613_v39 = vld [vmem:[#allocation12 + $0xc58] sm:$0xff] }
 0x653   : >> { %8297 = vmatpush3.bf16.msra.mxu1 %v8294_v31  ;;  %7657 = vmatmul.mubr.f32.gmra.mrb[4].mxu0 %v11033_v56  ;;  %v5685_v56 = vld [vmem:[%s10735_s3 + $0x160] sm:$0xff]  ;;  %v8722_v8 = vpack.c.bf16 %v4613_v39, %v4612_v35  ;;  %v8734_v31 = vpack.c.bf16 %v4741_v47, %v4740_v5  ;;  %v4746_v39 = vld [vmem:[#allocation12 + $0xcb0] sm:$0xff] }
 0x654   : >> { %8713 = vmatpush3.bf16.msra.mxu0 %v8710_v26  ;;  %8299 = vmatprep.subr.bf16.mxu1 %v8298_v55  ;;  %v2939_v26 = vld [vmem:[#allocation12 + $0x610] sm:$0xff]  ;;  %v2944_v35 = vld [vmem:[#allocation12 + $0x638] sm:$0xff] }
 0x655   : >> { %8715 = vmatprep.subr.bf16.mxu0 %v8714_v33  ;;  %7087 = vmatprep.mubr.f32.mxu1 %v5579_v48  ;;  %v8322_v43 = vpack.c.bf16 %v2940_v34, %v2939_v26  ;;  %v5584_v48 = vld [vmem:[%s10735_s3 + $0xd2] sm:$0xff]  ;;  %v4751_v47 = vld [vmem:[#allocation12 + $0xcd8] sm:$0xff]  ;;  %v2949_v34 = vld [vmem:[#allocation12 + $0x660] sm:$0xff] }
 0x656   : >> { %7659 = vmatprep.mubr.f32.mxu0 %v11037_v9  ;;  %7088 = vmatmul.mubr.f32.gmra.mrb[6].mxu1 %v5580_v25  ;;  %v8310_v9 = vpack.c.bf16 %v2810_v13, %v2809_v36  ;;  %v5687_v25 = vld [vmem:[%s10735_s3 + $0x180] sm:$0xff]  ;;  %v8330_v36 = vpack.c.bf16 %v2944_v35, %v2943_v18  ;;  %v5690_v13 = vld [vmem:[%s10735_s3 + $0x1b0] sm:$0xff]  ;;  %v8802_v35 = vpack.c.bf16 %v10701_v60, %v10699_v59 }
 0x657   : >> { %8301 = vmatpush3.bf16.msra.mxu1 %v8298_v55  ;;  %7660 = vmatmul.mubr.f32.gmra.mrb[6].mxu0 %v11116_v1  ;;  %v8738_v55 = vpack.c.bf16 %v4743_v12, %v4742_v32  ;;  %v4750_v5 = vld [vmem:[#allocation12 + $0xcd0] sm:$0xff]  ;;  %v2950_v32 = vld [vmem:[#allocation12 + $0x668] sm:$0xff]  ;;  %v4752_v12 = vld [vmem:[#allocation12 + $0xce0] sm:$0xff] }
 0x658   : >> { %8717 = vmatpush3.bf16.msra.mxu0 %v8714_v33  ;;  %8303 = vmatprep.subr.bf16.mxu1 %v8302_v37  ;;  %v2941_v33 = vld [vmem:[#allocation12 + $0x620] sm:$0xff]  ;;  %v8754_v26 = vpack.c.bf16 %v4751_v47, %v4750_v5  ;;  %v4891_v47 = vld [vmem:[#allocation12 + $0xd68] sm:$0xff] }
 0x659   : >> { %8719 = vmatprep.subr.bf16.mxu0 %v8718_v44  ;;  %7122 = vmatprep.mubr.f32.mxu1 %v5581_v54  ;;  %v4747_v54 = vld [vmem:[#allocation12 + $0xcb8] sm:$0xff]  ;;  %v4890_v5 = vld [vmem:[#allocation12 + $0xd60] sm:$0xff] }
 0x65a   : >> { %7694 = vmatprep.mubr.f32.mxu0 %v5685_v56  ;;  %v5585_v56 = vld [vmem:[%s10735_s3 + $0xe2] sm:$0xff]  ;;  %v8746_v38 = vpack.c.bf16 %v4747_v54, %v4746_v39  ;;  %v4883_v54 = vld [vmem:[#allocation12 + $0xd28] sm:$0xff] }
 0x65b   : >> { %8305 = vmatpush3.bf16.msra.mxu1 %v8302_v37  ;;  %v8326_v37 = vpack.c.bf16 %v2942_v6, %v2941_v33  ;;  %v4754_v33 = vld [vmem:[#allocation12 + $0xcf0] sm:$0xff]  ;;  %v4755_v6 = vld [vmem:[#allocation12 + $0xcf8] sm:$0xff]  ;;  %v4882_v39 = vld [vmem:[#allocation12 + $0xd20] sm:$0xff] }
 0x65c   : >> { %8721 = vmatpush3.bf16.msra.mxu0 %v8718_v44  ;;  %8307 = vmatprep.subr.bf16.mxu1 %v8306_v16  ;;  %v5688_v44 = vld [vmem:[%s10735_s3 + $0x190] sm:$0xff] }
 0x65d   : >> { %8723 = vmatprep.subr.bf16.mxu0 %v8722_v8 }
 0x65f   : >> { %8309 = vmatpush3.bf16.msra.mxu1 %v8306_v16  ;;  %v5586_v16 = vld [vmem:[%s10735_s3 + $0xf2] sm:$0xff] }
 0x660   : >> { %8725 = vmatpush3.bf16.msra.mxu0 %v8722_v8  ;;  %8311 = vmatprep.subr.bf16.mxu1 %v8310_v9  ;;  %v5689_v8 = vld [vmem:[%s10735_s3 + $0x1a0] sm:$0xff] }
 0x661   : >> { %8727 = vmatprep.subr.bf16.mxu0 %v8726_v7 }
 0x663   : >> { %8313 = vmatpush3.bf16.msra.mxu1 %v8310_v9  ;;  %v2946_v9 = vld [vmem:[#allocation12 + $0x648] sm:$0xff] }
 0x664   : >> { %8729 = vmatpush3.bf16.msra.mxu0 %v8726_v7  ;;  %8315 = vmatprep.subr.bf16.mxu1 %v8314_v19  ;;  %v4748_v7 = vld [vmem:[#allocation12 + $0xcc0] sm:$0xff]  ;;  %v8334_v4 = vpack.c.bf16 %v2946_v9, %v2945_v40  ;;  %v8810_v9 = vpack.c.bf16 %v10709_v20, %v10707_v63 }
 0x665   : >> { %8731 = vmatprep.subr.bf16.mxu0 %v8730_v11 }
 0x667   : >> { %8317 = vmatpush3.bf16.msra.mxu1 %v8314_v19  ;;  %v5692_v19 = vld [vmem:[%s10735_s3 + $0x1d0] sm:$0xff] }
 0x668   : >> { %8733 = vmatpush3.bf16.msra.mxu0 %v8730_v11  ;;  %8319 = vmatprep.subr.bf16.mxu1 %v8318_v27  ;;  %v8750_v11 = vpack.c.bf16 %v4749_v0, %v4748_v7  ;;  %v5596_v7 = vld [vmem:[%s10735_s3 + $0x120] sm:$0xff]  ;;  %v5700_v0 = vld [vmem:[%s10735_s3 + $0x1d1] sm:$0xff] }
 0x669   : >> { %8735 = vmatprep.subr.bf16.mxu0 %v8734_v31 }
 0x66a   : >> { %7123 = vmatmul.mubr.f32.vlgmr.msra.gmra.mrb[0].mxu1 %v5582_v17  ;;  %v4753_v17 = vld [vmem:[#allocation12 + $0xce8] sm:$0xff] }
 0x66b   : >> { %8321 = vmatpush3.bf16.msra.mxu1 %v8318_v27  ;;  %7695 = vmatmul.mubr.f32.vlgmr.msra.gmra.mrb[0].mxu0 %v5686_v14  ;;  %v5693_v27 = vld [vmem:[%s10735_s3 + $0x161] sm:$0xff]  ;;  %v8342_v14 = vpack.c.bf16 %v2950_v32, %v2949_v34  ;;  %v4892_v34 = vld [vmem:[#allocation12 + $0xd70] sm:$0xff] }
 0x66c   : >> { %8737 = vmatpush3.bf16.msra.mxu0 %v8734_v31  ;;  %8323 = vmatprep.subr.bf16.mxu1 %v8322_v43  ;;  %v8338_v31 = vpack.c.bf16 %v2948_v29, %v2947_v53  ;;  %v11444_v53 = vld [vmem:[#allocation42_spill] sm:$0xff] }
 0x66d   : >> { %8739 = vmatprep.subr.bf16.mxu0 %v8738_v55  ;;  %7125 = vmatprep.mubr.f32.mxu1 %v5583_v10  ;;  %v4879_v10 = vld [vmem:[#allocation12 + $0xd08] sm:$0xff]  ;;  %v8818_v29 = vpack.c.bf16 %v11444_v53, %v10715_v28  ;;  %v4893_v32 = vld [vmem:[#allocation12 + $0xd78] sm:$0xff] }
 0x66e   : >> { %7126 = vmatmul.mubr.f32.gmra.mrb[2].mxu1 %v5584_v48  ;;  %7697 = vmatprep.mubr.f32.mxu0 %v5687_v25  ;;  %v8798_v48 = vpack.c.bf16 %v10697_v58, %v10695_v57  ;;  %v8766_v25 = vpack.c.bf16 %v4879_v10, %v4878_v45  ;;  %v5705_v45 = vld [vmem:[%s10735_s3 + $0x1a2] sm:$0xff] }
 0x66f   : >> { %8325 = vmatpush3.bf16.msra.mxu1 %v8322_v43  ;;  %7698 = vmatmul.mubr.f32.gmra.mrb[2].mxu0 %v5688_v44  ;;  %v2951_v43 = vld [vmem:[#allocation12 + $0x670] sm:$0xff]  ;;  %v4881_v44 = vld [vmem:[#allocation12 + $0xd18] sm:$0xff] }
 0x670   : >> { %8741 = vmatpush3.bf16.msra.mxu0 %v8738_v55  ;;  %8327 = vmatprep.subr.bf16.mxu1 %v8326_v37  ;;  %v2952_v55 = vld [vmem:[#allocation12 + $0x678] sm:$0xff] }
 0x671   : >> { %8743 = vmatprep.subr.bf16.mxu0 %v8742_v51  ;;  %7128 = vmatprep.mubr.f32.mxu1 %v5585_v56  ;;  %v8346_v3 = vpack.c.bf16 %v2952_v55, %v2951_v43  ;;  %v5695_v56 = vld [vmem:[%s10735_s3 + $0x181] sm:$0xff]  ;;  %v5702_v43 = vld [vmem:[%s10735_s3 + $0x172] sm:$0xff] }
 0x672   : >> { %7129 = vmatmul.mubr.f32.gmra.mrb[4].mxu1 %v5586_v16  ;;  %7700 = vmatprep.mubr.f32.mxu0 %v5689_v8  ;;  %v5696_v16 = vld [vmem:[%s10735_s3 + $0x191] sm:$0xff]  ;;  %v8774_v8 = vpack.c.bf16 %v4883_v54, %v4882_v39  ;;  %v5038_v55 = vld [vmem:[%s11159_s16 + $0x8] sm:$0xff]  ;;  %v5041_v10 = vld [vmem:[%s11159_s16 + $0x20] sm:$0xff] }
 0x673   : >> { %8329 = vmatpush3.bf16.msra.mxu1 %v8326_v37  ;;  %7701 = vmatmul.mubr.f32.gmra.mrb[4].mxu0 %v5690_v13  ;;  %v4880_v37 = vld [vmem:[#allocation12 + $0xd10] sm:$0xff]  ;;  %v4885_v13 = vld [vmem:[#allocation12 + $0xd38] sm:$0xff] }
 0x674   : >> { %8745 = vmatpush3.bf16.msra.mxu0 %v8742_v51  ;;  %8331 = vmatprep.subr.bf16.mxu1 %v8330_v36  ;;  %v5694_v51 = vld [vmem:[%s10735_s3 + $0x171] sm:$0xff]  ;;  %v8770_v18 = vpack.c.bf16 %v4881_v44, %v4880_v37 }
 0x675   : >> { %8747 = vmatprep.subr.bf16.mxu0 %v8746_v38  ;;  %7131 = vmatprep.mubr.f32.mxu1 %v5587_v41  ;;  %v5037_v41 = vld [vmem:[%s11159_s16] sm:$0xff]  ;;  %v5043_v37 = vld [vmem:[%s11159_s16 + $0x30] sm:$0xff] }
 0x676   : >> { %7132 = vmatmul.mubr.f32.gmra.mrb[6].mxu1 %v5588_v46  ;;  %7703 = vmatprep.mubr.f32.mxu0 %v11056_v15  ;;  %v8758_v15 = vpack.c.bf16 %v4753_v17, %v4752_v12  ;;  %v8794_v12 = vpack.c.bf16 %v4893_v32, %v4892_v34  ;;  %v11447_v17 = vld [vmem:[#allocation45_spill] sm:$0xff] }
 0x677   : >> { %8333 = vmatpush3.bf16.msra.mxu1 %v8330_v36  ;;  %7704 = vmatmul.mubr.f32.gmra.mrb[6].mxu0 %v5692_v19  ;;  %v8806_v36 = vpack.c.bf16 %v10705_v62, %v10703_v61  ;;  %v4889_v19 = vld [vmem:[#allocation12 + $0xd58] sm:$0xff]  ;;  %v5708_v44 = vld [vmem:[%s10735_s3 + $0x1d2] sm:$0xff] }
 0x678   : >> { %8749 = vmatpush3.bf16.msra.mxu0 %v8746_v38  ;;  %8335 = vmatprep.subr.bf16.mxu1 %v8334_v4  ;;  %v5698_v38 = vld [vmem:[%s10735_s3 + $0x1b1] sm:$0xff] }
 0x679   : >> { %8751 = vmatprep.subr.bf16.mxu0 %v8750_v11  ;;  %7166 = vmatprep.mubr.f32.mxu1 %v11064_v2  ;;  %v8762_v2 = vpack.c.bf16 %v4755_v6, %v4754_v33  ;;  %v5703_v33 = vld [vmem:[%s10735_s3 + $0x182] sm:$0xff]  ;;  %v5039_v6 = vld [vmem:[%s11159_s16 + $0x10] sm:$0xff] }
 0x67a   : >> { %7738 = vmatprep.mubr.f32.mxu0 %v5693_v27  ;;  %v11445_v27 = vld [vmem:[#allocation43_spill] sm:$0xff] }
 0x67b   : >> { %8337 = vmatpush3.bf16.msra.mxu1 %v8334_v4  ;;  %v8814_v4 = vpack.c.bf16 %v10713_v22, %v10711_v21 }
 0x67c   : >> { %8753 = vmatpush3.bf16.msra.mxu0 %v8750_v11  ;;  %8339 = vmatprep.subr.bf16.mxu1 %v8338_v31 }
 0x67d   : >> { %8755 = vmatprep.subr.bf16.mxu0 %v8754_v26 }
 0x67f   : >> { %8341 = vmatpush3.bf16.msra.mxu1 %v8338_v31  ;;  %v11446_v31 = vld [vmem:[#allocation44_spill] sm:$0xff] }
 0x680   : >> { %8757 = vmatpush3.bf16.msra.mxu0 %v8754_v26  ;;  %8343 = vmatprep.subr.bf16.mxu1 %v8342_v14  ;;  %v8822_v26 = vpack.c.bf16 %v11446_v31, %v11445_v27 }
 0x681   : >> { %8759 = vmatprep.subr.bf16.mxu0 %v8758_v15 }
 0x683   : >> { %8345 = vmatpush3.bf16.msra.mxu1 %v8342_v14  ;;  %v11448_v14 = vld [vmem:[#allocation46_spill] sm:$0xff] }
 0x684   : >> { %8761 = vmatpush3.bf16.msra.mxu0 %v8758_v15  ;;  %8347 = vmatprep.subr.bf16.mxu1 %v8346_v3  ;;  %v8826_v15 = vpack.c.bf16 %v11448_v14, %v11447_v17 }
 0x685   : >> { %8763 = vmatprep.subr.bf16.mxu0 %v8762_v2 }
 0x687   : >> { %8349 = vmatpush3.bf16.msra.mxu1 %v8346_v3  ;;  %v5704_v3 = vld [vmem:[%s10735_s3 + $0x192] sm:$0xff] }
 0x688   : >> { %8765 = vmatpush3.bf16.msra.mxu0 %v8762_v2  ;;  %8799 = vmatprep.subr.bf16.mxu1 %v8798_v48  ;;  %v5040_v2 = vld [vmem:[%s11159_s16 + $0x18] sm:$0xff] }
 0x689   : >> { %8767 = vmatprep.subr.bf16.mxu0 %v8766_v25 }
 0x68a   : >> { %7167 = vmatmul.mubr.f32.vlgmr.msra.gmra.mrb[0].mxu1 %v11068_v49  ;;  %v4884_v49 = vld [vmem:[#allocation12 + $0xd30] sm:$0xff] }
 0x68b   : >> { %7739 = vmatmul.mubr.f32.vlgmr.msra.gmra.mrb[0].mxu0 %v5694_v51  ;;  %7169 = vmatprep.mubr.f32.mxu1 %v11072_v24  ;;  %v5697_v24 = vld [vmem:[%s10735_s3 + $0x1a1] sm:$0xff]  ;;  %v8778_v40 = vpack.c.bf16 %v4885_v13, %v4884_v49  ;;  %v5044_v51 = vld [vmem:[%s11159_s16 + $0x38] sm:$0xff] }
 0x68c   : >> { %8769 = vmatpush3.bf16.msra.mxu0 %v8766_v25  ;;  %8801 = vmatpush3.bf16.msra.mxu1 %v8798_v48  ;;  %v5706_v48 = vld [vmem:[%s10735_s3 + $0x1b2] sm:$0xff]  ;;  %v5042_v25 = vld [vmem:[%s11159_s16 + $0x28] sm:$0xff] }
 0x68d   : >> { %8771 = vmatprep.subr.bf16.mxu0 %v8770_v18  ;;  %8803 = vmatprep.subr.bf16.mxu1 %v8802_v35 }
 0x68e   : >> { %7170 = vmatmul.mubr.f32.gmra.mrb[2].mxu1 %v11078_v52  ;;  %7741 = vmatprep.mubr.f32.mxu0 %v5695_v56  ;;  %v4886_v52 = vld [vmem:[#allocation12 + $0xd40] sm:$0xff] }
 0x68f   : >> { %7172 = vmatprep.mubr.f32.mxu1 %v11082_v42  ;;  %7742 = vmatmul.mubr.f32.gmra.mrb[2].mxu0 %v5696_v16  ;;  %v4887_v42 = vld [vmem:[#allocation12 + $0xd48] sm:$0xff] }
 0x690   : >> { %8773 = vmatpush3.bf16.msra.mxu0 %v8770_v18  ;;  %8805 = vmatpush3.bf16.msra.mxu1 %v8802_v35  ;;  %v8782_v46 = vpack.c.bf16 %v4887_v42, %v4886_v52  ;;  %v11450_v42 = vld [vmem:[#allocation47_spill] sm:$0xff] }
 0x691   : >> { %8775 = vmatprep.subr.bf16.mxu0 %v8774_v8  ;;  %8807 = vmatprep.subr.bf16.mxu1 %v8806_v36 }
 0x692   : >> { %7173 = vmatmul.mubr.f32.gmra.mrb[4].mxu1 %v11088_v30  ;;  %7744 = vmatprep.mubr.f32.mxu0 %v5697_v24  ;;  %v4888_v30 = vld [vmem:[#allocation12 + $0xd50] sm:$0xff] }
 0x693   : >> { %7175 = vmatprep.mubr.f32.mxu1 %v11092_v50  ;;  %7745 = vmatmul.mubr.f32.gmra.mrb[4].mxu0 %v5698_v38  ;;  %v5701_v50 = vld [vmem:[%s10735_s3 + $0x162] sm:$0xff]  ;;  %v8786_v11 = vpack.c.bf16 %v4889_v19, %v4888_v30  ;;  %v11451_v30 = vld [vmem:[#allocation41_spill] sm:$0xff]  ;;  %s9810_s3 = smov (%p1274_p0), [#allocation20]  }
 0x694   : >> { %8777 = vmatpush3.bf16.msra.mxu0 %v8774_v8  ;;  %8809 = vmatpush3.bf16.msra.mxu1 %v8806_v36  ;;  %s9609_s17 = sshll.u32 (%p1274_p0), %s9810_s3, 4  ;;  %s9610_s17 = int_to_ptr.vmem [resolvable:$false] %s9609_s17 }
 0x695   : >> { %8779 = vmatprep.subr.bf16.mxu0 %v8778_v40  ;;  %8811 = vmatprep.subr.bf16.mxu1 %v8810_v9  ;;  %s9611_s27 = scalar_lea.vmem (%p1274_p0), %s9610_s17, 8192  ;;  %p9612_p11 = scmp.lt.s32.totalorder (%p1274_p0), %s11233_s22, %s9610_s17 }
 0x696   : >> { %7176 = vmatmul.mubr.f32.gmra.mrb[6].mxu1 %v5596_v7  ;;  %7747 = vmatprep.mubr.f32.mxu0 %v11095_v23  ;;  %v8790_v23 = vpack.c.bf16 %v4891_v47, %v4890_v5  ;;  %p9613_p2 = scmp.lt.s32.totalorder (%p1274_p0), %s9611_s27, %s9605_s1 }
 0x697   : >> { %7748 = vmatmul.mubr.f32.gmra.mrb[6].mxu0 %v5700_v0  ;;  %7826 = vmatprep.mubr.f32.mxu1 %v5037_v41 }
 0x698   : >> { %8781 = vmatpush3.bf16.msra.mxu0 %v8778_v40  ;;  %8813 = vmatpush3.bf16.msra.mxu1 %v8810_v9  ;;  %p9614_p10 = por (%p1274_p0), %p9613_p2, %p9612_p11 }
 0x699   : >> { %8783 = vmatprep.subr.bf16.mxu0 %v8782_v46  ;;  %8815 = vmatprep.subr.bf16.mxu1 %v8814_v4 }
 0x69a   : >> { %7782 = vmatprep.mubr.f32.mxu0 %v5701_v50  ;;  %p9615_p9 = pnand (%p1274_p0), %p9614_p10, %p9608_p4 }
 0x69c   : >> { %8785 = vmatpush3.bf16.msra.mxu0 %v8782_v46  ;;  %8817 = vmatpush3.bf16.msra.mxu1 %v8814_v4 }
 0x69d   : >> { %8787 = vmatprep.subr.bf16.mxu0 %v8786_v11  ;;  %8819 = vmatprep.subr.bf16.mxu1 %v8818_v29 }
 0x6a0   : >> { %8789 = vmatpush3.bf16.msra.mxu0 %v8786_v11  ;;  %8821 = vmatpush3.bf16.msra.mxu1 %v8818_v29 }
 0x6a1   : >> { %8791 = vmatprep.subr.bf16.mxu0 %v8790_v23  ;;  %8823 = vmatprep.subr.bf16.mxu1 %v8822_v26 }
 0x6a4   : >> { %8793 = vmatpush3.bf16.msra.mxu0 %v8790_v23  ;;  %8825 = vmatpush3.bf16.msra.mxu1 %v8822_v26 }
 0x6a5   : >> { %8795 = vmatprep.subr.bf16.mxu0 %v8794_v12  ;;  %8827 = vmatprep.subr.bf16.mxu1 %v8826_v15 }
 0x6a8   : >> { %8797 = vmatpush3.bf16.msra.mxu0 %v8794_v12  ;;  %8829 = vmatpush3.bf16.msra.mxu1 %v8826_v15 }
 0x6ab   : >> { %7783 = vmatmul.mubr.f32.vlgmr.msra.gmra.mrb[0].mxu0 %v5702_v43  ;;  %7827 = vmatmul.mubr.f32.vlgmr.msra.gmra.mrb[8].mxu1 %v5038_v55 }
 0x6ac   : >> { %7785 = vmatprep.mubr.f32.mxu0 %v5703_v33  ;;  %7829 = vmatprep.mubr.f32.mxu1 %v5039_v6 }
 0x6af   : >> { %7786 = vmatmul.mubr.f32.gmra.mrb[2].mxu0 %v5704_v3  ;;  %7830 = vmatmul.mubr.f32.gmra.mrb[10].mxu1 %v5040_v2 }
 0x6b0   : >> { %7788 = vmatprep.mubr.f32.mxu0 %v5705_v45  ;;  %7832 = vmatprep.mubr.f32.mxu1 %v5041_v10 }
 0x6b3   : >> { %7789 = vmatmul.mubr.f32.gmra.mrb[4].mxu0 %v5706_v48  ;;  %7833 = vmatmul.mubr.f32.gmra.mrb[12].mxu1 %v5042_v25 }
 0x6b4   : >> { %7791 = vmatprep.mubr.f32.mxu0 %v11116_v1  ;;  %7835 = vmatprep.mubr.f32.mxu1 %v5043_v37  ;;  %v11449_v1 = vld [vmem:[#allocation40_spill] sm:$0xff] }
 0x6b7   : >> { %7792 = vmatmul.mubr.f32.gmra.mrb[6].mxu0 %v5708_v44  ;;  %7836 = vmatmul.mubr.f32.gmra.mrb[14].mxu1 %v5044_v51 }
 0x75d   : >> { %v7168_v18 = vpop.f32.mrb[0].mxu1 }
 0x75e   : >> { %v3019_v35 = vpop.f32.mrb[1].mxu1 }
 0x761   : >> { %v7171_v39 = vpop.f32.mrb[2].mxu1 }
 0x762   : >> { %v3029_v54 = vpop.f32.mrb[3].mxu1 }
 0x765   : >> { %v7174_v56 = vpop.f32.mrb[4].mxu1 }
 0x766   : >> { %v3039_v16 = vpop.f32.mrb[5].mxu1 }
 0x769   : >> { %v7177_v8 = vpop.f32.mrb[6].mxu1 }
 0x76a   : >> { %v3049_v36 = vpop.f32.mrb[7].mxu1 }
 0x77e   : >> { %v7784_v49 = vpop.f32.mrb[0].mxu0  ;;  %v7828_v13 = vpop.f32.mrb[8].mxu1 }
 0x77f   : >> { %v8878_v24 = vadd.f32 %v7784_v49, %v7168_v18  ;;  %v4960_v38 = vpop.f32.mrb[1].mxu0  ;;  %v5117_v40 = vpop.f32.mrb[9].mxu1  ;;  %v5123_v7 = vadd.f32 %v7828_v13, %v11450_v42 }
 0x780   : >> { %v8879_v9 = vadd.f32 %v4960_v38, %v3019_v35  ;;  %v5118_v46 = vadd.f32 %v11450_v42, %v5117_v40 }
 0x781   : >> { %v5014_v52 = vmul.f32 %v8878_v24, %v11449_v1 }
 0x782   : >> { %v5013_v0 = vmul.f32 %v8879_v9, %v11449_v1  ;;  %v7787_v41 = vpop.f32.mrb[2].mxu0  ;;  %v7831_v4 = vpop.f32.mrb[10].mxu1 }
 0x783   : >> { %v5028_v19 = vadd.f32 %v11451_v30, %v5014_v52  ;;  %v8880_v50 = vadd.f32 %v7787_v41, %v7171_v39  ;;  %v4970_v11 = vpop.f32.mrb[3].mxu0  ;;  %v5127_v53 = vpop.f32.mrb[11].mxu1  ;;  %v5133_v27 = vadd.f32 %v7831_v4, %v11450_v42 }
 0x784   : >> { %v5027_v29 = vadd.f32 %v11451_v30, %v5013_v0  ;;  %v8881_v5 = vadd.f32 %v4970_v11, %v3029_v54  ;;  %v5128_v32 = vadd.f32 %v11450_v42, %v5127_v53 }
 0x785   : >> { %v5157_v47 = vadd.f32 %v5123_v7, %v5028_v19  ;;  %v5016_v23 = vmul.f32 %v8880_v50, %v11449_v1 }
 0x786   : >> { %v5156_v31 = vadd.f32 %v5118_v46, %v5027_v29  ;;  %v5015_v26 = vmul.f32 %v8881_v5, %v11449_v1  ;;  %v7790_v34 = vpop.f32.mrb[4].mxu0  ;;  %v7834_v12 = vpop.f32.mrb[12].mxu1 }
 0x787   : >> { %v5165_v17 = vmax.f32 %v5157_v47, 0.0  ;;  %v5030_v14 = vadd.f32 %v11451_v30, %v5016_v23  ;;  %v8882_v15 = vadd.f32 %v7790_v34, %v7174_v56  ;;  %v4980_v43 = vpop.f32.mrb[5].mxu0  ;;  %v5137_v55 = vpop.f32.mrb[13].mxu1  ;;  %v5143_v10 = vadd.f32 %v7834_v12, %v11450_v42 }
 0x788   : >> { %v5164_v33 = vmax.f32 %v5156_v31, 0.0  ;;  %v5029_v6 = vadd.f32 %v11451_v30, %v5015_v26  ;;  %v8883_v3 = vadd.f32 %v4980_v43, %v3039_v16  ;;  %v5138_v44 = vadd.f32 %v11450_v42, %v5137_v55 }
 0x789   : >> { %5174 = vst [vmem:[%s11201_s7 + $0x8] sm:$0xff] %v5165_v17  ;;  %v5159_v2 = vadd.f32 %v5133_v27, %v5030_v14  ;;  %v5018_v45 = vmul.f32 %v8882_v15, %v11449_v1 }
 0x78a   : >> { %5173 = vst [vmem:[%s11201_s7] sm:$0xff] %v5164_v33  ;;  %v5158_v48 = vadd.f32 %v5128_v32, %v5029_v6  ;;  %v5017_v25 = vmul.f32 %v8883_v3, %v11449_v1  ;;  %v7793_v37 = vpop.f32.mrb[6].mxu0  ;;  %v7837_v51 = vpop.f32.mrb[14].mxu1 }
 0x78b   : >> { %v5167_v18 = vmax.f32 %v5159_v2, 0.0  ;;  %v5032_v35 = vadd.f32 %v11451_v30, %v5018_v45  ;;  %v8884_v39 = vadd.f32 %v7793_v37, %v7177_v8  ;;  %v4990_v54 = vpop.f32.mrb[7].mxu0  ;;  %v5147_v56 = vpop.f32.mrb[15].mxu1  ;;  %v5153_v40 = vadd.f32 %v7837_v51, %v11450_v42 }
 0x78c   : >> { %v5166_v16 = vmax.f32 %v5158_v48, 0.0  ;;  %v5031_v49 = vadd.f32 %v11451_v30, %v5017_v25  ;;  %v8885_v13 = vadd.f32 %v4990_v54, %v3049_v36  ;;  %v5148_v52 = vadd.f32 %v11450_v42, %v5147_v56 }
 0x78d   : >> { %5176 = vst [vmem:[%s11201_s7 + $0x18] sm:$0xff] %v5167_v18  ;;  %v5161_v24 = vadd.f32 %v5143_v10, %v5032_v35  ;;  %v5020_v38 = vmul.f32 %v8884_v39, %v11449_v1 }
 0x78e   : >> { %5175 = vst [vmem:[%s11201_s7 + $0x10] sm:$0xff] %v5166_v16  ;;  %v5160_v9 = vadd.f32 %v5138_v44, %v5031_v49  ;;  %v5019_v8 = vmul.f32 %v8885_v13, %v11449_v1 }
 0x78f   : >> { %v5169_v7 = vmax.f32 %v5161_v24, 0.0  ;;  %v5034_v0 = vadd.f32 %v11451_v30, %v5020_v38 }
 0x790   : >> { %v5168_v41 = vmax.f32 %v5160_v9, 0.0  ;;  %v5033_v36 = vadd.f32 %v11451_v30, %v5019_v8  ;;  %1276 = sbr.rel (!%p1274_p0) target bundleno = 1255 (0x4e7), region = 239 }
 0x791   : >> { %5178 = vst [vmem:[%s11201_s7 + $0x28] sm:$0xff] %v5169_v7  ;;  %v5163_v46 = vadd.f32 %v5153_v40, %v5034_v0 }
 0x792   : >> { %5177 = vst [vmem:[%s11201_s7 + $0x20] sm:$0xff] %v5168_v41  ;;  %v5162_v4 = vadd.f32 %v5148_v52, %v5033_v36 }
 0x793   : >> { %v5171_v19 = vmax.f32 %v5163_v46, 0.0 }
 0x794   : >> { %v5170_v50 = vmax.f32 %v5162_v4, 0.0 }
 0x795   : >> { %5180 = vst [vmem:[%s11201_s7 + $0x38] sm:$0xff] %v5171_v19 }
 0x796   : >> { %5179 = vst [vmem:[%s11201_s7 + $0x30] sm:$0xff] %v5170_v50 }
 0x797   : > { %9618 = shalt.err (!%p9615_p9)
}
 0x798   : > { %s9619_s16 = scalar_lea.hbm %s11238_s5, 4096  ;;  %s9623_s4 = scalar_lea.hbm %s11454_s9, 16384 }
 0x799   : > { %p9620_p7 = scmp.ne.s32.totalorder %s11238_s5, %s9619_s16  ;;  %p9624_p3 = scmp.lt.u32.totalorder %s11238_s5, %s11454_s9 }
 0x79a   : > { %p9625_p5 = scmp.lt.u32.totalorder %s9623_s4, %s9619_s16  ;;  %p9627_p6 = scmp.lt.u32.totalorder %s9619_s16, %s11238_s5 }
 0x79b   : > { %p9621_p1 = pnand %p9620_p7, %p11455_p13 }
 0x79c   : > { %p9626_p0 = por %p9625_p5, %p9624_p3 }
 0x79d   : > { %p9622_p12 = pneg %p9621_p1 }
 0x79e   : > { %p9628_p8 = por %p9627_p6, %p9626_p0 }
 0x7a0   : > { %p9629_p4 = pnand %p9628_p8, %p9622_p12 }
 0x7a2   : > { %9632 = shalt.err (!%p9629_p4)
}
 0x7a3   : > { %s9811_s2 = smov 128   ;;  %s9812_s19 = smov 8  }
 0x7a4   : > { %9120 = dma.vmem_to_hbm [thread:$0]  (%p11455_p13), %s11233_s22, 4096, %s11238_s5, %s5182_s10, %s9811_s2, %s9811_s2, %s9812_s19  }
 0x7a5 PF: > { %s11456_s8 = sld [smem:[#allocation33_spill]]  ;;  %p9173_p11 = scmp.ge.s32.totalorder %s9783_s26, 2 }
 0x7a6   : > { %p11457_p2 = scmp.ne.s32.totalorder %s11401_s11, 0 }
 0x7a8   : > { %p9155_p10 = pnand %p9173_p11, %p11457_p2 }
 0x7ab   : > { %s5212_s1 = sand.u32 1, %s11456_s8  }
 0x7ac   : > { %s5213_s3 = scalar_lea.sflag [#allocation5], %s5212_s1 }
 0x7ad   : > { %9726 = dma.done.wait (!%p9155_p10), %s5213_s3, 4096  }
 0x7ae   : > { %9728 = vsyncadd (!%p9155_p10), %s5213_s3, 4294963200  ;;  %s33_s26 = sadd.s32 1, %s9783_s26   ;;  %s11459_s13 = sld [smem:[#allocation30_spill]] }
 0x7af   : > { %p11269_p9 = scmp.ge.s32.totalorder %s33_s26, 6   ;;  %s11460_s14 = sld [smem:[#allocation31_spill]] }
 0x7b0   : > { %s11461_s16 = sld [smem:[#allocation32_spill]]  ;;  %s11462_s19 = sld [smem:[#allocation34_spill]] }
 0x7b1   : > { %s11463_s0 = sld [smem:[#allocation35_spill]]  ;;  %s11464_s11 = smov %s11477_s20 }
 0x7b2   : > { %s11465_s5 = smov %s11481_s21  ;;  %s11467_s15 = smov %s11491_s6 }
 0x7b3   : > { %s11468_s17 = smov %s9751_s18  ;;  %s11469_s18 = smov %s10078_s23 }
 0x7b4   : > { %s11471_s21 = smov %s10216_s29  ;;  %s11472_s22 = smov %s9775_s24 }
 0x7b5   : > { %s11473_s23 = smov %s9779_s25  ;;  %s11474_s24 = smov %s11464_s11 }
 0x7b6   : > { %s11475_s25 = smov %s11465_s5  ;;  %32 = sbr.rel (!%p11269_p9) target bundleno = 28 (0x1c), region = 250 }
 0x7b7   : > { %s11470_s20 = smov %s11463_s0 }
 0x7bd   :  { %5218 = vsyncpa [#allocation4], 1 }
 0x7be   :  { %5220 = vsyncpa [#allocation4 + $0x1], 1 }
 0x7bf   :  { %5221 = vsyncpa [#allocation7], 1 }
 0x7c0   :  { %5223 = vsyncpa [#allocation7 + $0x1], 1 }
 0x7c1   :  { %5224 = vsyncpa [#allocation10], 1 }
 0x7c2   :  { %5225 = vsyncpa [#allocation13], 1 }
 0x7c3   :  { %5226 = vsyncpa [#allocation16], 1 }
 0x7c4   :  { %5227 = vsyncpa [#allocation19], 1 }
 0x7c5   :  { %5228 = vsyncpa [#allocation5], 1 }
 0x7c6   :  { %5230 = vsyncpa [#allocation5 + $0x1], 1 }

</bundles_post_ra>
